<compile_context>
chip_gen: v5e
topology: v5e:2x2
jax: 0.10.0
libtpu: 0.0.40
codegen_flags: <defaults>
</compile_context>

<pallas_src>
import functools

import jax
import jax.numpy as jnp
from jax.experimental import pallas as pl
from jax.experimental.pallas import tpu as pltpu

EPS = 1e-5
LANE = 128
VMEM_LIMIT = 48 * 1024 * 1024   # above the 32 MiB scoped default, headroom on v7x


def _round_up(x, m):
    return (x + m - 1) // m * m


def _pick_tile_rows(h, w, cpad, budget_bytes=2 << 20):
    """Largest even divisor of h (capped at h//2) whose f32 y-tile fits budget."""
    cap = max(2, h // 2)
    best = None
    for cand in range(2, h + 1, 2):
        if h % cand or cand > cap:
            continue
        if cand * w * cpad * 4 > budget_bytes:
            continue
        best = cand
    return best if best is not None else 2


# ----------------------------------------------------------------------------
# Pallas kernels
# ----------------------------------------------------------------------------
def _conv_stats_kernel(xa_ref, xb_ref, w_ref, b_ref,
                       y_ref, sum_ref, ssq_ref, *, th, w_out):
    """Pass 1: 3x3 conv (9 accumulated MXU taps) + bias, plus BN partial stats.

    xa_ref : (1, TH,   W+2, Cin)  bf16   rows [t*TH, (t+1)*TH) of padded input
    xb_ref : (1, TH,   W+2, Cin)  bf16   next row-block (first 2 rows = halo)
    w_ref  : (3, 3, Cin, Cpad)    bf16   packed conv weights
    b_ref  : (1, Cpad)            f32    conv bias
    y_ref  : (1, TH, W, Cpad)     f32    conv + bias output tile
    sum_ref: (1, 1, Cpad)         f32    per-image running sum   (accumulator)
    ssq_ref: (1, 1, Cpad)         f32    per-image running sum^2 (accumulator)
    """
    @pl.when(pl.program_id(1) == 0)
    def _init():
        sum_ref[...] = jnp.zeros_like(sum_ref)
        ssq_ref[...] = jnp.zeros_like(ssq_ref)

    xa = xa_ref[0]                                     # (TH,   W+2, Cin)
    xb = xb_ref[0]                                     # (TH,   W+2, Cin)
    x_halo = jnp.concatenate([xa, xb[0:2]], axis=0)    # (TH+2, W+2, Cin)

    cin = w_ref.shape[2]
    cpad = w_ref.shape[3]

    acc = jnp.zeros((th * w_out, cpad), jnp.float32)
    for dy in range(3):
        for dx in range(3):
            win = x_halo[dy:dy + th, dx:dx + w_out, :].reshape(th * w_out, cin)
            acc = acc + jnp.dot(win, w_ref[dy, dx],
                                preferred_element_type=jnp.float32)

    y = acc + b_ref[...]                               # (TH*W, Cpad) f32
    y_ref[0] = y.reshape(th, w_out, cpad)

    sum_ref[0] += jnp.sum(y, axis=0, keepdims=True)
    ssq_ref[0] += jnp.sum(y * y, axis=0, keepdims=True)


def _bn_scale_shift(sp_ref, inv_m):
    """sp_ref rows: 0=sum, 1=sum_sq, 2=gamma, 3=beta.  Returns (scale, shift)."""
    mean = sp_ref[0:1, :] * inv_m
    var = sp_ref[1:2, :] * inv_m - mean * mean          # biased batch variance
    scale = sp_ref[2:3, :] * jax.lax.rsqrt(var + EPS)
    shift = sp_ref[3:4, :] - mean * scale
    return scale, shift


def _bn_relu_kernel(y_ref, sp_ref, z_ref, *, inv_m):
    """Pass 2 (no pool): BN(batch stats) + ReLU on one row tile."""
    scale, shift = _bn_scale_shift(sp_ref, inv_m)       # (1, Cpad) each
    y = y_ref[0]                                        # (TH, W, Cpad) f32
    z = jnp.maximum(y * scale[0] + shift[0], 0.0)
    z_ref[0] = z.astype(z_ref.dtype)


def _bn_relu_pool_kernel(y_ref, sp_ref, z_ref, p_ref, *, inv_m, th, w):
    """Pass 2 (fused pool): BN + ReLU + tile-local 2x2 max-pool epilogue."""
    scale, shift = _bn_scale_shift(sp_ref, inv_m)
    y = y_ref[0]                                        # (TH, W, Cpad) f32
    z = jnp.maximum(y * scale[0] + shift[0], 0.0)
    z_ref[0] = z.astype(z_ref.dtype)

    # 2x2 max pool, tile-local (TH and W are even).  Statically unrolled so it
    # lowers with plain slicing/concats on every TPU generation.
    # TODO(synk): for very wide tiles a sublane-strided-load formulation would
    #             be tighter than this unrolled epilogue.
    rows = []
    for i in range(th // 2):
        rmax = jnp.maximum(z[2 * i], z[2 * i + 1])                   # (W, Cpad)
        cols = [jnp.maximum(rmax[2 * j], rmax[2 * j + 1])
                for j in range(w // 2)]                              # (Cpad,)
        rows.append(jnp.stack(cols, axis=0))                         # (W/2, Cpad)
    p_ref[0] = jnp.stack(rows, axis=0).astype(p_ref.dtype)           # (TH/2, W/2, Cpad)


# ----------------------------------------------------------------------------
# pallas_call wrappers
# ----------------------------------------------------------------------------
def _conv_bias_stats(xp, w_pack, bias, *, h, w, th, cpad):
    """xp: (N, H+TH, W+2, Cin) bf16 padded input.  Returns y, sum, sum_sq."""
    n = xp.shape[0]
    cin = xp.shape[-1]
    wp = w + 2
    nbh = h // th
    kernel = functools.partial(_conv_stats_kernel, th=th, w_out=w)
    y, s, q = pl.pallas_call(
        kernel,
        out_shape=(
            jax.ShapeDtypeStruct((n, h, w, cpad), jnp.float32),
            jax.ShapeDtypeStruct((n, 1, cpad), jnp.float32),
            jax.ShapeDtypeStruct((n, 1, cpad), jnp.float32),
        ),
        grid=(n, nbh),
        in_specs=[
            pl.BlockSpec((1, th, wp, cin), lambda b, t: (b, t, 0, 0)),
            pl.BlockSpec((1, th, wp, cin), lambda b, t: (b, t + 1, 0, 0)),
            pl.BlockSpec((3, 3, cin, cpad), lambda b, t: (0, 0, 0, 0)),
            pl.BlockSpec((1, cpad), lambda b, t: (0, 0)),
        ],
        out_specs=(
            pl.BlockSpec((1, th, w, cpad), lambda b, t: (b, t, 0, 0)),
            pl.BlockSpec((1, 1, cpad), lambda b, t: (b, 0, 0)),
            pl.BlockSpec((1, 1, cpad), lambda b, t: (b, 0, 0)),
        ),
        compiler_params=pltpu.CompilerParams(
            dimension_semantics=("parallel", "arbitrary"),
            vmem_limit_bytes=VMEM_LIMIT),
    )(xp, xp, w_pack, bias)
    # Tiny O(N*C) reduction of per-image partial stats (glue).
    return y, jnp.sum(s, axis=0), jnp.sum(q, axis=0)


def _bn_relu_apply(y, s, q, gamma, beta, *, count, th, out_dtype, with_pool):
    n, h, w, cpad = y.shape
    nbh = h // th
    sp = jnp.concatenate([s, q, gamma, beta], axis=0)   # (4, Cpad) f32
    inv_m = 1.0 / float(count)
    in_specs = [
        pl.BlockSpec((1, th, w, cpad), lambda b, t: (b, t, 0, 0)),
        pl.BlockSpec((4, cpad), lambda b, t: (0, 0)),
    ]
    cparams = pltpu.CompilerParams(
        dimension_semantics=("parallel", "parallel"),
        vmem_limit_bytes=VMEM_LIMIT)
    if with_pool:
        kernel = functools.partial(_bn_relu_pool_kernel, inv_m=inv_m, th=th, w=w)
        return pl.pallas_call(
            kernel,
            out_shape=(
                jax.ShapeDtypeStruct((n, h, w, cpad), out_dtype),
                jax.ShapeDtypeStruct((n, h // 2, w // 2, cpad), out_dtype),
            ),
            grid=(n, nbh),
            in_specs=in_specs,
            out_specs=(
                pl.BlockSpec((1, th, w, cpad), lambda b, t: (b, t, 0, 0)),
                pl.BlockSpec((1, th // 2, w // 2, cpad),
                             lambda b, t: (b, t, 0, 0)),
            ),
            compiler_params=cparams,
        )(y, sp)
    kernel = functools.partial(_bn_relu_kernel, inv_m=inv_m)
    return pl.pallas_call(
        kernel,
        out_shape=jax.ShapeDtypeStruct((n, h, w, cpad), out_dtype),
        grid=(n, nbh),
        in_specs=in_specs,
        out_specs=pl.BlockSpec((1, th, w, cpad), lambda b, t: (b, t, 0, 0)),
        compiler_params=cparams,
    )(y, sp)


# ----------------------------------------------------------------------------
# Parameter packing / padding glue
# ----------------------------------------------------------------------------
def _pack_conv_weight(w_oihw, cout_pad, cin_pad=None):
    """PyTorch (Cout,Cin,3,3) -> (3,3,Cin[_pad],Cout_pad) bf16, tap order (dy,dx)."""
    cout, cin, _, _ = w_oihw.shape
    w = jnp.transpose(w_oihw, (2, 3, 1, 0))             # (3,3,Cin,Cout)
    pad_in = 0 if cin_pad is None else cin_pad - cin
    w = jnp.pad(w, ((0, 0), (0, 0), (0, pad_in), (0, cout_pad - cout)))
    return w.astype(jnp.bfloat16)


def _pad_param(v, cpad):
    return jnp.pad(v, (0, cpad - v.shape[0])).reshape(1, cpad).astype(jnp.float32)


def _pad_spatial(x_nhwc, th):
    # 1 row/col of conv zero-padding on top/left, (th-1) rows at the bottom so
    # the halo block (t+1) of the last row tile stays in bounds.
    return jnp.pad(x_nhwc, ((0, 0), (1, th - 1), (1, 1), (0, 0)))


# ----------------------------------------------------------------------------
# Full forward
# ----------------------------------------------------------------------------
@jax.jit
def encoder_block_forward(x_nchw, params):
    """Equivalent of encoder_block.forward: returns (x, p), both NCHW f32."""
    x = jnp.transpose(x_nchw, (0, 2, 3, 1)).astype(jnp.float32)   # NHWC
    n, h, w, _ = x.shape
    out_c = params["w1"].shape[0]
    assert h % 2 == 0 and w % 2 == 0, "even spatial dims required (2x2 pool)"

    cpad = _round_up(out_c, LANE)
    th = _pick_tile_rows(h, w, cpad)
    count = n * h * w                                   # BN reduction size

    # ---- conv1 + bias (+stats) -> bn1 + relu  (internal activation in bf16)
    w1 = _pack_conv_weight(params["w1"], cpad)
    xp1 = _pad_spatial(x.astype(jnp.bfloat16), th)
    y1, s1, q1 = _conv_bias_stats(xp1, w1, _pad_param(params["b1"], cpad),
                                  h=h, w=w, th=th, cpad=cpad)
    z1 = _bn_relu_apply(y1, s1, q1,
                        _pad_param(params["g1"], cpad),
                        _pad_param(params["beta1"], cpad),
                        count=count, th=th,
                        out_dtype=jnp.bfloat16, with_pool=False)

    # ---- conv2 + bias (+stats) -> bn2 + relu + fused 2x2 max-pool
    w2 = _pack_conv_weight(params["w2"], cpad, cin_pad=cpad)
    xp2 = _pad_spatial(z1, th)
    y2, s2, q2 = _conv_bias_stats(xp2, w2, _pad_param(params["b2"], cpad),
                                  h=h, w=w, th=th, cpad=cpad)
    z2, pooled = _bn_relu_apply(y2, s2, q2,
                                _pad_param(params["g2"], cpad),
                                _pad_param(params["beta2"], cpad),
                                count=count, th=th,
                                out_dtype=jnp.float32, with_pool=True)

    x_out = jnp.transpose(z2[..., :out_c], (0, 3, 1, 2))          # NCHW
    p_out = jnp.transpose(pooled[..., :out_c], (0, 3, 1, 2))
    return x_out, p_out


# ----------------------------------------------------------------------------
# Pure-JAX references (PyTorch semantics) for validation
# ----------------------------------------------------------------------------
def _reference_forward(x_nchw, params, mxu_dtype=jnp.float32):
    def conv(v, wgt, b):
        y = jax.lax.conv_general_dilated(
            v.astype(mxu_dtype), wgt.astype(mxu_dtype),
            window_strides=(1, 1), padding=((1, 1), (1, 1)),
            dimension_numbers=("NCHW", "OIHW", "NCHW"),
            preferred_element_type=jnp.float32)
        return y + b[None, :, None, None]

    def bn_relu(v, g, bt):
        mean = jnp.mean(v, axis=(0, 2, 3), keepdims=True)
        var = jnp.mean((v - mean) ** 2, axis=(0, 2, 3), keepdims=True)
        vh = (v - mean) * jax.lax.rsqrt(var + EPS)
        return jnp.maximum(vh * g[None, :, None, None] + bt[None, :, None, None], 0.0)

    h1 = bn_relu(conv(x_nchw, params["w1"], params["b1"]),
                 params["g1"], params["beta1"])
    if mxu_dtype != jnp.float32:
        h1 = h1.astype(mxu_dtype).astype(jnp.float32)   # mirror bf16 intermediate
    h2 = bn_relu(conv(h1, params["w2"], params["b2"]),
                 params["g2"], params["beta2"])
    p = jnp.maximum(
        jnp.maximum(h2[:, :, 0::2, 0::2], h2[:, :, 0::2, 1::2]),
        jnp.maximum(h2[:, :, 1::2, 0::2], h2[:, :, 1::2, 1::2]))
    return h2, p


# ----------------------------------------------------------------------------
if __name__ == "__main__":
    key = jax.random.PRNGKey(0)
    N, in_c, out_c, H, W = 2, 4, 8, 16, 16

    ks = jax.random.split(key, 9)
    params = {
        "w1": 0.1 * jax.random.normal(ks[0], (out_c, in_c, 3, 3), jnp.float32),
        "b1": 0.05 * jax.random.normal(ks[1], (out_c,), jnp.float32),
        "g1": 1.0 + 0.1 * jax.random.normal(ks[2], (out_c,), jnp.float32),
        "beta1": 0.1 * jax.random.normal(ks[3], (out_c,), jnp.float32),
        "w2": 0.1 * jax.random.normal(ks[4], (out_c, out_c, 3, 3), jnp.float32),
        "b2": 0.05 * jax.random.normal(ks[5], (out_c,), jnp.float32),
        "g2": 1.0 + 0.1 * jax.random.normal(ks[6], (out_c,), jnp.float32),
        "beta2": 0.1 * jax.random.normal(ks[7], (out_c,), jnp.float32),
    }
    x = jax.random.normal(ks[8], (N, in_c, H, W), jnp.float32)     # NCHW input

    x_out, p_out = encoder_block_forward(x, params)
    jax.block_until_ready((x_out, p_out))

    assert x_out.shape == (N, out_c, H, W)
    assert p_out.shape == (N, out_c, H // 2, W // 2)

    # Tight check vs a reference that mirrors the kernel's bf16 MXU operands.
    xb_ref, pb_ref = _reference_forward(x, params, mxu_dtype=jnp.bfloat16)
    assert jnp.allclose(x_out, xb_ref, atol=5e-3, rtol=5e-3)
    assert jnp.allclose(p_out, pb_ref, atol=5e-3, rtol=5e-3)

    # Looser sanity check vs the pure-f32 PyTorch-semantics reference
    # (slack accounts for bf16 MXU operands with f32 accumulation).
    xf_ref, pf_ref = _reference_forward(x, params, mxu_dtype=jnp.float32)
    assert jnp.allclose(x_out, xf_ref, atol=5e-2, rtol=5e-2)
    assert jnp.allclose(p_out, pf_ref, atol=5e-2, rtol=5e-2)

    print("KERNEL_OK")
</pallas_src>

<mosaic_0001>
module attributes {stable_mosaic.version = 11 : i64} {
  func.func @_bn_relu_kernel(%arg0: i32, %arg1: i32, %arg2: memref<1x8x16x128xf32, #tpu.memory_space<vmem>>, %arg3: memref<4x128xf32, #tpu.memory_space<vmem>>, %arg4: memref<1x8x16x128xbf16, #tpu.memory_space<vmem>>) attributes {dimension_semantics = [#tpu.dimension_semantics<parallel>, #tpu.dimension_semantics<parallel>], iteration_bounds = array<i64: 2, 2>, scalar_prefetch = 0 : i64, scratch_operands = 0 : i64, tpu.core_type = #tpu.core_type<tc>, window_params = [{transform_indices = @transform_0, window_bounds = array<i64: 1, 8, 16, 128>}, {pipeline_mode = #tpu.pipeline_mode<synchronous>, transform_indices = @transform_1, window_bounds = array<i64: 4, 128>}, {transform_indices = @transform_2, window_bounds = array<i64: 1, 8, 16, 128>}]} {
    %c0 = arith.constant 0 : index
    %c0_0 = arith.constant 0 : index
    %0 = vector.load %arg3[%c0, %c0_0] : memref<4x128xf32, #tpu.memory_space<vmem>>, vector<1x128xf32>
    %cst = arith.constant 0.001953125 : f32
    %1 = vector.broadcast %cst : f32 to vector<1x128xf32>
    %2 = arith.mulf %0, %1 : vector<1x128xf32>
    %c1 = arith.constant 1 : index
    %c0_1 = arith.constant 0 : index
    %3 = vector.load %arg3[%c1, %c0_1] : memref<4x128xf32, #tpu.memory_space<vmem>>, vector<1x128xf32>
    %cst_2 = arith.constant 0.001953125 : f32
    %4 = vector.broadcast %cst_2 : f32 to vector<1x128xf32>
    %5 = arith.mulf %3, %4 : vector<1x128xf32>
    %6 = arith.mulf %2, %2 : vector<1x128xf32>
    %7 = arith.subf %5, %6 : vector<1x128xf32>
    %c2 = arith.constant 2 : index
    %c0_3 = arith.constant 0 : index
    %8 = vector.load %arg3[%c2, %c0_3] : memref<4x128xf32, #tpu.memory_space<vmem>>, vector<1x128xf32>
    %cst_4 = arith.constant 9.99999974E-6 : f32
    %9 = vector.broadcast %cst_4 : f32 to vector<1x128xf32>
    %10 = arith.addf %7, %9 : vector<1x128xf32>
    %11 = math.rsqrt %10 : vector<1x128xf32>
    %12 = arith.mulf %8, %11 : vector<1x128xf32>
    %c3 = arith.constant 3 : index
    %c0_5 = arith.constant 0 : index
    %13 = vector.load %arg3[%c3, %c0_5] : memref<4x128xf32, #tpu.memory_space<vmem>>, vector<1x128xf32>
    %14 = arith.mulf %2, %12 : vector<1x128xf32>
    %15 = arith.subf %13, %14 : vector<1x128xf32>
    %c0_6 = arith.constant 0 : index
    %c0_7 = arith.constant 0 : index
    %c0_8 = arith.constant 0 : index
    %c0_9 = arith.constant 0 : index
    %16 = vector.load %arg2[%c0_6, %c0_7, %c0_8, %c0_9] : memref<1x8x16x128xf32, #tpu.memory_space<vmem>>, vector<1x8x16x128xf32>
    %17 = vector.shape_cast %16 : vector<1x8x16x128xf32> to vector<8x16x128xf32>
    %18 = vector.shape_cast %12 : vector<1x128xf32> to vector<128xf32>
    %19 = vector.shape_cast %18 : vector<128xf32> to vector<1x1x128xf32>
    %20 = vector.broadcast %19 : vector<1x1x128xf32> to vector<8x16x128xf32>
    %21 = arith.mulf %17, %20 : vector<8x16x128xf32>
    %22 = vector.shape_cast %15 : vector<1x128xf32> to vector<128xf32>
    %23 = vector.shape_cast %22 : vector<128xf32> to vector<1x1x128xf32>
    %24 = vector.broadcast %23 : vector<1x1x128xf32> to vector<8x16x128xf32>
    %25 = arith.addf %21, %24 : vector<8x16x128xf32>
    %cst_10 = arith.constant 0.000000e+00 : f32
    %26 = vector.broadcast %cst_10 : f32 to vector<8x16x128xf32>
    %27 = arith.maximumf %25, %26 : vector<8x16x128xf32>
    %28 = arith.truncf %27 : vector<8x16x128xf32> to vector<8x16x128xbf16>
    %c0_11 = arith.constant 0 : index
    %c0_12 = arith.constant 0 : index
    %c0_13 = arith.constant 0 : index
    %c0_14 = arith.constant 0 : index
    %29 = vector.load %arg4[%c0_11, %c0_12, %c0_13, %c0_14] : memref<1x8x16x128xbf16, #tpu.memory_space<vmem>>, vector<1x8x16x128xbf16>
    %30 = vector.shape_cast %29 : vector<1x8x16x128xbf16> to vector<8x16x128xbf16>
    %31 = vector.shape_cast %28 : vector<8x16x128xbf16> to vector<1x8x16x128xbf16>
    tpu.vector_store %arg4[%c0_11, %c0_12, %c0_13, %c0_14], %31 {strides = array<i32>} : memref<1x8x16x128xbf16, #tpu.memory_space<vmem>>, vector<1x8x16x128xbf16>,
    return
  }
  func.func @transform_0(%arg0: i32, %arg1: i32) -> (i32, i32, i32, i32) {
    %c0_i32 = arith.constant 0 : i32
    %c0_i32_0 = arith.constant 0 : i32
    %c0_i32_1 = arith.constant 0 : i32
    return %arg0, %arg1, %c0_i32, %c0_i32_0 : i32, i32, i32, i32
  }
  func.func @transform_1(%arg0: i32, %arg1: i32) -> (i32, i32) {
    %c0_i32 = arith.constant 0 : i32
    %c0_i32_0 = arith.constant 0 : i32
    %c0_i32_1 = arith.constant 0 : i32
    return %c0_i32, %c0_i32_0 : i32, i32
  }
  func.func @transform_2(%arg0: i32, %arg1: i32) -> (i32, i32, i32, i32) {
    %c0_i32 = arith.constant 0 : i32
    %c0_i32_0 = arith.constant 0 : i32
    %c0_i32_1 = arith.constant 0 : i32
    return %arg0, %arg1, %c0_i32, %c0_i32_0 : i32, i32, i32, i32
  }
}

module attributes {stable_mosaic.version = 11 : i64} {
  func.func @_conv_stats_kernel(%arg0: i32, %arg1: i32, %arg2: memref<1x8x18x4xbf16, #tpu.memory_space<vmem>>, %arg3: memref<1x8x18x4xbf16, #tpu.memory_space<vmem>>, %arg4: memref<3x3x4x128xbf16, #tpu.memory_space<vmem>>, %arg5: memref<1x128xf32, #tpu.memory_space<vmem>>, %arg6: memref<1x8x16x128xf32, #tpu.memory_space<vmem>>, %arg7: memref<1x1x128xf32, #tpu.memory_space<vmem>>, %arg8: memref<1x1x128xf32, #tpu.memory_space<vmem>>) attributes {dimension_semantics = [#tpu.dimension_semantics<parallel>, #tpu.dimension_semantics<arbitrary>], iteration_bounds = array<i64: 2, 2>, scalar_prefetch = 0 : i64, scratch_operands = 0 : i64, tpu.core_type = #tpu.core_type<tc>, window_params = [{transform_indices = @transform_0, window_bounds = array<i64: 1, 8, 18, 4>}, {transform_indices = @transform_1, window_bounds = array<i64: 1, 8, 18, 4>}, {pipeline_mode = #tpu.pipeline_mode<synchronous>, transform_indices = @transform_2, window_bounds = array<i64: 3, 3, 4, 128>}, {pipeline_mode = #tpu.pipeline_mode<synchronous>, transform_indices = @transform_3, window_bounds = array<i64: 1, 128>}, {transform_indices = @transform_4, window_bounds = array<i64: 1, 8, 16, 128>}, {transform_indices = @transform_5, window_bounds = array<i64: 1, 1, 128>}, {transform_indices = @transform_6, window_bounds = array<i64: 1, 1, 128>}]} {
    %c0_i32 = arith.constant 0 : i32
    %0 = arith.cmpi eq, %arg1, %c0_i32 : i32
    %1 = arith.extui %0 : i1 to i32
    %c0_i32_0 = arith.constant 0 : i32
    %2 = arith.cmpi ne, %1, %c0_i32_0 : i32
    scf.if %2 {
      %cst_71 = arith.constant 0.000000e+00 : f32
      %88 = vector.broadcast %cst_71 : f32 to vector<1x1x128xf32>
      %c0_72 = arith.constant 0 : index
      %c0_73 = arith.constant 0 : index
      %c0_74 = arith.constant 0 : index
      %89 = vector.load %arg7[%c0_72, %c0_73, %c0_74] : memref<1x1x128xf32, #tpu.memory_space<vmem>>, vector<1x1x128xf32>
      tpu.vector_store %arg7[%c0_72, %c0_73, %c0_74], %88 {strides = array<i32>} : memref<1x1x128xf32, #tpu.memory_space<vmem>>, vector<1x1x128xf32>,
      %cst_75 = arith.constant 0.000000e+00 : f32
      %90 = vector.broadcast %cst_75 : f32 to vector<1x1x128xf32>
      %c0_76 = arith.constant 0 : index
      %c0_77 = arith.constant 0 : index
      %c0_78 = arith.constant 0 : index
      %91 = vector.load %arg8[%c0_76, %c0_77, %c0_78] : memref<1x1x128xf32, #tpu.memory_space<vmem>>, vector<1x1x128xf32>
      tpu.vector_store %arg8[%c0_76, %c0_77, %c0_78], %90 {strides = array<i32>} : memref<1x1x128xf32, #tpu.memory_space<vmem>>, vector<1x1x128xf32>,
    } else {
    }
    %c0 = arith.constant 0 : index
    %c0_1 = arith.constant 0 : index
    %c0_2 = arith.constant 0 : index
    %c0_3 = arith.constant 0 : index
    %3 = vector.load %arg2[%c0, %c0_1, %c0_2, %c0_3] : memref<1x8x18x4xbf16, #tpu.memory_space<vmem>>, vector<1x8x18x4xbf16>
    %4 = vector.shape_cast %3 : vector<1x8x18x4xbf16> to vector<8x18x4xbf16>
    %c0_4 = arith.constant 0 : index
    %c0_5 = arith.constant 0 : index
    %c0_6 = arith.constant 0 : index
    %c0_7 = arith.constant 0 : index
    %5 = vector.load %arg3[%c0_4, %c0_5, %c0_6, %c0_7] : memref<1x8x18x4xbf16, #tpu.memory_space<vmem>>, vector<1x8x18x4xbf16>
    %6 = vector.shape_cast %5 : vector<1x8x18x4xbf16> to vector<8x18x4xbf16>
    %7 = vector.extract_strided_slice %6 {offsets = [0, 0, 0], sizes = [2, 18, 4], strides = [1, 1, 1]} : vector<8x18x4xbf16> to vector<2x18x4xbf16>
    %8 = tpu.concatenate %4, %7 in 0 : vector<8x18x4xbf16>, vector<2x18x4xbf16> -> vector<10x18x4xbf16>
    %cst = arith.constant 0.000000e+00 : f32
    %9 = vector.broadcast %cst : f32 to vector<128x128xf32>
    %10 = vector.extract_strided_slice %8 {offsets = [0, 0, 0], sizes = [8, 16, 4], strides = [1, 1, 1]} : vector<10x18x4xbf16> to vector<8x16x4xbf16>
    %11 = vector.shape_cast %10 : vector<8x16x4xbf16> to vector<128x4xbf16>
    %c0_8 = arith.constant 0 : index
    %c0_9 = arith.constant 0 : index
    %c0_10 = arith.constant 0 : index
    %c0_11 = arith.constant 0 : index
    %12 = vector.load %arg4[%c0_8, %c0_9, %c0_10, %c0_11] : memref<3x3x4x128xbf16, #tpu.memory_space<vmem>>, vector<1x1x4x128xbf16>
    %13 = vector.shape_cast %12 : vector<1x1x4x128xbf16> to vector<4x128xbf16>
    %cst_12 = arith.constant dense<0.000000e+00> : vector<128x128xf32>
    %14 = tpu.matmul %11, %13, %cst_12 {dimension_numbers = #tpu.dot_dimension_numbers<[1], [0], [0], [1], [0, 0, 1, 1], [], []>} : vector<128x4xbf16>, vector<4x128xbf16>, vector<128x128xf32> -> vector<128x128xf32>
    %15 = arith.addf %9, %14 : vector<128x128xf32>
    %16 = vector.extract_strided_slice %8 {offsets = [0, 1, 0], sizes = [8, 16, 4], strides = [1, 1, 1]} : vector<10x18x4xbf16> to vector<8x16x4xbf16>
    %17 = vector.shape_cast %16 : vector<8x16x4xbf16> to vector<128x4xbf16>
    %c0_13 = arith.constant 0 : index
    %c1 = arith.constant 1 : index
    %c0_14 = arith.constant 0 : index
    %c0_15 = arith.constant 0 : index
    %18 = vector.load %arg4[%c0_13, %c1, %c0_14, %c0_15] : memref<3x3x4x128xbf16, #tpu.memory_space<vmem>>, vector<1x1x4x128xbf16>
    %19 = vector.shape_cast %18 : vector<1x1x4x128xbf16> to vector<4x128xbf16>
    %cst_16 = arith.constant dense<0.000000e+00> : vector<128x128xf32>
    %20 = tpu.matmul %17, %19, %cst_16 {dimension_numbers = #tpu.dot_dimension_numbers<[1], [0], [0], [1], [0, 0, 1, 1], [], []>} : vector<128x4xbf16>, vector<4x128xbf16>, vector<128x128xf32> -> vector<128x128xf32>
    %21 = arith.addf %15, %20 : vector<128x128xf32>
    %22 = vector.extract_strided_slice %8 {offsets = [0, 2, 0], sizes = [8, 16, 4], strides = [1, 1, 1]} : vector<10x18x4xbf16> to vector<8x16x4xbf16>
    %23 = vector.shape_cast %22 : vector<8x16x4xbf16> to vector<128x4xbf16>
    %c0_17 = arith.constant 0 : index
    %c2 = arith.constant 2 : index
    %c0_18 = arith.constant 0 : index
    %c0_19 = arith.constant 0 : index
    %24 = vector.load %arg4[%c0_17, %c2, %c0_18, %c0_19] : memref<3x3x4x128xbf16, #tpu.memory_space<vmem>>, vector<1x1x4x128xbf16>
    %25 = vector.shape_cast %24 : vector<1x1x4x128xbf16> to vector<4x128xbf16>
    %cst_20 = arith.constant dense<0.000000e+00> : vector<128x128xf32>
    %26 = tpu.matmul %23, %25, %cst_20 {dimension_numbers = #tpu.dot_dimension_numbers<[1], [0], [0], [1], [0, 0, 1, 1], [], []>} : vector<128x4xbf16>, vector<4x128xbf16>, vector<128x128xf32> -> vector<128x128xf32>
    %27 = arith.addf %21, %26 : vector<128x128xf32>
    %28 = vector.extract_strided_slice %8 {offsets = [1, 0, 0], sizes = [8, 16, 4], strides = [1, 1, 1]} : vector<10x18x4xbf16> to vector<8x16x4xbf16>
    %29 = vector.shape_cast %28 : vector<8x16x4xbf16> to vector<128x4xbf16>
    %c1_21 = arith.constant 1 : index
    %c0_22 = arith.constant 0 : index
    %c0_23 = arith.constant 0 : index
    %c0_24 = arith.constant 0 : index
    %30 = vector.load %arg4[%c1_21, %c0_22, %c0_23, %c0_24] : memref<3x3x4x128xbf16, #tpu.memory_space<vmem>>, vector<1x1x4x128xbf16>
    %31 = vector.shape_cast %30 : vector<1x1x4x128xbf16> to vector<4x128xbf16>
    %cst_25 = arith.constant dense<0.000000e+00> : vector<128x128xf32>
    %32 = tpu.matmul %29, %31, %cst_25 {dimension_numbers = #tpu.dot_dimension_numbers<[1], [0], [0], [1], [0, 0, 1, 1], [], []>} : vector<128x4xbf16>, vector<4x128xbf16>, vector<128x128xf32> -> vector<128x128xf32>
    %33 = arith.addf %27, %32 : vector<128x128xf32>
    %34 = vector.extract_strided_slice %8 {offsets = [1, 1, 0], sizes = [8, 16, 4], strides = [1, 1, 1]} : vector<10x18x4xbf16> to vector<8x16x4xbf16>
    %35 = vector.shape_cast %34 : vector<8x16x4xbf16> to vector<128x4xbf16>
    %c1_26 = arith.constant 1 : index
    %c1_27 = arith.constant 1 : index
    %c0_28 = arith.constant 0 : index
    %c0_29 = arith.constant 0 : index
    %36 = vector.load %arg4[%c1_26, %c1_27, %c0_28, %c0_29] : memref<3x3x4x128xbf16, #tpu.memory_space<vmem>>, vector<1x1x4x128xbf16>
    %37 = vector.shape_cast %36 : vector<1x1x4x128xbf16> to vector<4x128xbf16>
    %cst_30 = arith.constant dense<0.000000e+00> : vector<128x128xf32>
    %38 = tpu.matmul %35, %37, %cst_30 {dimension_numbers = #tpu.dot_dimension_numbers<[1], [0], [0], [1], [0, 0, 1, 1], [], []>} : vector<128x4xbf16>, vector<4x128xbf16>, vector<128x128xf32> -> vector<128x128xf32>
    %39 = arith.addf %33, %38 : vector<128x128xf32>
    %40 = vector.extract_strided_slice %8 {offsets = [1, 2, 0], sizes = [8, 16, 4], strides = [1, 1, 1]} : vector<10x18x4xbf16> to vector<8x16x4xbf16>
    %41 = vector.shape_cast %40 : vector<8x16x4xbf16> to vector<128x4xbf16>
    %c1_31 = arith.constant 1 : index
    %c2_32 = arith.constant 2 : index
    %c0_33 = arith.constant 0 : index
    %c0_34 = arith.constant 0 : index
    %42 = vector.load %arg4[%c1_31, %c2_32, %c0_33, %c0_34] : memref<3x3x4x128xbf16, #tpu.memory_space<vmem>>, vector<1x1x4x128xbf16>
    %43 = vector.shape_cast %42 : vector<1x1x4x128xbf16> to vector<4x128xbf16>
    %cst_35 = arith.constant dense<0.000000e+00> : vector<128x128xf32>
    %44 = tpu.matmul %41, %43, %cst_35 {dimension_numbers = #tpu.dot_dimension_numbers<[1], [0], [0], [1], [0, 0, 1, 1], [], []>} : vector<128x4xbf16>, vector<4x128xbf16>, vector<128x128xf32> -> vector<128x128xf32>
    %45 = arith.addf %39, %44 : vector<128x128xf32>
    %46 = vector.extract_strided_slice %8 {offsets = [2, 0, 0], sizes = [8, 16, 4], strides = [1, 1, 1]} : vector<10x18x4xbf16> to vector<8x16x4xbf16>
    %47 = vector.shape_cast %46 : vector<8x16x4xbf16> to vector<128x4xbf16>
    %c2_36 = arith.constant 2 : index
    %c0_37 = arith.constant 0 : index
    %c0_38 = arith.constant 0 : index
    %c0_39 = arith.constant 0 : index
    %48 = vector.load %arg4[%c2_36, %c0_37, %c0_38, %c0_39] : memref<3x3x4x128xbf16, #tpu.memory_space<vmem>>, vector<1x1x4x128xbf16>
    %49 = vector.shape_cast %48 : vector<1x1x4x128xbf16> to vector<4x128xbf16>
    %cst_40 = arith.constant dense<0.000000e+00> : vector<128x128xf32>
    %50 = tpu.matmul %47, %49, %cst_40 {dimension_numbers = #tpu.dot_dimension_numbers<[1], [0], [0], [1], [0, 0, 1, 1], [], []>} : vector<128x4xbf16>, vector<4x128xbf16>, vector<128x128xf32> -> vector<128x128xf32>
    %51 = arith.addf %45, %50 : vector<128x128xf32>
    %52 = vector.extract_strided_slice %8 {offsets = [2, 1, 0], sizes = [8, 16, 4], strides = [1, 1, 1]} : vector<10x18x4xbf16> to vector<8x16x4xbf16>
    %53 = vector.shape_cast %52 : vector<8x16x4xbf16> to vector<128x4xbf16>
    %c2_41 = arith.constant 2 : index
    %c1_42 = arith.constant 1 : index
    %c0_43 = arith.constant 0 : index
    %c0_44 = arith.constant 0 : index
    %54 = vector.load %arg4[%c2_41, %c1_42, %c0_43, %c0_44] : memref<3x3x4x128xbf16, #tpu.memory_space<vmem>>, vector<1x1x4x128xbf16>
    %55 = vector.shape_cast %54 : vector<1x1x4x128xbf16> to vector<4x128xbf16>
    %cst_45 = arith.constant dense<0.000000e+00> : vector<128x128xf32>
    %56 = tpu.matmul %53, %55, %cst_45 {dimension_numbers = #tpu.dot_dimension_numbers<[1], [0], [0], [1], [0, 0, 1, 1], [], []>} : vector<128x4xbf16>, vector<4x128xbf16>, vector<128x128xf32> -> vector<128x128xf32>
    %57 = arith.addf %51, %56 : vector<128x128xf32>
    %58 = vector.extract_strided_slice %8 {offsets = [2, 2, 0], sizes = [8, 16, 4], strides = [1, 1, 1]} : vector<10x18x4xbf16> to vector<8x16x4xbf16>
    %59 = vector.shape_cast %58 : vector<8x16x4xbf16> to vector<128x4xbf16>
    %c2_46 = arith.constant 2 : index
    %c2_47 = arith.constant 2 : index
    %c0_48 = arith.constant 0 : index
    %c0_49 = arith.constant 0 : index
    %60 = vector.load %arg4[%c2_46, %c2_47, %c0_48, %c0_49] : memref<3x3x4x128xbf16, #tpu.memory_space<vmem>>, vector<1x1x4x128xbf16>
    %61 = vector.shape_cast %60 : vector<1x1x4x128xbf16> to vector<4x128xbf16>
    %cst_50 = arith.constant dense<0.000000e+00> : vector<128x128xf32>
    %62 = tpu.matmul %59, %61, %cst_50 {dimension_numbers = #tpu.dot_dimension_numbers<[1], [0], [0], [1], [0, 0, 1, 1], [], []>} : vector<128x4xbf16>, vector<4x128xbf16>, vector<128x128xf32> -> vector<128x128xf32>
    %63 = arith.addf %57, %62 : vector<128x128xf32>
    %c0_51 = arith.constant 0 : index
    %c0_52 = arith.constant 0 : index
    %64 = vector.load %arg5[%c0_51, %c0_52] : memref<1x128xf32, #tpu.memory_space<vmem>>, vector<1x128xf32>
    %65 = vector.broadcast %64 : vector<1x128xf32> to vector<128x128xf32>
    %66 = arith.addf %63, %65 : vector<128x128xf32>
    %67 = vector.shape_cast %66 : vector<128x128xf32> to vector<8x16x128xf32>
    %c0_53 = arith.constant 0 : index
    %c0_54 = arith.constant 0 : index
    %c0_55 = arith.constant 0 : index
    %c0_56 = arith.constant 0 : index
    %68 = vector.load %arg6[%c0_53, %c0_54, %c0_55, %c0_56] : memref<1x8x16x128xf32, #tpu.memory_space<vmem>>, vector<1x8x16x128xf32>
    %69 = vector.shape_cast %68 : vector<1x8x16x128xf32> to vector<8x16x128xf32>
    %70 = vector.shape_cast %67 : vector<8x16x128xf32> to vector<1x8x16x128xf32>
    tpu.vector_store %arg6[%c0_53, %c0_54, %c0_55, %c0_56], %70 {strides = array<i32>} : memref<1x8x16x128xf32, #tpu.memory_space<vmem>>, vector<1x8x16x128xf32>,
    %c0_57 = arith.constant 0 : index
    %c0_58 = arith.constant 0 : index
    %c0_59 = arith.constant 0 : index
    %71 = vector.load %arg7[%c0_57, %c0_58, %c0_59] : memref<1x1x128xf32, #tpu.memory_space<vmem>>, vector<1x1x128xf32>
    %72 = vector.shape_cast %71 : vector<1x1x128xf32> to vector<1x128xf32>
    %cst_60 = arith.constant dense<0.000000e+00> : vector<128xf32>
    %73 = vector.multi_reduction <add>, %66, %cst_60 [0] : vector<128x128xf32> to vector<128xf32>
    %74 = vector.shape_cast %73 : vector<128xf32> to vector<1x128xf32>
    %75 = arith.addf %72, %74 : vector<1x128xf32>
    %c0_61 = arith.constant 0 : index
    %c0_62 = arith.constant 0 : index
    %c0_63 = arith.constant 0 : index
    %76 = vector.load %arg7[%c0_61, %c0_62, %c0_63] : memref<1x1x128xf32, #tpu.memory_space<vmem>>, vector<1x1x128xf32>
    %77 = vector.shape_cast %76 : vector<1x1x128xf32> to vector<1x128xf32>
    %78 = vector.shape_cast %75 : vector<1x128xf32> to vector<1x1x128xf32>
    tpu.vector_store %arg7[%c0_61, %c0_62, %c0_63], %78 {strides = array<i32>} : memref<1x1x128xf32, #tpu.memory_space<vmem>>, vector<1x1x128xf32>,
    %c0_64 = arith.constant 0 : index
    %c0_65 = arith.constant 0 : index
    %c0_66 = arith.constant 0 : index
    %79 = vector.load %arg8[%c0_64, %c0_65, %c0_66] : memref<1x1x128xf32, #tpu.memory_space<vmem>>, vector<1x1x128xf32>
    %80 = vector.shape_cast %79 : vector<1x1x128xf32> to vector<1x128xf32>
    %81 = arith.mulf %66, %66 : vector<128x128xf32>
    %cst_67 = arith.constant dense<0.000000e+00> : vector<128xf32>
    %82 = vector.multi_reduction <add>, %81, %cst_67 [0] : vector<128x128xf32> to vector<128xf32>
    %83 = vector.shape_cast %82 : vector<128xf32> to vector<1x128xf32>
    %84 = arith.addf %80, %83 : vector<1x128xf32>
    %c0_68 = arith.constant 0 : index
    %c0_69 = arith.constant 0 : index
    %c0_70 = arith.constant 0 : index
    %85 = vector.load %arg8[%c0_68, %c0_69, %c0_70] : memref<1x1x128xf32, #tpu.memory_space<vmem>>, vector<1x1x128xf32>
    %86 = vector.shape_cast %85 : vector<1x1x128xf32> to vector<1x128xf32>
    %87 = vector.shape_cast %84 : vector<1x128xf32> to vector<1x1x128xf32>
    tpu.vector_store %arg8[%c0_68, %c0_69, %c0_70], %87 {strides = array<i32>} : memref<1x1x128xf32, #tpu.memory_space<vmem>>, vector<1x1x128xf32>,
    return
  }
  func.func @transform_0(%arg0: i32, %arg1: i32) -> (i32, i32, i32, i32) {
    %c0_i32 = arith.constant 0 : i32
    %c0_i32_0 = arith.constant 0 : i32
    %c0_i32_1 = arith.constant 0 : i32
    return %arg0, %arg1, %c0_i32, %c0_i32_0 : i32, i32, i32, i32
  }
  func.func @transform_1(%arg0: i32, %arg1: i32) -> (i32, i32, i32, i32) {
    %c1_i32 = arith.constant 1 : i32
    %0 = arith.addi %arg1, %c1_i32 : i32
    %c0_i32 = arith.constant 0 : i32
    %c0_i32_0 = arith.constant 0 : i32
    %c0_i32_1 = arith.constant 0 : i32
    return %arg0, %0, %c0_i32, %c0_i32_0 : i32, i32, i32, i32
  }
  func.func @transform_2(%arg0: i32, %arg1: i32) -> (i32, i32, i32, i32) {
    %c0_i32 = arith.constant 0 : i32
    %c0_i32_0 = arith.constant 0 : i32
    %c0_i32_1 = arith.constant 0 : i32
    %c0_i32_2 = arith.constant 0 : i32
    %c0_i32_3 = arith.constant 0 : i32
    return %c0_i32, %c0_i32_0, %c0_i32_1, %c0_i32_2 : i32, i32, i32, i32
  }
  func.func @transform_3(%arg0: i32, %arg1: i32) -> (i32, i32) {
    %c0_i32 = arith.constant 0 : i32
    %c0_i32_0 = arith.constant 0 : i32
    %c0_i32_1 = arith.constant 0 : i32
    return %c0_i32, %c0_i32_0 : i32, i32
  }
  func.func @transform_4(%arg0: i32, %arg1: i32) -> (i32, i32, i32, i32) {
    %c0_i32 = arith.constant 0 : i32
    %c0_i32_0 = arith.constant 0 : i32
    %c0_i32_1 = arith.constant 0 : i32
    return %arg0, %arg1, %c0_i32, %c0_i32_0 : i32, i32, i32, i32
  }
  func.func @transform_5(%arg0: i32, %arg1: i32) -> (i32, i32, i32) {
    %c0_i32 = arith.constant 0 : i32
    %c0_i32_0 = arith.constant 0 : i32
    %c0_i32_1 = arith.constant 0 : i32
    return %arg0, %c0_i32, %c0_i32_0 : i32, i32, i32
  }
  func.func @transform_6(%arg0: i32, %arg1: i32) -> (i32, i32, i32) {
    %c0_i32 = arith.constant 0 : i32
    %c0_i32_0 = arith.constant 0 : i32
    %c0_i32_1 = arith.constant 0 : i32
    return %arg0, %c0_i32, %c0_i32_0 : i32, i32, i32
  }
}

module attributes {stable_mosaic.version = 11 : i64} {
  func.func @_conv_stats_kernel(%arg0: i32, %arg1: i32, %arg2: memref<1x8x18x128xbf16, #tpu.memory_space<vmem>>, %arg3: memref<1x8x18x128xbf16, #tpu.memory_space<vmem>>, %arg4: memref<3x3x128x128xbf16, #tpu.memory_space<vmem>>, %arg5: memref<1x128xf32, #tpu.memory_space<vmem>>, %arg6: memref<1x8x16x128xf32, #tpu.memory_space<vmem>>, %arg7: memref<1x1x128xf32, #tpu.memory_space<vmem>>, %arg8: memref<1x1x128xf32, #tpu.memory_space<vmem>>) attributes {dimension_semantics = [#tpu.dimension_semantics<parallel>, #tpu.dimension_semantics<arbitrary>], iteration_bounds = array<i64: 2, 2>, scalar_prefetch = 0 : i64, scratch_operands = 0 : i64, tpu.core_type = #tpu.core_type<tc>, window_params = [{transform_indices = @transform_0, window_bounds = array<i64: 1, 8, 18, 128>}, {transform_indices = @transform_1, window_bounds = array<i64: 1, 8, 18, 128>}, {pipeline_mode = #tpu.pipeline_mode<synchronous>, transform_indices = @transform_2, window_bounds = array<i64: 3, 3, 128, 128>}, {pipeline_mode = #tpu.pipeline_mode<synchronous>, transform_indices = @transform_3, window_bounds = array<i64: 1, 128>}, {transform_indices = @transform_4, window_bounds = array<i64: 1, 8, 16, 128>}, {transform_indices = @transform_5, window_bounds = array<i64: 1, 1, 128>}, {transform_indices = @transform_6, window_bounds = array<i64: 1, 1, 128>}]} {
    %c0_i32 = arith.constant 0 : i32
    %0 = arith.cmpi eq, %arg1, %c0_i32 : i32
    %1 = arith.extui %0 : i1 to i32
    %c0_i32_0 = arith.constant 0 : i32
    %2 = arith.cmpi ne, %1, %c0_i32_0 : i32
    scf.if %2 {
      %cst_71 = arith.constant 0.000000e+00 : f32
      %88 = vector.broadcast %cst_71 : f32 to vector<1x1x128xf32>
      %c0_72 = arith.constant 0 : index
      %c0_73 = arith.constant 0 : index
      %c0_74 = arith.constant 0 : index
      %89 = vector.load %arg7[%c0_72, %c0_73, %c0_74] : memref<1x1x128xf32, #tpu.memory_space<vmem>>, vector<1x1x128xf32>
      tpu.vector_store %arg7[%c0_72, %c0_73, %c0_74], %88 {strides = array<i32>} : memref<1x1x128xf32, #tpu.memory_space<vmem>>, vector<1x1x128xf32>,
      %cst_75 = arith.constant 0.000000e+00 : f32
      %90 = vector.broadcast %cst_75 : f32 to vector<1x1x128xf32>
      %c0_76 = arith.constant 0 : index
      %c0_77 = arith.constant 0 : index
      %c0_78 = arith.constant 0 : index
      %91 = vector.load %arg8[%c0_76, %c0_77, %c0_78] : memref<1x1x128xf32, #tpu.memory_space<vmem>>, vector<1x1x128xf32>
      tpu.vector_store %arg8[%c0_76, %c0_77, %c0_78], %90 {strides = array<i32>} : memref<1x1x128xf32, #tpu.memory_space<vmem>>, vector<1x1x128xf32>,
    } else {
    }
    %c0 = arith.constant 0 : index
    %c0_1 = arith.constant 0 : index
    %c0_2 = arith.constant 0 : index
    %c0_3 = arith.constant 0 : index
    %3 = vector.load %arg2[%c0, %c0_1, %c0_2, %c0_3] : memref<1x8x18x128xbf16, #tpu.memory_space<vmem>>, vector<1x8x18x128xbf16>
    %4 = vector.shape_cast %3 : vector<1x8x18x128xbf16> to vector<8x18x128xbf16>
    %c0_4 = arith.constant 0 : index
    %c0_5 = arith.constant 0 : index
    %c0_6 = arith.constant 0 : index
    %c0_7 = arith.constant 0 : index
    %5 = vector.load %arg3[%c0_4, %c0_5, %c0_6, %c0_7] : memref<1x8x18x128xbf16, #tpu.memory_space<vmem>>, vector<1x8x18x128xbf16>
    %6 = vector.shape_cast %5 : vector<1x8x18x128xbf16> to vector<8x18x128xbf16>
    %7 = vector.extract_strided_slice %6 {offsets = [0, 0, 0], sizes = [2, 18, 128], strides = [1, 1, 1]} : vector<8x18x128xbf16> to vector<2x18x128xbf16>
    %8 = tpu.concatenate %4, %7 in 0 : vector<8x18x128xbf16>, vector<2x18x128xbf16> -> vector<10x18x128xbf16>
    %cst = arith.constant 0.000000e+00 : f32
    %9 = vector.broadcast %cst : f32 to vector<128x128xf32>
    %10 = vector.extract_strided_slice %8 {offsets = [0, 0, 0], sizes = [8, 16, 128], strides = [1, 1, 1]} : vector<10x18x128xbf16> to vector<8x16x128xbf16>
    %11 = vector.shape_cast %10 : vector<8x16x128xbf16> to vector<128x128xbf16>
    %c0_8 = arith.constant 0 : index
    %c0_9 = arith.constant 0 : index
    %c0_10 = arith.constant 0 : index
    %c0_11 = arith.constant 0 : index
    %12 = vector.load %arg4[%c0_8, %c0_9, %c0_10, %c0_11] : memref<3x3x128x128xbf16, #tpu.memory_space<vmem>>, vector<1x1x128x128xbf16>
    %13 = vector.shape_cast %12 : vector<1x1x128x128xbf16> to vector<128x128xbf16>
    %cst_12 = arith.constant dense<0.000000e+00> : vector<128x128xf32>
    %14 = tpu.matmul %11, %13, %cst_12 {dimension_numbers = #tpu.dot_dimension_numbers<[1], [0], [0], [1], [0, 0, 1, 1], [], []>} : vector<128x128xbf16>, vector<128x128xbf16>, vector<128x128xf32> -> vector<128x128xf32>
    %15 = arith.addf %9, %14 : vector<128x128xf32>
    %16 = vector.extract_strided_slice %8 {offsets = [0, 1, 0], sizes = [8, 16, 128], strides = [1, 1, 1]} : vector<10x18x128xbf16> to vector<8x16x128xbf16>
    %17 = vector.shape_cast %16 : vector<8x16x128xbf16> to vector<128x128xbf16>
    %c0_13 = arith.constant 0 : index
    %c1 = arith.constant 1 : index
    %c0_14 = arith.constant 0 : index
    %c0_15 = arith.constant 0 : index
    %18 = vector.load %arg4[%c0_13, %c1, %c0_14, %c0_15] : memref<3x3x128x128xbf16, #tpu.memory_space<vmem>>, vector<1x1x128x128xbf16>
    %19 = vector.shape_cast %18 : vector<1x1x128x128xbf16> to vector<128x128xbf16>
    %cst_16 = arith.constant dense<0.000000e+00> : vector<128x128xf32>
    %20 = tpu.matmul %17, %19, %cst_16 {dimension_numbers = #tpu.dot_dimension_numbers<[1], [0], [0], [1], [0, 0, 1, 1], [], []>} : vector<128x128xbf16>, vector<128x128xbf16>, vector<128x128xf32> -> vector<128x128xf32>
    %21 = arith.addf %15, %20 : vector<128x128xf32>
    %22 = vector.extract_strided_slice %8 {offsets = [0, 2, 0], sizes = [8, 16, 128], strides = [1, 1, 1]} : vector<10x18x128xbf16> to vector<8x16x128xbf16>
    %23 = vector.shape_cast %22 : vector<8x16x128xbf16> to vector<128x128xbf16>
    %c0_17 = arith.constant 0 : index
    %c2 = arith.constant 2 : index
    %c0_18 = arith.constant 0 : index
    %c0_19 = arith.constant 0 : index
    %24 = vector.load %arg4[%c0_17, %c2, %c0_18, %c0_19] : memref<3x3x128x128xbf16, #tpu.memory_space<vmem>>, vector<1x1x128x128xbf16>
    %25 = vector.shape_cast %24 : vector<1x1x128x128xbf16> to vector<128x128xbf16>
    %cst_20 = arith.constant dense<0.000000e+00> : vector<128x128xf32>
    %26 = tpu.matmul %23, %25, %cst_20 {dimension_numbers = #tpu.dot_dimension_numbers<[1], [0], [0], [1], [0, 0, 1, 1], [], []>} : vector<128x128xbf16>, vector<128x128xbf16>, vector<128x128xf32> -> vector<128x128xf32>
    %27 = arith.addf %21, %26 : vector<128x128xf32>
    %28 = vector.extract_strided_slice %8 {offsets = [1, 0, 0], sizes = [8, 16, 128], strides = [1, 1, 1]} : vector<10x18x128xbf16> to vector<8x16x128xbf16>
    %29 = vector.shape_cast %28 : vector<8x16x128xbf16> to vector<128x128xbf16>
    %c1_21 = arith.constant 1 : index
    %c0_22 = arith.constant 0 : index
    %c0_23 = arith.constant 0 : index
    %c0_24 = arith.constant 0 : index
    %30 = vector.load %arg4[%c1_21, %c0_22, %c0_23, %c0_24] : memref<3x3x128x128xbf16, #tpu.memory_space<vmem>>, vector<1x1x128x128xbf16>
    %31 = vector.shape_cast %30 : vector<1x1x128x128xbf16> to vector<128x128xbf16>
    %cst_25 = arith.constant dense<0.000000e+00> : vector<128x128xf32>
    %32 = tpu.matmul %29, %31, %cst_25 {dimension_numbers = #tpu.dot_dimension_numbers<[1], [0], [0], [1], [0, 0, 1, 1], [], []>} : vector<128x128xbf16>, vector<128x128xbf16>, vector<128x128xf32> -> vector<128x128xf32>
    %33 = arith.addf %27, %32 : vector<128x128xf32>
    %34 = vector.extract_strided_slice %8 {offsets = [1, 1, 0], sizes = [8, 16, 128], strides = [1, 1, 1]} : vector<10x18x128xbf16> to vector<8x16x128xbf16>
    %35 = vector.shape_cast %34 : vector<8x16x128xbf16> to vector<128x128xbf16>
    %c1_26 = arith.constant 1 : index
    %c1_27 = arith.constant 1 : index
    %c0_28 = arith.constant 0 : index
    %c0_29 = arith.constant 0 : index
    %36 = vector.load %arg4[%c1_26, %c1_27, %c0_28, %c0_29] : memref<3x3x128x128xbf16, #tpu.memory_space<vmem>>, vector<1x1x128x128xbf16>
    %37 = vector.shape_cast %36 : vector<1x1x128x128xbf16> to vector<128x128xbf16>
    %cst_30 = arith.constant dense<0.000000e+00> : vector<128x128xf32>
    %38 = tpu.matmul %35, %37, %cst_30 {dimension_numbers = #tpu.dot_dimension_numbers<[1], [0], [0], [1], [0, 0, 1, 1], [], []>} : vector<128x128xbf16>, vector<128x128xbf16>, vector<128x128xf32> -> vector<128x128xf32>
    %39 = arith.addf %33, %38 : vector<128x128xf32>
    %40 = vector.extract_strided_slice %8 {offsets = [1, 2, 0], sizes = [8, 16, 128], strides = [1, 1, 1]} : vector<10x18x128xbf16> to vector<8x16x128xbf16>
    %41 = vector.shape_cast %40 : vector<8x16x128xbf16> to vector<128x128xbf16>
    %c1_31 = arith.constant 1 : index
    %c2_32 = arith.constant 2 : index
    %c0_33 = arith.constant 0 : index
    %c0_34 = arith.constant 0 : index
    %42 = vector.load %arg4[%c1_31, %c2_32, %c0_33, %c0_34] : memref<3x3x128x128xbf16, #tpu.memory_space<vmem>>, vector<1x1x128x128xbf16>
    %43 = vector.shape_cast %42 : vector<1x1x128x128xbf16> to vector<128x128xbf16>
    %cst_35 = arith.constant dense<0.000000e+00> : vector<128x128xf32>
    %44 = tpu.matmul %41, %43, %cst_35 {dimension_numbers = #tpu.dot_dimension_numbers<[1], [0], [0], [1], [0, 0, 1, 1], [], []>} : vector<128x128xbf16>, vector<128x128xbf16>, vector<128x128xf32> -> vector<128x128xf32>
    %45 = arith.addf %39, %44 : vector<128x128xf32>
    %46 = vector.extract_strided_slice %8 {offsets = [2, 0, 0], sizes = [8, 16, 128], strides = [1, 1, 1]} : vector<10x18x128xbf16> to vector<8x16x128xbf16>
    %47 = vector.shape_cast %46 : vector<8x16x128xbf16> to vector<128x128xbf16>
    %c2_36 = arith.constant 2 : index
    %c0_37 = arith.constant 0 : index
    %c0_38 = arith.constant 0 : index
    %c0_39 = arith.constant 0 : index
    %48 = vector.load %arg4[%c2_36, %c0_37, %c0_38, %c0_39] : memref<3x3x128x128xbf16, #tpu.memory_space<vmem>>, vector<1x1x128x128xbf16>
    %49 = vector.shape_cast %48 : vector<1x1x128x128xbf16> to vector<128x128xbf16>
    %cst_40 = arith.constant dense<0.000000e+00> : vector<128x128xf32>
    %50 = tpu.matmul %47, %49, %cst_40 {dimension_numbers = #tpu.dot_dimension_numbers<[1], [0], [0], [1], [0, 0, 1, 1], [], []>} : vector<128x128xbf16>, vector<128x128xbf16>, vector<128x128xf32> -> vector<128x128xf32>
    %51 = arith.addf %45, %50 : vector<128x128xf32>
    %52 = vector.extract_strided_slice %8 {offsets = [2, 1, 0], sizes = [8, 16, 128], strides = [1, 1, 1]} : vector<10x18x128xbf16> to vector<8x16x128xbf16>
    %53 = vector.shape_cast %52 : vector<8x16x128xbf16> to vector<128x128xbf16>
    %c2_41 = arith.constant 2 : index
    %c1_42 = arith.constant 1 : index
    %c0_43 = arith.constant 0 : index
    %c0_44 = arith.constant 0 : index
    %54 = vector.load %arg4[%c2_41, %c1_42, %c0_43, %c0_44] : memref<3x3x128x128xbf16, #tpu.memory_space<vmem>>, vector<1x1x128x128xbf16>
    %55 = vector.shape_cast %54 : vector<1x1x128x128xbf16> to vector<128x128xbf16>
    %cst_45 = arith.constant dense<0.000000e+00> : vector<128x128xf32>
    %56 = tpu.matmul %53, %55, %cst_45 {dimension_numbers = #tpu.dot_dimension_numbers<[1], [0], [0], [1], [0, 0, 1, 1], [], []>} : vector<128x128xbf16>, vector<128x128xbf16>, vector<128x128xf32> -> vector<128x128xf32>
    %57 = arith.addf %51, %56 : vector<128x128xf32>
    %58 = vector.extract_strided_slice %8 {offsets = [2, 2, 0], sizes = [8, 16, 128], strides = [1, 1, 1]} : vector<10x18x128xbf16> to vector<8x16x128xbf16>
    %59 = vector.shape_cast %58 : vector<8x16x128xbf16> to vector<128x128xbf16>
    %c2_46 = arith.constant 2 : index
    %c2_47 = arith.constant 2 : index
    %c0_48 = arith.constant 0 : index
    %c0_49 = arith.constant 0 : index
    %60 = vector.load %arg4[%c2_46, %c2_47, %c0_48, %c0_49] : memref<3x3x128x128xbf16, #tpu.memory_space<vmem>>, vector<1x1x128x128xbf16>
    %61 = vector.shape_cast %60 : vector<1x1x128x128xbf16> to vector<128x128xbf16>
    %cst_50 = arith.constant dense<0.000000e+00> : vector<128x128xf32>
    %62 = tpu.matmul %59, %61, %cst_50 {dimension_numbers = #tpu.dot_dimension_numbers<[1], [0], [0], [1], [0, 0, 1, 1], [], []>} : vector<128x128xbf16>, vector<128x128xbf16>, vector<128x128xf32> -> vector<128x128xf32>
    %63 = arith.addf %57, %62 : vector<128x128xf32>
    %c0_51 = arith.constant 0 : index
    %c0_52 = arith.constant 0 : index
    %64 = vector.load %arg5[%c0_51, %c0_52] : memref<1x128xf32, #tpu.memory_space<vmem>>, vector<1x128xf32>
    %65 = vector.broadcast %64 : vector<1x128xf32> to vector<128x128xf32>
    %66 = arith.addf %63, %65 : vector<128x128xf32>
    %67 = vector.shape_cast %66 : vector<128x128xf32> to vector<8x16x128xf32>
    %c0_53 = arith.constant 0 : index
    %c0_54 = arith.constant 0 : index
    %c0_55 = arith.constant 0 : index
    %c0_56 = arith.constant 0 : index
    %68 = vector.load %arg6[%c0_53, %c0_54, %c0_55, %c0_56] : memref<1x8x16x128xf32, #tpu.memory_space<vmem>>, vector<1x8x16x128xf32>
    %69 = vector.shape_cast %68 : vector<1x8x16x128xf32> to vector<8x16x128xf32>
    %70 = vector.shape_cast %67 : vector<8x16x128xf32> to vector<1x8x16x128xf32>
    tpu.vector_store %arg6[%c0_53, %c0_54, %c0_55, %c0_56], %70 {strides = array<i32>} : memref<1x8x16x128xf32, #tpu.memory_space<vmem>>, vector<1x8x16x128xf32>,
    %c0_57 = arith.constant 0 : index
    %c0_58 = arith.constant 0 : index
    %c0_59 = arith.constant 0 : index
    %71 = vector.load %arg7[%c0_57, %c0_58, %c0_59] : memref<1x1x128xf32, #tpu.memory_space<vmem>>, vector<1x1x128xf32>
    %72 = vector.shape_cast %71 : vector<1x1x128xf32> to vector<1x128xf32>
    %cst_60 = arith.constant dense<0.000000e+00> : vector<128xf32>
    %73 = vector.multi_reduction <add>, %66, %cst_60 [0] : vector<128x128xf32> to vector<128xf32>
    %74 = vector.shape_cast %73 : vector<128xf32> to vector<1x128xf32>
    %75 = arith.addf %72, %74 : vector<1x128xf32>
    %c0_61 = arith.constant 0 : index
    %c0_62 = arith.constant 0 : index
    %c0_63 = arith.constant 0 : index
    %76 = vector.load %arg7[%c0_61, %c0_62, %c0_63] : memref<1x1x128xf32, #tpu.memory_space<vmem>>, vector<1x1x128xf32>
    %77 = vector.shape_cast %76 : vector<1x1x128xf32> to vector<1x128xf32>
    %78 = vector.shape_cast %75 : vector<1x128xf32> to vector<1x1x128xf32>
    tpu.vector_store %arg7[%c0_61, %c0_62, %c0_63], %78 {strides = array<i32>} : memref<1x1x128xf32, #tpu.memory_space<vmem>>, vector<1x1x128xf32>,
    %c0_64 = arith.constant 0 : index
    %c0_65 = arith.constant 0 : index
    %c0_66 = arith.constant 0 : index
    %79 = vector.load %arg8[%c0_64, %c0_65, %c0_66] : memref<1x1x128xf32, #tpu.memory_space<vmem>>, vector<1x1x128xf32>
    %80 = vector.shape_cast %79 : vector<1x1x128xf32> to vector<1x128xf32>
    %81 = arith.mulf %66, %66 : vector<128x128xf32>
    %cst_67 = arith.constant dense<0.000000e+00> : vector<128xf32>
    %82 = vector.multi_reduction <add>, %81, %cst_67 [0] : vector<128x128xf32> to vector<128xf32>
    %83 = vector.shape_cast %82 : vector<128xf32> to vector<1x128xf32>
    %84 = arith.addf %80, %83 : vector<1x128xf32>
    %c0_68 = arith.constant 0 : index
    %c0_69 = arith.constant 0 : index
    %c0_70 = arith.constant 0 : index
    %85 = vector.load %arg8[%c0_68, %c0_69, %c0_70] : memref<1x1x128xf32, #tpu.memory_space<vmem>>, vector<1x1x128xf32>
    %86 = vector.shape_cast %85 : vector<1x1x128xf32> to vector<1x128xf32>
    %87 = vector.shape_cast %84 : vector<1x128xf32> to vector<1x1x128xf32>
    tpu.vector_store %arg8[%c0_68, %c0_69, %c0_70], %87 {strides = array<i32>} : memref<1x1x128xf32, #tpu.memory_space<vmem>>, vector<1x1x128xf32>,
    return
  }
  func.func @transform_0(%arg0: i32, %arg1: i32) -> (i32, i32, i32, i32) {
    %c0_i32 = arith.constant 0 : i32
    %c0_i32_0 = arith.constant 0 : i32
    %c0_i32_1 = arith.constant 0 : i32
    return %arg0, %arg1, %c0_i32, %c0_i32_0 : i32, i32, i32, i32
  }
  func.func @transform_1(%arg0: i32, %arg1: i32) -> (i32, i32, i32, i32) {
    %c1_i32 = arith.constant 1 : i32
    %0 = arith.addi %arg1, %c1_i32 : i32
    %c0_i32 = arith.constant 0 : i32
    %c0_i32_0 = arith.constant 0 : i32
    %c0_i32_1 = arith.constant 0 : i32
    return %arg0, %0, %c0_i32, %c0_i32_0 : i32, i32, i32, i32
  }
  func.func @transform_2(%arg0: i32, %arg1: i32) -> (i32, i32, i32, i32) {
    %c0_i32 = arith.constant 0 : i32
    %c0_i32_0 = arith.constant 0 : i32
    %c0_i32_1 = arith.constant 0 : i32
    %c0_i32_2 = arith.constant 0 : i32
    %c0_i32_3 = arith.constant 0 : i32
    return %c0_i32, %c0_i32_0, %c0_i32_1, %c0_i32_2 : i32, i32, i32, i32
  }
  func.func @transform_3(%arg0: i32, %arg1: i32) -> (i32, i32) {
    %c0_i32 = arith.constant 0 : i32
    %c0_i32_0 = arith.constant 0 : i32
    %c0_i32_1 = arith.constant 0 : i32
    return %c0_i32, %c0_i32_0 : i32, i32
  }
  func.func @transform_4(%arg0: i32, %arg1: i32) -> (i32, i32, i32, i32) {
    %c0_i32 = arith.constant 0 : i32
    %c0_i32_0 = arith.constant 0 : i32
    %c0_i32_1 = arith.constant 0 : i32
    return %arg0, %arg1, %c0_i32, %c0_i32_0 : i32, i32, i32, i32
  }
  func.func @transform_5(%arg0: i32, %arg1: i32) -> (i32, i32, i32) {
    %c0_i32 = arith.constant 0 : i32
    %c0_i32_0 = arith.constant 0 : i32
    %c0_i32_1 = arith.constant 0 : i32
    return %arg0, %c0_i32, %c0_i32_0 : i32, i32, i32
  }
  func.func @transform_6(%arg0: i32, %arg1: i32) -> (i32, i32, i32) {
    %c0_i32 = arith.constant 0 : i32
    %c0_i32_0 = arith.constant 0 : i32
    %c0_i32_1 = arith.constant 0 : i32
    return %arg0, %c0_i32, %c0_i32_0 : i32, i32, i32
  }
}

module attributes {stable_mosaic.version = 11 : i64} {
  func.func @_bn_relu_pool_kernel(%arg0: i32, %arg1: i32, %arg2: memref<1x8x16x128xf32, #tpu.memory_space<vmem>>, %arg3: memref<4x128xf32, #tpu.memory_space<vmem>>, %arg4: memref<1x8x16x128xf32, #tpu.memory_space<vmem>>, %arg5: memref<1x4x8x128xf32, #tpu.memory_space<vmem>>) attributes {dimension_semantics = [#tpu.dimension_semantics<parallel>, #tpu.dimension_semantics<parallel>], iteration_bounds = array<i64: 2, 2>, scalar_prefetch = 0 : i64, scratch_operands = 0 : i64, tpu.core_type = #tpu.core_type<tc>, window_params = [{transform_indices = @transform_0, window_bounds = array<i64: 1, 8, 16, 128>}, {pipeline_mode = #tpu.pipeline_mode<synchronous>, transform_indices = @transform_1, window_bounds = array<i64: 4, 128>}, {transform_indices = @transform_2, window_bounds = array<i64: 1, 8, 16, 128>}, {transform_indices = @transform_3, window_bounds = array<i64: 1, 4, 8, 128>}]} {
    %c0 = arith.constant 0 : index
    %c0_0 = arith.constant 0 : index
    %0 = vector.load %arg3[%c0, %c0_0] : memref<4x128xf32, #tpu.memory_space<vmem>>, vector<1x128xf32>
    %cst = arith.constant 0.001953125 : f32
    %1 = vector.broadcast %cst : f32 to vector<1x128xf32>
    %2 = arith.mulf %0, %1 : vector<1x128xf32>
    %c1 = arith.constant 1 : index
    %c0_1 = arith.constant 0 : index
    %3 = vector.load %arg3[%c1, %c0_1] : memref<4x128xf32, #tpu.memory_space<vmem>>, vector<1x128xf32>
    %cst_2 = arith.constant 0.001953125 : f32
    %4 = vector.broadcast %cst_2 : f32 to vector<1x128xf32>
    %5 = arith.mulf %3, %4 : vector<1x128xf32>
    %6 = arith.mulf %2, %2 : vector<1x128xf32>
    %7 = arith.subf %5, %6 : vector<1x128xf32>
    %c2 = arith.constant 2 : index
    %c0_3 = arith.constant 0 : index
    %8 = vector.load %arg3[%c2, %c0_3] : memref<4x128xf32, #tpu.memory_space<vmem>>, vector<1x128xf32>
    %cst_4 = arith.constant 9.99999974E-6 : f32
    %9 = vector.broadcast %cst_4 : f32 to vector<1x128xf32>
    %10 = arith.addf %7, %9 : vector<1x128xf32>
    %11 = math.rsqrt %10 : vector<1x128xf32>
    %12 = arith.mulf %8, %11 : vector<1x128xf32>
    %c3 = arith.constant 3 : index
    %c0_5 = arith.constant 0 : index
    %13 = vector.load %arg3[%c3, %c0_5] : memref<4x128xf32, #tpu.memory_space<vmem>>, vector<1x128xf32>
    %14 = arith.mulf %2, %12 : vector<1x128xf32>
    %15 = arith.subf %13, %14 : vector<1x128xf32>
    %c0_6 = arith.constant 0 : index
    %c0_7 = arith.constant 0 : index
    %c0_8 = arith.constant 0 : index
    %c0_9 = arith.constant 0 : index
    %16 = vector.load %arg2[%c0_6, %c0_7, %c0_8, %c0_9] : memref<1x8x16x128xf32, #tpu.memory_space<vmem>>, vector<1x8x16x128xf32>
    %17 = vector.shape_cast %16 : vector<1x8x16x128xf32> to vector<8x16x128xf32>
    %18 = vector.shape_cast %12 : vector<1x128xf32> to vector<128xf32>
    %19 = vector.shape_cast %18 : vector<128xf32> to vector<1x1x128xf32>
    %20 = vector.broadcast %19 : vector<1x1x128xf32> to vector<8x16x128xf32>
    %21 = arith.mulf %17, %20 : vector<8x16x128xf32>
    %22 = vector.shape_cast %15 : vector<1x128xf32> to vector<128xf32>
    %23 = vector.shape_cast %22 : vector<128xf32> to vector<1x1x128xf32>
    %24 = vector.broadcast %23 : vector<1x1x128xf32> to vector<8x16x128xf32>
    %25 = arith.addf %21, %24 : vector<8x16x128xf32>
    %cst_10 = arith.constant 0.000000e+00 : f32
    %26 = vector.broadcast %cst_10 : f32 to vector<8x16x128xf32>
    %27 = arith.maximumf %25, %26 : vector<8x16x128xf32>
    %c0_11 = arith.constant 0 : index
    %c0_12 = arith.constant 0 : index
    %c0_13 = arith.constant 0 : index
    %c0_14 = arith.constant 0 : index
    %28 = vector.load %arg4[%c0_11, %c0_12, %c0_13, %c0_14] : memref<1x8x16x128xf32, #tpu.memory_space<vmem>>, vector<1x8x16x128xf32>
    %29 = vector.shape_cast %28 : vector<1x8x16x128xf32> to vector<8x16x128xf32>
    %30 = vector.shape_cast %27 : vector<8x16x128xf32> to vector<1x8x16x128xf32>
    tpu.vector_store %arg4[%c0_11, %c0_12, %c0_13, %c0_14], %30 {strides = array<i32>} : memref<1x8x16x128xf32, #tpu.memory_space<vmem>>, vector<1x8x16x128xf32>,
    %31 = vector.extract_strided_slice %27 {offsets = [0, 0, 0], sizes = [1, 16, 128], strides = [1, 1, 1]} : vector<8x16x128xf32> to vector<1x16x128xf32>
    %32 = vector.shape_cast %31 : vector<1x16x128xf32> to vector<16x128xf32>
    %33 = vector.extract_strided_slice %27 {offsets = [1, 0, 0], sizes = [1, 16, 128], strides = [1, 1, 1]} : vector<8x16x128xf32> to vector<1x16x128xf32>
    %34 = vector.shape_cast %33 : vector<1x16x128xf32> to vector<16x128xf32>
    %35 = arith.maximumf %32, %34 : vector<16x128xf32>
    %36 = vector.extract_strided_slice %35 {offsets = [0, 0], sizes = [1, 128], strides = [1, 1]} : vector<16x128xf32> to vector<1x128xf32>
    %37 = vector.shape_cast %36 : vector<1x128xf32> to vector<128xf32>
    %38 = vector.extract_strided_slice %35 {offsets = [1, 0], sizes = [1, 128], strides = [1, 1]} : vector<16x128xf32> to vector<1x128xf32>
    %39 = vector.shape_cast %38 : vector<1x128xf32> to vector<128xf32>
    %40 = arith.maximumf %37, %39 : vector<128xf32>
    %41 = vector.extract_strided_slice %35 {offsets = [2, 0], sizes = [1, 128], strides = [1, 1]} : vector<16x128xf32> to vector<1x128xf32>
    %42 = vector.shape_cast %41 : vector<1x128xf32> to vector<128xf32>
    %43 = vector.extract_strided_slice %35 {offsets = [3, 0], sizes = [1, 128], strides = [1, 1]} : vector<16x128xf32> to vector<1x128xf32>
    %44 = vector.shape_cast %43 : vector<1x128xf32> to vector<128xf32>
    %45 = arith.maximumf %42, %44 : vector<128xf32>
    %46 = vector.extract_strided_slice %35 {offsets = [4, 0], sizes = [1, 128], strides = [1, 1]} : vector<16x128xf32> to vector<1x128xf32>
    %47 = vector.shape_cast %46 : vector<1x128xf32> to vector<128xf32>
    %48 = vector.extract_strided_slice %35 {offsets = [5, 0], sizes = [1, 128], strides = [1, 1]} : vector<16x128xf32> to vector<1x128xf32>
    %49 = vector.shape_cast %48 : vector<1x128xf32> to vector<128xf32>
    %50 = arith.maximumf %47, %49 : vector<128xf32>
    %51 = vector.extract_strided_slice %35 {offsets = [6, 0], sizes = [1, 128], strides = [1, 1]} : vector<16x128xf32> to vector<1x128xf32>
    %52 = vector.shape_cast %51 : vector<1x128xf32> to vector<128xf32>
    %53 = vector.extract_strided_slice %35 {offsets = [7, 0], sizes = [1, 128], strides = [1, 1]} : vector<16x128xf32> to vector<1x128xf32>
    %54 = vector.shape_cast %53 : vector<1x128xf32> to vector<128xf32>
    %55 = arith.maximumf %52, %54 : vector<128xf32>
    %56 = vector.extract_strided_slice %35 {offsets = [8, 0], sizes = [1, 128], strides = [1, 1]} : vector<16x128xf32> to vector<1x128xf32>
    %57 = vector.shape_cast %56 : vector<1x128xf32> to vector<128xf32>
    %58 = vector.extract_strided_slice %35 {offsets = [9, 0], sizes = [1, 128], strides = [1, 1]} : vector<16x128xf32> to vector<1x128xf32>
    %59 = vector.shape_cast %58 : vector<1x128xf32> to vector<128xf32>
    %60 = arith.maximumf %57, %59 : vector<128xf32>
    %61 = vector.extract_strided_slice %35 {offsets = [10, 0], sizes = [1, 128], strides = [1, 1]} : vector<16x128xf32> to vector<1x128xf32>
    %62 = vector.shape_cast %61 : vector<1x128xf32> to vector<128xf32>
    %63 = vector.extract_strided_slice %35 {offsets = [11, 0], sizes = [1, 128], strides = [1, 1]} : vector<16x128xf32> to vector<1x128xf32>
    %64 = vector.shape_cast %63 : vector<1x128xf32> to vector<128xf32>
    %65 = arith.maximumf %62, %64 : vector<128xf32>
    %66 = vector.extract_strided_slice %35 {offsets = [12, 0], sizes = [1, 128], strides = [1, 1]} : vector<16x128xf32> to vector<1x128xf32>
    %67 = vector.shape_cast %66 : vector<1x128xf32> to vector<128xf32>
    %68 = vector.extract_strided_slice %35 {offsets = [13, 0], sizes = [1, 128], strides = [1, 1]} : vector<16x128xf32> to vector<1x128xf32>
    %69 = vector.shape_cast %68 : vector<1x128xf32> to vector<128xf32>
    %70 = arith.maximumf %67, %69 : vector<128xf32>
    %71 = vector.extract_strided_slice %35 {offsets = [14, 0], sizes = [1, 128], strides = [1, 1]} : vector<16x128xf32> to vector<1x128xf32>
    %72 = vector.shape_cast %71 : vector<1x128xf32> to vector<128xf32>
    %73 = vector.extract_strided_slice %35 {offsets = [15, 0], sizes = [1, 128], strides = [1, 1]} : vector<16x128xf32> to vector<1x128xf32>
    %74 = vector.shape_cast %73 : vector<1x128xf32> to vector<128xf32>
    %75 = arith.maximumf %72, %74 : vector<128xf32>
    %76 = vector.shape_cast %40 : vector<128xf32> to vector<1x128xf32>
    %77 = vector.shape_cast %45 : vector<128xf32> to vector<1x128xf32>
    %78 = vector.shape_cast %50 : vector<128xf32> to vector<1x128xf32>
    %79 = vector.shape_cast %55 : vector<128xf32> to vector<1x128xf32>
    %80 = vector.shape_cast %60 : vector<128xf32> to vector<1x128xf32>
    %81 = vector.shape_cast %65 : vector<128xf32> to vector<1x128xf32>
    %82 = vector.shape_cast %70 : vector<128xf32> to vector<1x128xf32>
    %83 = vector.shape_cast %75 : vector<128xf32> to vector<1x128xf32>
    %84 = tpu.concatenate %76, %77, %78, %79, %80, %81, %82, %83 in 0 : vector<1x128xf32>, vector<1x128xf32>, vector<1x128xf32>, vector<1x128xf32>, vector<1x128xf32>, vector<1x128xf32>, vector<1x128xf32>, vector<1x128xf32> -> vector<8x128xf32>
    %85 = vector.extract_strided_slice %27 {offsets = [2, 0, 0], sizes = [1, 16, 128], strides = [1, 1, 1]} : vector<8x16x128xf32> to vector<1x16x128xf32>
    %86 = vector.shape_cast %85 : vector<1x16x128xf32> to vector<16x128xf32>
    %87 = vector.extract_strided_slice %27 {offsets = [3, 0, 0], sizes = [1, 16, 128], strides = [1, 1, 1]} : vector<8x16x128xf32> to vector<1x16x128xf32>
    %88 = vector.shape_cast %87 : vector<1x16x128xf32> to vector<16x128xf32>
    %89 = arith.maximumf %86, %88 : vector<16x128xf32>
    %90 = vector.extract_strided_slice %89 {offsets = [0, 0], sizes = [1, 128], strides = [1, 1]} : vector<16x128xf32> to vector<1x128xf32>
    %91 = vector.shape_cast %90 : vector<1x128xf32> to vector<128xf32>
    %92 = vector.extract_strided_slice %89 {offsets = [1, 0], sizes = [1, 128], strides = [1, 1]} : vector<16x128xf32> to vector<1x128xf32>
    %93 = vector.shape_cast %92 : vector<1x128xf32> to vector<128xf32>
    %94 = arith.maximumf %91, %93 : vector<128xf32>
    %95 = vector.extract_strided_slice %89 {offsets = [2, 0], sizes = [1, 128], strides = [1, 1]} : vector<16x128xf32> to vector<1x128xf32>
    %96 = vector.shape_cast %95 : vector<1x128xf32> to vector<128xf32>
    %97 = vector.extract_strided_slice %89 {offsets = [3, 0], sizes = [1, 128], strides = [1, 1]} : vector<16x128xf32> to vector<1x128xf32>
    %98 = vector.shape_cast %97 : vector<1x128xf32> to vector<128xf32>
    %99 = arith.maximumf %96, %98 : vector<128xf32>
    %100 = vector.extract_strided_slice %89 {offsets = [4, 0], sizes = [1, 128], strides = [1, 1]} : vector<16x128xf32> to vector<1x128xf32>
    %101 = vector.shape_cast %100 : vector<1x128xf32> to vector<128xf32>
    %102 = vector.extract_strided_slice %89 {offsets = [5, 0], sizes = [1, 128], strides = [1, 1]} : vector<16x128xf32> to vector<1x128xf32>
    %103 = vector.shape_cast %102 : vector<1x128xf32> to vector<128xf32>
    %104 = arith.maximumf %101, %103 : vector<128xf32>
    %105 = vector.extract_strided_slice %89 {offsets = [6, 0], sizes = [1, 128], strides = [1, 1]} : vector<16x128xf32> to vector<1x128xf32>
    %106 = vector.shape_cast %105 : vector<1x128xf32> to vector<128xf32>
    %107 = vector.extract_strided_slice %89 {offsets = [7, 0], sizes = [1, 128], strides = [1, 1]} : vector<16x128xf32> to vector<1x128xf32>
    %108 = vector.shape_cast %107 : vector<1x128xf32> to vector<128xf32>
    %109 = arith.maximumf %106, %108 : vector<128xf32>
    %110 = vector.extract_strided_slice %89 {offsets = [8, 0], sizes = [1, 128], strides = [1, 1]} : vector<16x128xf32> to vector<1x128xf32>
    %111 = vector.shape_cast %110 : vector<1x128xf32> to vector<128xf32>
    %112 = vector.extract_strided_slice %89 {offsets = [9, 0], sizes = [1, 128], strides = [1, 1]} : vector<16x128xf32> to vector<1x128xf32>
    %113 = vector.shape_cast %112 : vector<1x128xf32> to vector<128xf32>
    %114 = arith.maximumf %111, %113 : vector<128xf32>
    %115 = vector.extract_strided_slice %89 {offsets = [10, 0], sizes = [1, 128], strides = [1, 1]} : vector<16x128xf32> to vector<1x128xf32>
    %116 = vector.shape_cast %115 : vector<1x128xf32> to vector<128xf32>
    %117 = vector.extract_strided_slice %89 {offsets = [11, 0], sizes = [1, 128], strides = [1, 1]} : vector<16x128xf32> to vector<1x128xf32>
    %118 = vector.shape_cast %117 : vector<1x128xf32> to vector<128xf32>
    %119 = arith.maximumf %116, %118 : vector<128xf32>
    %120 = vector.extract_strided_slice %89 {offsets = [12, 0], sizes = [1, 128], strides = [1, 1]} : vector<16x128xf32> to vector<1x128xf32>
    %121 = vector.shape_cast %120 : vector<1x128xf32> to vector<128xf32>
    %122 = vector.extract_strided_slice %89 {offsets = [13, 0], sizes = [1, 128], strides = [1, 1]} : vector<16x128xf32> to vector<1x128xf32>
    %123 = vector.shape_cast %122 : vector<1x128xf32> to vector<128xf32>
    %124 = arith.maximumf %121, %123 : vector<128xf32>
    %125 = vector.extract_strided_slice %89 {offsets = [14, 0], sizes = [1, 128], strides = [1, 1]} : vector<16x128xf32> to vector<1x128xf32>
    %126 = vector.shape_cast %125 : vector<1x128xf32> to vector<128xf32>
    %127 = vector.extract_strided_slice %89 {offsets = [15, 0], sizes = [1, 128], strides = [1, 1]} : vector<16x128xf32> to vector<1x128xf32>
    %128 = vector.shape_cast %127 : vector<1x128xf32> to vector<128xf32>
    %129 = arith.maximumf %126, %128 : vector<128xf32>
    %130 = vector.shape_cast %94 : vector<128xf32> to vector<1x128xf32>
    %131 = vector.shape_cast %99 : vector<128xf32> to vector<1x128xf32>
    %132 = vector.shape_cast %104 : vector<128xf32> to vector<1x128xf32>
    %133 = vector.shape_cast %109 : vector<128xf32> to vector<1x128xf32>
    %134 = vector.shape_cast %114 : vector<128xf32> to vector<1x128xf32>
    %135 = vector.shape_cast %119 : vector<128xf32> to vector<1x128xf32>
    %136 = vector.shape_cast %124 : vector<128xf32> to vector<1x128xf32>
    %137 = vector.shape_cast %129 : vector<128xf32> to vector<1x128xf32>
    %138 = tpu.concatenate %130, %131, %132, %133, %134, %135, %136, %137 in 0 : vector<1x128xf32>, vector<1x128xf32>, vector<1x128xf32>, vector<1x128xf32>, vector<1x128xf32>, vector<1x128xf32>, vector<1x128xf32>, vector<1x128xf32> -> vector<8x128xf32>
    %139 = vector.extract_strided_slice %27 {offsets = [4, 0, 0], sizes = [1, 16, 128], strides = [1, 1, 1]} : vector<8x16x128xf32> to vector<1x16x128xf32>
    %140 = vector.shape_cast %139 : vector<1x16x128xf32> to vector<16x128xf32>
    %141 = vector.extract_strided_slice %27 {offsets = [5, 0, 0], sizes = [1, 16, 128], strides = [1, 1, 1]} : vector<8x16x128xf32> to vector<1x16x128xf32>
    %142 = vector.shape_cast %141 : vector<1x16x128xf32> to vector<16x128xf32>
    %143 = arith.maximumf %140, %142 : vector<16x128xf32>
    %144 = vector.extract_strided_slice %143 {offsets = [0, 0], sizes = [1, 128], strides = [1, 1]} : vector<16x128xf32> to vector<1x128xf32>
    %145 = vector.shape_cast %144 : vector<1x128xf32> to vector<128xf32>
    %146 = vector.extract_strided_slice %143 {offsets = [1, 0], sizes = [1, 128], strides = [1, 1]} : vector<16x128xf32> to vector<1x128xf32>
    %147 = vector.shape_cast %146 : vector<1x128xf32> to vector<128xf32>
    %148 = arith.maximumf %145, %147 : vector<128xf32>
    %149 = vector.extract_strided_slice %143 {offsets = [2, 0], sizes = [1, 128], strides = [1, 1]} : vector<16x128xf32> to vector<1x128xf32>
    %150 = vector.shape_cast %149 : vector<1x128xf32> to vector<128xf32>
    %151 = vector.extract_strided_slice %143 {offsets = [3, 0], sizes = [1, 128], strides = [1, 1]} : vector<16x128xf32> to vector<1x128xf32>
    %152 = vector.shape_cast %151 : vector<1x128xf32> to vector<128xf32>
    %153 = arith.maximumf %150, %152 : vector<128xf32>
    %154 = vector.extract_strided_slice %143 {offsets = [4, 0], sizes = [1, 128], strides = [1, 1]} : vector<16x128xf32> to vector<1x128xf32>
    %155 = vector.shape_cast %154 : vector<1x128xf32> to vector<128xf32>
    %156 = vector.extract_strided_slice %143 {offsets = [5, 0], sizes = [1, 128], strides = [1, 1]} : vector<16x128xf32> to vector<1x128xf32>
    %157 = vector.shape_cast %156 : vector<1x128xf32> to vector<128xf32>
    %158 = arith.maximumf %155, %157 : vector<128xf32>
    %159 = vector.extract_strided_slice %143 {offsets = [6, 0], sizes = [1, 128], strides = [1, 1]} : vector<16x128xf32> to vector<1x128xf32>
    %160 = vector.shape_cast %159 : vector<1x128xf32> to vector<128xf32>
    %161 = vector.extract_strided_slice %143 {offsets = [7, 0], sizes = [1, 128], strides = [1, 1]} : vector<16x128xf32> to vector<1x128xf32>
    %162 = vector.shape_cast %161 : vector<1x128xf32> to vector<128xf32>
    %163 = arith.maximumf %160, %162 : vector<128xf32>
    %164 = vector.extract_strided_slice %143 {offsets = [8, 0], sizes = [1, 128], strides = [1, 1]} : vector<16x128xf32> to vector<1x128xf32>
    %165 = vector.shape_cast %164 : vector<1x128xf32> to vector<128xf32>
    %166 = vector.extract_strided_slice %143 {offsets = [9, 0], sizes = [1, 128], strides = [1, 1]} : vector<16x128xf32> to vector<1x128xf32>
    %167 = vector.shape_cast %166 : vector<1x128xf32> to vector<128xf32>
    %168 = arith.maximumf %165, %167 : vector<128xf32>
    %169 = vector.extract_strided_slice %143 {offsets = [10, 0], sizes = [1, 128], strides = [1, 1]} : vector<16x128xf32> to vector<1x128xf32>
    %170 = vector.shape_cast %169 : vector<1x128xf32> to vector<128xf32>
    %171 = vector.extract_strided_slice %143 {offsets = [11, 0], sizes = [1, 128], strides = [1, 1]} : vector<16x128xf32> to vector<1x128xf32>
    %172 = vector.shape_cast %171 : vector<1x128xf32> to vector<128xf32>
    %173 = arith.maximumf %170, %172 : vector<128xf32>
    %174 = vector.extract_strided_slice %143 {offsets = [12, 0], sizes = [1, 128], strides = [1, 1]} : vector<16x128xf32> to vector<1x128xf32>
    %175 = vector.shape_cast %174 : vector<1x128xf32> to vector<128xf32>
    %176 = vector.extract_strided_slice %143 {offsets = [13, 0], sizes = [1, 128], strides = [1, 1]} : vector<16x128xf32> to vector<1x128xf32>
    %177 = vector.shape_cast %176 : vector<1x128xf32> to vector<128xf32>
    %178 = arith.maximumf %175, %177 : vector<128xf32>
    %179 = vector.extract_strided_slice %143 {offsets = [14, 0], sizes = [1, 128], strides = [1, 1]} : vector<16x128xf32> to vector<1x128xf32>
    %180 = vector.shape_cast %179 : vector<1x128xf32> to vector<128xf32>
    %181 = vector.extract_strided_slice %143 {offsets = [15, 0], sizes = [1, 128], strides = [1, 1]} : vector<16x128xf32> to vector<1x128xf32>
    %182 = vector.shape_cast %181 : vector<1x128xf32> to vector<128xf32>
    %183 = arith.maximumf %180, %182 : vector<128xf32>
    %184 = vector.shape_cast %148 : vector<128xf32> to vector<1x128xf32>
    %185 = vector.shape_cast %153 : vector<128xf32> to vector<1x128xf32>
    %186 = vector.shape_cast %158 : vector<128xf32> to vector<1x128xf32>
    %187 = vector.shape_cast %163 : vector<128xf32> to vector<1x128xf32>
    %188 = vector.shape_cast %168 : vector<128xf32> to vector<1x128xf32>
    %189 = vector.shape_cast %173 : vector<128xf32> to vector<1x128xf32>
    %190 = vector.shape_cast %178 : vector<128xf32> to vector<1x128xf32>
    %191 = vector.shape_cast %183 : vector<128xf32> to vector<1x128xf32>
    %192 = tpu.concatenate %184, %185, %186, %187, %188, %189, %190, %191 in 0 : vector<1x128xf32>, vector<1x128xf32>, vector<1x128xf32>, vector<1x128xf32>, vector<1x128xf32>, vector<1x128xf32>, vector<1x128xf32>, vector<1x128xf32> -> vector<8x128xf32>
    %193 = vector.extract_strided_slice %27 {offsets = [6, 0, 0], sizes = [1, 16, 128], strides = [1, 1, 1]} : vector<8x16x128xf32> to vector<1x16x128xf32>
    %194 = vector.shape_cast %193 : vector<1x16x128xf32> to vector<16x128xf32>
    %195 = vector.extract_strided_slice %27 {offsets = [7, 0, 0], sizes = [1, 16, 128], strides = [1, 1, 1]} : vector<8x16x128xf32> to vector<1x16x128xf32>
    %196 = vector.shape_cast %195 : vector<1x16x128xf32> to vector<16x128xf32>
    %197 = arith.maximumf %194, %196 : vector<16x128xf32>
    %198 = vector.extract_strided_slice %197 {offsets = [0, 0], sizes = [1, 128], strides = [1, 1]} : vector<16x128xf32> to vector<1x128xf32>
    %199 = vector.shape_cast %198 : vector<1x128xf32> to vector<128xf32>
    %200 = vector.extract_strided_slice %197 {offsets = [1, 0], sizes = [1, 128], strides = [1, 1]} : vector<16x128xf32> to vector<1x128xf32>
    %201 = vector.shape_cast %200 : vector<1x128xf32> to vector<128xf32>
    %202 = arith.maximumf %199, %201 : vector<128xf32>
    %203 = vector.extract_strided_slice %197 {offsets = [2, 0], sizes = [1, 128], strides = [1, 1]} : vector<16x128xf32> to vector<1x128xf32>
    %204 = vector.shape_cast %203 : vector<1x128xf32> to vector<128xf32>
    %205 = vector.extract_strided_slice %197 {offsets = [3, 0], sizes = [1, 128], strides = [1, 1]} : vector<16x128xf32> to vector<1x128xf32>
    %206 = vector.shape_cast %205 : vector<1x128xf32> to vector<128xf32>
    %207 = arith.maximumf %204, %206 : vector<128xf32>
    %208 = vector.extract_strided_slice %197 {offsets = [4, 0], sizes = [1, 128], strides = [1, 1]} : vector<16x128xf32> to vector<1x128xf32>
    %209 = vector.shape_cast %208 : vector<1x128xf32> to vector<128xf32>
    %210 = vector.extract_strided_slice %197 {offsets = [5, 0], sizes = [1, 128], strides = [1, 1]} : vector<16x128xf32> to vector<1x128xf32>
    %211 = vector.shape_cast %210 : vector<1x128xf32> to vector<128xf32>
    %212 = arith.maximumf %209, %211 : vector<128xf32>
    %213 = vector.extract_strided_slice %197 {offsets = [6, 0], sizes = [1, 128], strides = [1, 1]} : vector<16x128xf32> to vector<1x128xf32>
    %214 = vector.shape_cast %213 : vector<1x128xf32> to vector<128xf32>
    %215 = vector.extract_strided_slice %197 {offsets = [7, 0], sizes = [1, 128], strides = [1, 1]} : vector<16x128xf32> to vector<1x128xf32>
    %216 = vector.shape_cast %215 : vector<1x128xf32> to vector<128xf32>
    %217 = arith.maximumf %214, %216 : vector<128xf32>
    %218 = vector.extract_strided_slice %197 {offsets = [8, 0], sizes = [1, 128], strides = [1, 1]} : vector<16x128xf32> to vector<1x128xf32>
    %219 = vector.shape_cast %218 : vector<1x128xf32> to vector<128xf32>
    %220 = vector.extract_strided_slice %197 {offsets = [9, 0], sizes = [1, 128], strides = [1, 1]} : vector<16x128xf32> to vector<1x128xf32>
    %221 = vector.shape_cast %220 : vector<1x128xf32> to vector<128xf32>
    %222 = arith.maximumf %219, %221 : vector<128xf32>
    %223 = vector.extract_strided_slice %197 {offsets = [10, 0], sizes = [1, 128], strides = [1, 1]} : vector<16x128xf32> to vector<1x128xf32>
    %224 = vector.shape_cast %223 : vector<1x128xf32> to vector<128xf32>
    %225 = vector.extract_strided_slice %197 {offsets = [11, 0], sizes = [1, 128], strides = [1, 1]} : vector<16x128xf32> to vector<1x128xf32>
    %226 = vector.shape_cast %225 : vector<1x128xf32> to vector<128xf32>
    %227 = arith.maximumf %224, %226 : vector<128xf32>
    %228 = vector.extract_strided_slice %197 {offsets = [12, 0], sizes = [1, 128], strides = [1, 1]} : vector<16x128xf32> to vector<1x128xf32>
    %229 = vector.shape_cast %228 : vector<1x128xf32> to vector<128xf32>
    %230 = vector.extract_strided_slice %197 {offsets = [13, 0], sizes = [1, 128], strides = [1, 1]} : vector<16x128xf32> to vector<1x128xf32>
    %231 = vector.shape_cast %230 : vector<1x128xf32> to vector<128xf32>
    %232 = arith.maximumf %229, %231 : vector<128xf32>
    %233 = vector.extract_strided_slice %197 {offsets = [14, 0], sizes = [1, 128], strides = [1, 1]} : vector<16x128xf32> to vector<1x128xf32>
    %234 = vector.shape_cast %233 : vector<1x128xf32> to vector<128xf32>
    %235 = vector.extract_strided_slice %197 {offsets = [15, 0], sizes = [1, 128], strides = [1, 1]} : vector<16x128xf32> to vector<1x128xf32>
    %236 = vector.shape_cast %235 : vector<1x128xf32> to vector<128xf32>
    %237 = arith.maximumf %234, %236 : vector<128xf32>
    %238 = vector.shape_cast %202 : vector<128xf32> to vector<1x128xf32>
    %239 = vector.shape_cast %207 : vector<128xf32> to vector<1x128xf32>
    %240 = vector.shape_cast %212 : vector<128xf32> to vector<1x128xf32>
    %241 = vector.shape_cast %217 : vector<128xf32> to vector<1x128xf32>
    %242 = vector.shape_cast %222 : vector<128xf32> to vector<1x128xf32>
    %243 = vector.shape_cast %227 : vector<128xf32> to vector<1x128xf32>
    %244 = vector.shape_cast %232 : vector<128xf32> to vector<1x128xf32>
    %245 = vector.shape_cast %237 : vector<128xf32> to vector<1x128xf32>
    %246 = tpu.concatenate %238, %239, %240, %241, %242, %243, %244, %245 in 0 : vector<1x128xf32>, vector<1x128xf32>, vector<1x128xf32>, vector<1x128xf32>, vector<1x128xf32>, vector<1x128xf32>, vector<1x128xf32>, vector<1x128xf32> -> vector<8x128xf32>
    %247 = vector.shape_cast %84 : vector<8x128xf32> to vector<1x8x128xf32>
    %248 = vector.shape_cast %138 : vector<8x128xf32> to vector<1x8x128xf32>
    %249 = vector.shape_cast %192 : vector<8x128xf32> to vector<1x8x128xf32>
    %250 = vector.shape_cast %246 : vector<8x128xf32> to vector<1x8x128xf32>
    %251 = tpu.concatenate %247, %248, %249, %250 in 0 : vector<1x8x128xf32>, vector<1x8x128xf32>, vector<1x8x128xf32>, vector<1x8x128xf32> -> vector<4x8x128xf32>
    %c0_15 = arith.constant 0 : index
    %c0_16 = arith.constant 0 : index
    %c0_17 = arith.constant 0 : index
    %c0_18 = arith.constant 0 : index
    %252 = vector.load %arg5[%c0_15, %c0_16, %c0_17, %c0_18] : memref<1x4x8x128xf32, #tpu.memory_space<vmem>>, vector<1x4x8x128xf32>
    %253 = vector.shape_cast %252 : vector<1x4x8x128xf32> to vector<4x8x128xf32>
    %254 = vector.shape_cast %251 : vector<4x8x128xf32> to vector<1x4x8x128xf32>
    tpu.vector_store %arg5[%c0_15, %c0_16, %c0_17, %c0_18], %254 {strides = array<i32>} : memref<1x4x8x128xf32, #tpu.memory_space<vmem>>, vector<1x4x8x128xf32>,
    return
  }
  func.func @transform_0(%arg0: i32, %arg1: i32) -> (i32, i32, i32, i32) {
    %c0_i32 = arith.constant 0 : i32
    %c0_i32_0 = arith.constant 0 : i32
    %c0_i32_1 = arith.constant 0 : i32
    return %arg0, %arg1, %c0_i32, %c0_i32_0 : i32, i32, i32, i32
  }
  func.func @transform_1(%arg0: i32, %arg1: i32) -> (i32, i32) {
    %c0_i32 = arith.constant 0 : i32
    %c0_i32_0 = arith.constant 0 : i32
    %c0_i32_1 = arith.constant 0 : i32
    return %c0_i32, %c0_i32_0 : i32, i32
  }
  func.func @transform_2(%arg0: i32, %arg1: i32) -> (i32, i32, i32, i32) {
    %c0_i32 = arith.constant 0 : i32
    %c0_i32_0 = arith.constant 0 : i32
    %c0_i32_1 = arith.constant 0 : i32
    return %arg0, %arg1, %c0_i32, %c0_i32_0 : i32, i32, i32, i32
  }
  func.func @transform_3(%arg0: i32, %arg1: i32) -> (i32, i32, i32, i32) {
    %c0_i32 = arith.constant 0 : i32
    %c0_i32_0 = arith.constant 0 : i32
    %c0_i32_1 = arith.constant 0 : i32
    return %arg0, %arg1, %c0_i32, %c0_i32_0 : i32, i32, i32, i32
  }
}

</mosaic_0001>

<bundles_post_ra>
// kernel: encoder_block_forward.5
= control target key start
LH: loop header
LB: loop body
LE: loop exit
PB: predicated region body
PF: predicated region fallthrough
CT: control target
= control target key end

     0   :  { %s566_s9 = smov 0   ;;  %s568_s10 = smov 0   ;;  %s679_s0 = inlined_call_operand.vmem [shape: f32[2,16,16,128], index: 0, kind: input, shape index: {}]   ;;  %s680_s1 = inlined_call_operand.vmem [shape: f32[4,128], index: 1, kind: input, shape index: {}]   ;;  %s681_s2 = inlined_call_operand.vmem [shape: bf16[2,16,16,128], index: 2, kind: output, shape index: {}]  }
   0x1   :  { %s570_s11 = smov 0   ;;  %s572_s12 = smov 0  }
   0x2   :  { %s574_s13 = smov 0  }
   0x3 LB: > { %s21_s14 = sadd.s32 1, %s541_s11  ;;  %s24_s15 = sadd.s32 1, %s545_s12  ;;  %s549_s13 = sphi %s574_s13, %s12_s13   ;;  %s545_s12 = sphi %s572_s12, %s685_s12   ;;  %s541_s11 = sphi %s570_s11, %s684_s11   ;;  %s537_s10 = sphi %s568_s10, %s683_s10   ;;  %s533_s9 = sphi %s566_s9, %s682_s9  }
   0x4   : > { %p22_p0 = scmp.ge.s32.totalorder %s21_s14, 2  ;;  %p411_p1 = scmp.ge.s32.totalorder %s549_s13, 1 }
   0x5   : > { %p134_p2 = scmp.lt.s32.totalorder %s549_s13, 5 }
   0x6   : > { %s687_s14 = smov (%p22_p0, %s21_s14), 0  ;;  %s689_s15 = smov (!%p22_p0, %s24_s15), %s545_s12 }
   0x7   : > { %p135_p3 = pnand %p411_p1, %p134_p2  ;;  %p26_p4 = scmp.ge.s32.totalorder %s689_s15, 2 }
   0x8   : > { %s412_s20 = sshll.u32 (!%p135_p3), %s533_s9, 3  ;;  %p167_p5 = scmp.lt.s32.totalorder (!%p135_p3), %s537_s10, 1 }
   0x9   : > { %s691_s15 = smov (%p26_p4, %s689_s15), 0  ;;  %138 = sbr.rel (%p135_p3) target bundleno = 65 (0x41), region = 28 }
   0xa   : > { %p169_p6 = scmp.lt.s32.totalorder (!%p135_p3), %s412_s20, 15 }
   0xe   : > { %v188_v0 = vld [vmem:[%s680_s1] sm:$0x1]  ;;  %v190_v1 = vld [vmem:[%s680_s1 + $0x1] sm:$0x1]  ;;  %s693_s10 = smov (!%p167_p5, %s537_s10), 1  ;;  %s695_s20 = smov (!%p169_p6, %s412_s20), 15 }
   0xf   : > { %v189_v2 = vmul.f32 0.001953125, %v188_v0  ;;  %v191_v3 = vmul.f32 0.001953125, %v190_v1  ;;  %s413_s21 = sshll.u32 %s695_s20, 1  ;;  %s414_s22 = sshll.u32 %s693_s10, 5  ;;  %v194_v12 = vld [vmem:[%s680_s1 + $0x2] sm:$0x1] }
  0x10   : > { %s602_s23 = sadd.s32 %s414_s22, %s413_s21  ;;  %v207_v16 = vld [vmem:[%s680_s1 + $0x3] sm:$0x1] }
  0x11   : > { %v192_v4 = vmul.f32 %v189_v2, %v189_v2  ;;  %s415_s24 = sshll.u32 %s602_s23, 3  ;;  %s419_s4 = sshll.u32 %s602_s23, 2 }
  0x12   : > { %s608_s27 = scalar_lea.vmem %s679_s0, %s415_s24  ;;  %s650_s7 = scalar_lea.vmem %s681_s2, %s419_s4 }
  0x13   : > { %v193_v5 = vsub.f32 %v191_v3, %v192_v4  ;;  %v210_v17 = vld [vmem:[%s608_s27] sm:$0xff]  ;;  %v211_v18 = vld [vmem:[%s608_s27 + $0x8] sm:$0xff]  ;;  %v212_v19 = vld [vmem:[%s608_s27 + $0x10] sm:$0xff] }
  0x14   : > { %v213_v20 = vld [vmem:[%s608_s27 + $0x18] sm:$0xff]  ;;  %v214_v21 = vld [vmem:[%s608_s27 + $0x20] sm:$0xff]  ;;  %v215_v24 = vld [vmem:[%s608_s27 + $0x28] sm:$0xff] }
  0x15   : > { %v195_v6 = vadd.f32 1e-05, %v193_v5  ;;  %v216_v25 = vld [vmem:[%s608_s27 + $0x30] sm:$0xff]  ;;  %v217_v26 = vld [vmem:[%s608_s27 + $0x38] sm:$0xff]  ;;  %v218_v27 = vld [vmem:[%s608_s27 + $0x40] sm:$0xff] }
  0x16   : > { %v219_v28 = vld [vmem:[%s608_s27 + $0x48] sm:$0xff]  ;;  %v220_v29 = vld [vmem:[%s608_s27 + $0x50] sm:$0xff]  ;;  %v221_v34 = vld [vmem:[%s608_s27 + $0x58] sm:$0xff] }
  0x17   : > { %509 = vrsqrt.f32 %v195_v6  ;;  %vm202_vm0 = vweird.f32 %v195_v6  ;;  %v222_v35 = vld [vmem:[%s608_s27 + $0x60] sm:$0xff]  ;;  %v223_v36 = vld [vmem:[%s608_s27 + $0x68] sm:$0xff]  ;;  %v224_v5 = vld [vmem:[%s608_s27 + $0x70] sm:$0xff] }
  0x1d   : > { %v510_v7 = vpop.eup %509 }
  0x1e   : > { %v197_v8 = vmul.f32 %v510_v7, %v195_v6  ;;  %vm203_vm1 = vweird.f32 %v510_v7  ;;  %v225_v6 = vld [vmem:[%s608_s27 + $0x78] sm:$0xff] }
  0x1f   : > { %vm204_vm2 = vmor %vm202_vm0, %vm203_vm1 }
  0x20   : > { %v198_v9 = vmul.f32 %v510_v7, %v197_v8 }
  0x22   : > { %v199_v10 = vmul.f32 0.5, %v198_v9 }
  0x24   : > { %v200_v11 = vsub.f32 1.5, %v199_v10 }
  0x26   : > { %v201_v13 = vmul.f32 %v510_v7, %v200_v11 }
  0x28   : > { %v205_v14 = vsel %vm204_vm2, %v510_v7, %v201_v13 }
  0x29   : > { %v206_v15 = vmul.f32 %v205_v14, %v194_v12 }
  0x2b   : > { %v208_v22 = vmul.f32 %v206_v15, %v189_v2  ;;  %v621_v23 = vperm.slane %v206_v15, 0 }
  0x2d   : > { %v209_v30 = vsub.f32 %v207_v16, %v208_v22  ;;  %v227_v31 = vmul.f32 %v621_v23, %v210_v17  ;;  %v228_v32 = vmul.f32 %v621_v23, %v211_v18  ;;  %v229_v33 = vmul.f32 %v621_v23, %v212_v19 }
  0x2e   : > { %v230_v37 = vmul.f32 %v621_v23, %v213_v20  ;;  %v231_v38 = vmul.f32 %v621_v23, %v214_v21  ;;  %v232_v39 = vmul.f32 %v621_v23, %v215_v24  ;;  %v233_v40 = vmul.f32 %v621_v23, %v216_v25 }
  0x2f   : > { %v243_v41 = vperm.slane %v209_v30, 0  ;;  %v234_v42 = vmul.f32 %v621_v23, %v217_v26  ;;  %v235_v43 = vmul.f32 %v621_v23, %v218_v27  ;;  %v236_v44 = vmul.f32 %v621_v23, %v219_v28 }
  0x30   : > { %v237_v45 = vmul.f32 %v621_v23, %v220_v29  ;;  %v238_v46 = vmul.f32 %v621_v23, %v221_v34  ;;  %v239_v47 = vmul.f32 %v621_v23, %v222_v35  ;;  %v240_v48 = vmul.f32 %v621_v23, %v223_v36 }
  0x31   : > { %v244_v49 = vadd.f32 %v243_v41, %v227_v31  ;;  %v245_v50 = vadd.f32 %v243_v41, %v228_v32  ;;  %v246_v51 = vadd.f32 %v243_v41, %v229_v33  ;;  %v247_v52 = vadd.f32 %v243_v41, %v230_v37 }
  0x32   : > { %v248_v53 = vadd.f32 %v243_v41, %v231_v38  ;;  %v249_v54 = vadd.f32 %v243_v41, %v232_v39  ;;  %v250_v55 = vadd.f32 %v243_v41, %v233_v40  ;;  %v251_v56 = vadd.f32 %v243_v41, %v234_v42 }
  0x33   : > { %v260_v57 = vmax.f32 %v244_v49, 0.0  ;;  %v261_v58 = vmax.f32 %v245_v50, 0.0  ;;  %v262_v59 = vmax.f32 %v246_v51, 0.0  ;;  %v263_v60 = vmax.f32 %v247_v52, 0.0 }
  0x34   : > { %v264_v61 = vmax.f32 %v248_v53, 0.0  ;;  %v265_v62 = vmax.f32 %v249_v54, 0.0  ;;  %v266_v63 = vmax.f32 %v250_v55, 0.0  ;;  %v267_v0 = vmax.f32 %v251_v56, 0.0 }
  0x35   : > { %v425_v1 = vpack.c.bf16 %v261_v58, %v260_v57  ;;  %v430_v2 = vpack.c.bf16 %v263_v60, %v262_v59  ;;  %v252_v3 = vadd.f32 %v243_v41, %v235_v43  ;;  %v253_v4 = vadd.f32 %v243_v41, %v236_v44 }
  0x36   : > { %v435_v7 = vpack.c.bf16 %v265_v62, %v264_v61  ;;  %v440_v8 = vpack.c.bf16 %v267_v0, %v266_v63  ;;  %v254_v9 = vadd.f32 %v243_v41, %v237_v45  ;;  %v255_v10 = vadd.f32 %v243_v41, %v238_v46 }
  0x37   : > { %426 = vst [vmem:[%s650_s7] sm:$0xff] %v425_v1   ;;  %v268_v11 = vmax.f32 %v252_v3, 0.0  ;;  %v269_v12 = vmax.f32 %v253_v4, 0.0  ;;  %v256_v13 = vadd.f32 %v243_v41, %v239_v47  ;;  %v257_v14 = vadd.f32 %v243_v41, %v240_v48 }
  0x38   : > { %462 = vst [vmem:[%s650_s7 + $0x8] sm:$0xff] %v430_v2   ;;  %v270_v15 = vmax.f32 %v254_v9, 0.0  ;;  %v271_v16 = vmax.f32 %v255_v10, 0.0  ;;  %v241_v17 = vmul.f32 %v621_v23, %v224_v5  ;;  %v242_v18 = vmul.f32 %v621_v23, %v225_v6 }
  0x39   : > { %463 = vst [vmem:[%s650_s7 + $0x10] sm:$0xff] %v435_v7   ;;  %v445_v19 = vpack.c.bf16 %v269_v12, %v268_v11  ;;  %v272_v20 = vmax.f32 %v256_v13, 0.0  ;;  %v273_v21 = vmax.f32 %v257_v14, 0.0 }
  0x3a   : > { %464 = vst [vmem:[%s650_s7 + $0x18] sm:$0xff] %v440_v8   ;;  %v450_v22 = vpack.c.bf16 %v271_v16, %v270_v15  ;;  %v258_v24 = vadd.f32 %v243_v41, %v241_v17  ;;  %v259_v25 = vadd.f32 %v243_v41, %v242_v18 }
  0x3b   : > { %465 = vst [vmem:[%s650_s7 + $0x20] sm:$0xff] %v445_v19   ;;  %v455_v26 = vpack.c.bf16 %v273_v21, %v272_v20 }
  0x3c   : > { %466 = vst [vmem:[%s650_s7 + $0x28] sm:$0xff] %v450_v22   ;;  %v274_v27 = vmax.f32 %v258_v24, 0.0  ;;  %v275_v28 = vmax.f32 %v259_v25, 0.0 }
  0x3d   : > { %467 = vst [vmem:[%s650_s7 + $0x30] sm:$0xff] %v455_v26  }
  0x3e   : > { %v460_v29 = vpack.c.bf16 %v275_v28, %v274_v27 }
  0x40   : > { %468 = vst [vmem:[%s650_s7 + $0x38] sm:$0xff] %v460_v29  }
  0x41 PF: > { %s12_s13 = sadd.s32 1, %s549_s13   ;;  %s682_s9 = smov %s541_s11 }
  0x42   : > { %p9_p7 = scmp.ge.s32.totalorder %s12_s13, 6   ;;  %s683_s10 = smov %s545_s12 }
  0x43   : > { %s684_s11 = smov %s687_s14  ;;  %s685_s12 = smov %s691_s15 }
  0x44   :  { %11 = sbr.rel (!%p9_p7) target bundleno = 3 (0x3), region = 58 }

// kernel: encoder_block_forward.4
= control target key start
LH: loop header
LB: loop body
LE: loop exit
PB: predicated region body
PF: predicated region fallthrough
CT: control target
= control target key end

     0   :  { %s2073_s21 = smov 0   ;;  %s2075_s22 = smov 0   ;;  %s2753_s0 = inlined_call_operand.vmem [shape: bf16[2,24,18,4], index: 0, kind: input, shape index: {}, may-alias: {0,1}]   ;;  %s2754_s1 = inlined_call_operand.vmem [shape: bf16[2,24,18,4], index: 1, kind: input, shape index: {}, may-alias: {0,1}]   ;;  %s2755_s2 = inlined_call_operand.vmem [shape: bf16[3,3,4,128], index: 2, kind: input, shape index: {}]   ;;  %s2756_s3 = inlined_call_operand.vmem [shape: f32[1,128], index: 3, kind: input, shape index: {}]   ;;  %s2757_s4 = inlined_call_operand.vmem [shape: f32[2,16,16,128], index: 4, kind: output, shape index: {0}]   ;;  %s2758_s5 = inlined_call_operand.vmem [shape: f32[2,1,128], index: 5, kind: output, shape index: {1}]   ;;  %s2759_s6 = inlined_call_operand.vmem [shape: f32[2,1,128], index: 6, kind: output, shape index: {2}]  }
   0x1   :  { %2760 = sst [smem:[#allocation3_spill]] %s2753_s0  ;;  %s2077_s23 = smov 0  }
   0x2   :  { %s2079_s24 = smov 0   ;;  %s2081_s25 = smov 0  }
   0x3 LB: > { %s26_s26 = sadd.s32 1, %s2027_s23  ;;  %s29_s27 = sadd.s32 1, %s2031_s24  ;;  %s2035_s25 = sphi %s2081_s25, %s17_s25   ;;  %s2031_s24 = sphi %s2079_s24, %s2771_s24   ;;  %s2027_s23 = sphi %s2077_s23, %s2770_s23   ;;  %s2023_s22 = sphi %s2075_s22, %s2769_s22   ;;  %s2019_s21 = sphi %s2073_s21, %s2768_s21  }
   0x4   : > { %p27_p0 = scmp.ge.s32.totalorder %s26_s26, 2  ;;  %p1795_p1 = scmp.ge.s32.totalorder %s2035_s25, 1 }
   0x5   : > { %p261_p2 = scmp.lt.s32.totalorder %s2035_s25, 5 }
   0x6   : > { %s2773_s26 = smov (%p27_p0, %s26_s26), 0  ;;  %s2775_s27 = smov (!%p27_p0, %s29_s27), %s2031_s24 }
   0x7   : > { %p262_p3 = pnand %p1795_p1, %p261_p2  ;;  %p31_p4 = scmp.ge.s32.totalorder %s2775_s27, 2 }
   0x8   : > { %s1796_s28 = sshll.u32 (!%p262_p3), %s2019_s21, 3  ;;  %p319_p5 = scmp.lt.s32.totalorder (!%p262_p3), %s2023_s22, 1 }
   0x9   : > { %s2777_s27 = smov (%p31_p4, %s2775_s27), 0  ;;  %265 = sbr.rel (%p262_p3) target bundleno = 496 (0x1f0), region = 36 }
   0xa   : > { %2761 = sst [smem:[#allocation2_spill]] %s2777_s27  ;;  %p321_p6 = scmp.lt.s32.totalorder (!%p262_p3), %s1796_s28, 23 }
   0xb   : > { %s1938_s29 = sadd.s32 (!%p262_p3), 8, %s1796_s28  ;;  %p345_p8 = scmp.lt.s32.totalorder (!%p262_p3), %s1796_s28, 15 }
   0xc   : > { %p333_p7 = scmp.lt.s32.totalorder (!%p262_p3), %s1938_s29, 23  ;;  %s2762_s0 = sld [smem:[#allocation3_spill]] (!%p262_p3) }
   0xd   : > { %p1804_p9 = scmp.ne.s32.totalorder (!%p262_p3), %s2019_s21, 0 }
   0xe   : > { %s2779_s22 = smov (!%p319_p5, %s2023_s22), 1  ;;  %s2781_s29 = smov (!%p333_p7, %s1938_s29), 23 }
   0xf   : > { %s322_s30 = scalar_select %p321_p6, %s1796_s28, 23 }
  0x10   : > { %s1953_s7 = smul.u32 72, %s2779_s22  ;;  %s2114_s17 = scalar_lea.vmem %s2758_s5, %s2779_s22 }
  0x11   : > { %s1952_s8 = smul.u32 3, %s322_s30  ;;  %s2119_s30 = scalar_lea.vmem %s2759_s6, %s2779_s22 }
  0x12   : > { %s1954_s11 = smul.u32 3, %s2781_s29  ;;  %s1802_s12 = sshll.u32 %s2779_s22, 5 }
  0x13   : > { %s325_s9 = sadd.s32 %s1953_s7, %s1952_s8  ;;  %s2783_s28 = smov (!%p345_p8, %s1796_s28), 15 }
  0x14   : > { %s1797_s10 = sshll.u32 %s325_s9, 2  ;;  %s337_s18 = sadd.s32 %s1954_s11, %s1953_s7 }
  0x15   : > { %s2109_s14 = scalar_lea.vmem %s2762_s0, %s1797_s10  ;;  %s1799_s8 = sshll.u32 %s337_s18, 2 }
  0x16   : > { %s2124_s29 = scalar_lea.vmem %s2754_s1, %s1799_s8  ;;  %s1801_s10 = sshll.u32 %s2783_s28, 1 }
  0x17   : > { %s349_s13 = sadd.s32 %s1802_s12, %s1801_s10  ;;  %363 = sbr.rel (%p1804_p9) target bundleno = 31 (0x1f), region = 40 }
  0x18   : > { %s1803_s0 = sshll.u32 %s349_s13, 3 }
  0x19   : > { %s2129_s7 = scalar_lea.vmem %s2757_s4, %s1803_s0 }
  0x1c   : > { %v2037_v0 = vmov 0.0  }
  0x1d   : > { %364 = vst [vmem:[%s2114_s17] sm:$0x1] %v2037_v0 }
  0x1e   : > { %365 = vst [vmem:[%s2119_s30] sm:$0x1] %v2037_v0 }
  0x1f PF: > { %v1805_v1 = vld [vmem:[%s2755_s2 + $0x2] sm:$0x3]  ;;  %vm643_vm0 = vcmask 1041408   ;;  %v2138_v2 = vld [vmem:[%s2109_s14 + $0x18] sm:$0xf]  ;;  %vm618_vm3 = vcmask 31744  }
  0x20   : > { %v645_v3 = vsel %vm643_vm0, %v1805_v1, 0  ;;  %v2142_v4 = vld [vmem:[%s2109_s14 + $0x1c] sm:$0xf]  ;;  %v2145_v5 = vld [vmem:[%s2109_s14 + $0x20] sm:$0x1]  ;;  %v449_v6 = vshrl.u32 %v2138_v2, 16 }
  0x21   : > { %1949 = vmatpush.bf16.msra.mxu1 %v645_v3  ;;  %1950 = vmatpush.bf16.msra.mxu2 %v645_v3  ;;  %vm397_vm1 = vsmask.f32 3328  ;;  %vm398_vm2 = vsmask.f32 7440  ;;  %v452_v7 = vshll.u32 %v2138_v2, 16  ;;  %v458_v8 = vshll.u32 %v2142_v4, 16 }
  0x22   : > { %1951 = vmatpush.bf16.msra.mxu3 %v645_v3  ;;  %654 = vmatpush.bf16.msra.mxu0 %v645_v3  ;;  %v451_v9 = vrot.slane %v449_v6, 4  ;;  %v462_v10 = vshrl.u32 %v2142_v4, 16  ;;  %v468_v11 = vshll.u32 %v2145_v5, 16  ;;  %v2153_v12 = vld [vmem:[%s2109_s14 + $0x30] sm:$0xf]  ;;  %vm2171_vm4 = vmor %vm397_vm1, %vm398_vm2  ;;  %vm820_vm5 = vcmask 1042432  }
  0x23   : > { %v454_v13 = vrot.slane %v452_v7, 5  ;;  %v460_v14 = vrot.slane %v458_v8, 5  ;;  %v2156_v15 = vld [vmem:[%s2109_s14 + $0x34] sm:$0xf]  ;;  %v2159_v16 = vld [vmem:[%s2109_s14 + $0x38] sm:$0x1] }
  0x24   : > { %v464_v17 = vrot.slane %v462_v10, 4  ;;  %v470_v18 = vrot.slane %v468_v11, 5  ;;  %v497_v19 = vshrl.u32 %v2153_v12, 16  ;;  %v500_v20 = vshll.u32 %v2153_v12, 16  ;;  %v2164_v21 = vld [vmem:[%s2109_s14 + $0x48] sm:$0xf] }
  0x25   : > { %v455_v22 = vor.u32 %v454_v13, %v451_v9  ;;  %v506_v23 = vshll.u32 %v2156_v15, 16  ;;  %v510_v24 = vshrl.u32 %v2156_v15, 16  ;;  %v516_v25 = vshll.u32 %v2159_v16, 16  ;;  %v2176_v30 = vld [vmem:[%s2109_s14 + $0x4c] sm:$0xf] }
  0x26   : > { %v465_v27 = vor.u32 %v464_v17, %v460_v14  ;;  %v499_v28 = vrot.slane %v497_v19, 4  ;;  %v502_v29 = vrot.slane %v500_v20, 5  ;;  %v545_v31 = vshrl.u32 %v2164_v21, 16  ;;  %v2183_v42 = vld [vmem:[%s2109_s14 + $0x50] sm:$0x1] }
  0x27   : > { %v456_v32 = vrot.slane %v455_v22, 4  ;;  %v508_v33 = vrot.slane %v506_v23, 5  ;;  %v512_v34 = vrot.slane %v510_v24, 4  ;;  %v518_v35 = vrot.slane %v516_v25, 5  ;;  %v1862_v45 = vld [vmem:[%s2755_s2 + $0x4] sm:$0x3] }
  0x28   : > { %v466_v36 = vrot.slane %v465_v27, 4  ;;  %v503_v37 = vor.u32 %v502_v29, %v499_v28  ;;  %v547_v38 = vrot.slane %v545_v31, 4  ;;  %v548_v39 = vshll.u32 %v2164_v21, 16  ;;  %v2193_v54 = vld [vmem:[%s2109_s14] sm:$0xf] }
  0x29   : > { %v461_v40 = vsel %vm2171_vm4, %v456_v32, %v460_v14  ;;  %v513_v41 = vor.u32 %v512_v34, %v508_v33  ;;  %v554_v43 = vshll.u32 %v2176_v30, 16  ;;  %v558_v44 = vshrl.u32 %v2176_v30, 16  ;;  %v2200_v59 = vld [vmem:[%s2109_s14 + $0x4] sm:$0xf]  ;;  %v2207_v0 = vld [vmem:[%s2109_s14 + $0x8] sm:$0x1] }
  0x2a   : > { %v471_v46 = vsel %vm2171_vm4, %v466_v36, %v470_v18  ;;  %v598_v47 = vunpack.c.l.b16 %v461_v40  ;;  %v504_v48 = vrot.slane %v503_v37, 4  ;;  %v550_v49 = vrot.slane %v548_v39, 5  ;;  %v1871_v8 = vld [vmem:[%s2755_s2 + $0x6] sm:$0x3]  ;;  %v396_v14 = vld [vmem:[%s2755_s2] sm:$0x3] }
  0x2b   : > { %v599_v50 = vunpack.c.l.b16 %v471_v46  ;;  %v514_v51 = vrot.slane %v513_v41, 4  ;;  %v556_v52 = vrot.slane %v554_v43, 5  ;;  %v560_v53 = vrot.slane %v558_v44, 4  ;;  %v1884_v22 = vld [vmem:[%s2755_s2 + $0x8] sm:$0x3] }
  0x2c   : > { %v509_v55 = vsel %vm2171_vm4, %v504_v48, %v508_v33  ;;  %v551_v56 = vor.u32 %v550_v49, %v547_v38  ;;  %v564_v57 = vshll.u32 %v2183_v42, 16  ;;  %v930_v58 = vsel %vm643_vm0, %v1862_v45, 0  ;;  %v2230_v23 = vld [vmem:[%s2109_s14 + $0x24] sm:$0xf]  ;;  %v2235_v29 = vld [vmem:[%s2109_s14 + $0x28] sm:$0xf] }
  0x2d   : > { %v2202_v60 = vpack.c.b16 %v599_v50, %v598_v47  ;;  %v519_v61 = vsel %vm2171_vm4, %v514_v51, %v518_v35  ;;  %v602_v62 = vunpack.c.l.b16 %v509_v55  ;;  %v561_v63 = vor.u32 %v560_v53, %v556_v52  ;;  %939 = vmatpush.bf16.msrb.mxu2 %v930_v58  ;;  %v2238_v31 = vld [vmem:[%s2109_s14 + $0x2c] sm:$0x1]  ;;  %v2244_v36 = vld [vmem:[%s2109_s14 + $0x3c] sm:$0xf]  ;;  %v2257_v50 = vld [vmem:[%s2109_s14 + $0x40] sm:$0xf] }
  0x2e   : > { %v603_v1 = vunpack.c.l.b16 %v519_v61  ;;  %v552_v3 = vrot.slane %v551_v56, 4  ;;  %v566_v6 = vrot.slane %v564_v57, 5  ;;  %v401_v7 = vshrl.u32 %v2193_v54, 16  ;;  %v2262_v55 = vld [vmem:[%s2109_s14 + $0x44] sm:$0x1] }
  0x2f   : > { %1808 = vmatmul.msk.bf16.vlgmr.msra.gmra.mxu1 %vm618_vm3, %v2202_v60  ;;  %v562_v9 = vrot.slane %v561_v63, 4  ;;  %v404_v10 = vshll.u32 %v2193_v54, 16  ;;  %v410_v11 = vshll.u32 %v2200_v59, 16  ;;  %v414_v13 = vshrl.u32 %v2200_v59, 16  ;;  %v2268_v63 = vld [vmem:[%s2109_s14 + $0x54] sm:$0xf] }
  0x30   : > { %v2221_v17 = vpack.c.b16 %v603_v1, %v602_v62  ;;  %v557_v18 = vsel %vm2171_vm4, %v552_v3, %v556_v52  ;;  %v403_v19 = vrot.slane %v401_v7, 4  ;;  %v420_v20 = vshll.u32 %v2207_v0, 16 }
  0x31   : > { %v567_v24 = vsel %vm2171_vm4, %v562_v9, %v566_v6  ;;  %v606_v25 = vunpack.c.l.b16 %v557_v18  ;;  %v406_v27 = vrot.slane %v404_v10, 5  ;;  %v412_v28 = vrot.slane %v410_v11, 5 }
  0x32   : > { %1810 = vmatmul.msk.bf16.vlgmr.msra.gmra.mxu2 %vm618_vm3, %v2221_v17  ;;  %v607_v32 = vunpack.c.l.b16 %v567_v24  ;;  %v416_v33 = vrot.slane %v414_v13, 4  ;;  %v422_v34 = vrot.slane %v420_v20, 5  ;;  %v828_v35 = vrot.slane %v2207_v0, 5 }
  0x33   : > { %v407_v37 = vor.u32 %v406_v27, %v403_v19  ;;  %v1008_v38 = vsel %vm643_vm0, %v1871_v8, 0  ;;  %v761_v39 = vsel %vm643_vm0, %v396_v14, 0  ;;  %v1108_v40 = vsel %vm643_vm0, %v1884_v22, 0  ;;  %v2277_v19 = vld [vmem:[%s2109_s14 + $0x58] sm:$0xf] }
  0x34   : > { %v2249_v41 = vpack.c.b16 %v607_v32, %v606_v25  ;;  %v417_v43 = vor.u32 %v416_v33, %v412_v28  ;;  %1017 = vmatpush.bf16.msrb.mxu3 %v1008_v38  ;;  %770 = vmatpush.bf16.msrb.mxu1 %v761_v39  ;;  %v473_v44 = vshrl.u32 %v2230_v23, 16  ;;  %v476_v45 = vshll.u32 %v2230_v23, 16  ;;  %v2286_v38 = vld [vmem:[%s2109_s14 + $0xc] sm:$0xf] }
  0x35   : > { %v408_v46 = vrot.slane %v407_v37, 4  ;;  %1117 = vmatpush.bf16.msrb.mxu0 %v1108_v40  ;;  %v482_v47 = vshll.u32 %v2235_v29, 16  ;;  %v486_v48 = vshrl.u32 %v2235_v29, 16  ;;  %v492_v49 = vshll.u32 %v2238_v31, 16 }
  0x36   : > { %1812 = vmatmul.msk.bf16.vlgmr.msra.gmra.mxu3 %vm618_vm3, %v2249_v41  ;;  %v418_v51 = vrot.slane %v417_v43, 4  ;;  %v475_v52 = vrot.slane %v473_v44, 4  ;;  %v478_v53 = vrot.slane %v476_v45, 5  ;;  %v521_v56 = vshrl.u32 %v2244_v36, 16 }
  0x37   : > { %v413_v57 = vsel %vm2171_vm4, %v408_v46, %v412_v28  ;;  %v484_v58 = vrot.slane %v482_v47, 5  ;;  %v488_v61 = vrot.slane %v486_v48, 4  ;;  %v494_v62 = vrot.slane %v492_v49, 5  ;;  %v2281_v28 = vld [vmem:[%s2109_s14 + $0x5c] sm:$0x1] }
  0x38   : > { %v423_v1 = vsel %vm2171_vm4, %v418_v51, %v422_v34  ;;  %v594_v3 = vunpack.c.l.b16 %v413_v57  ;;  %v479_v6 = vor.u32 %v478_v53, %v475_v52  ;;  %v523_v7 = vrot.slane %v521_v56, 4 }
  0x39   : > { %v595_v8 = vunpack.c.l.b16 %v423_v1  ;;  %v489_v9 = vor.u32 %v488_v61, %v484_v58  ;;  %v524_v10 = vshll.u32 %v2244_v36, 16  ;;  %v530_v11 = vshll.u32 %v2257_v50, 16 }
  0x3a   : > { %v480_v13 = vrot.slane %v479_v6, 4  ;;  %v534_v14 = vshrl.u32 %v2257_v50, 16  ;;  %v540_v18 = vshll.u32 %v2262_v55, 16  ;;  %v569_v20 = vshrl.u32 %v2268_v63, 16 }
  0x3b   : > { %v610_v22 = vpack.c.b16 %v595_v8, %v594_v3  ;;  %v490_v24 = vrot.slane %v489_v9, 4  ;;  %v526_v25 = vrot.slane %v524_v10, 5  ;;  %v532_v27 = vrot.slane %v530_v11, 5 }
  0x3c   : > { %v485_v32 = vsel %vm2171_vm4, %v480_v13, %v484_v58  ;;  %v536_v33 = vrot.slane %v534_v14, 4  ;;  %v542_v34 = vrot.slane %v540_v18, 5  ;;  %v571_v37 = vrot.slane %v569_v20, 4 }
  0x3d   : > { %1806 = vmatmul.msk.bf16.vlgmr.msra.gmra.mxu0 %vm618_vm3, %v610_v22  ;;  %v495_v39 = vsel %vm2171_vm4, %v490_v24, %v494_v62  ;;  %v600_v40 = vunpack.c.l.b16 %v485_v32  ;;  %v527_v43 = vor.u32 %v526_v25, %v523_v7  ;;  %v572_v44 = vshll.u32 %v2268_v63, 16  ;;  %v2299_v62 = vld [vmem:[%s2109_s14 + $0x10] sm:$0xf]  ;;  %v2304_v7 = vld [vmem:[%s2109_s14 + $0x14] sm:$0x1] }
  0x3e   : > { %v601_v45 = vunpack.c.l.b16 %v495_v39  ;;  %v537_v46 = vor.u32 %v536_v33, %v532_v27  ;;  %v578_v47 = vshll.u32 %v2277_v19, 16  ;;  %v582_v48 = vshrl.u32 %v2277_v19, 16  ;;  %v1903_v39 = vld [vmem:[%s2755_s2 + $0xc] sm:$0x3] }
  0x3f   : > { %v528_v49 = vrot.slane %v527_v43, 4  ;;  %v574_v51 = vrot.slane %v572_v44, 5  ;;  %v588_v52 = vshll.u32 %v2281_v28, 16  ;;  %v425_v53 = vshrl.u32 %v2286_v38, 16 }
  0x40   : > { %v2296_v56 = vpack.c.b16 %v601_v45, %v600_v40  ;;  %v538_v57 = vrot.slane %v537_v46, 4  ;;  %v580_v58 = vrot.slane %v578_v47, 5  ;;  %v584_v61 = vrot.slane %v582_v48, 4  ;;  %v1916_v40 = vld [vmem:[%s2755_s2 + $0xe] sm:$0x3] }
  0x41   : > { %v533_v1 = vsel %vm2171_vm4, %v528_v49, %v532_v27  ;;  %v575_v3 = vor.u32 %v574_v51, %v571_v37  ;;  %v590_v6 = vrot.slane %v588_v52, 5  ;;  %v427_v8 = vrot.slane %v425_v53, 4  ;;  %v1894_v47 = vld [vmem:[%s2755_s2 + $0xa] sm:$0x3]  ;;  %v1926_v48 = vld [vmem:[%s2755_s2 + $0x10] sm:$0x3] }
  0x42   : > { %1809 = vmatmul.msk.bf16.gmra.mxu1 %vm618_vm3, %v2296_v56  ;;  %v543_v9 = vsel %vm2171_vm4, %v538_v57, %v542_v34  ;;  %v604_v10 = vunpack.c.l.b16 %v533_v1  ;;  %v585_v11 = vor.u32 %v584_v61, %v580_v58  ;;  %v428_v13 = vshll.u32 %v2286_v38, 16 }
  0x43   : > { %v605_v14 = vunpack.c.l.b16 %v543_v9  ;;  %v576_v18 = vrot.slane %v575_v3, 4  ;;  %v434_v20 = vshll.u32 %v2299_v62, 16  ;;  %v438_v22 = vshrl.u32 %v2299_v62, 16 }
  0x44   : > { %v586_v24 = vrot.slane %v585_v11, 4  ;;  %v430_v25 = vrot.slane %v428_v13, 5  ;;  %v444_v27 = vshll.u32 %v2304_v7, 16  ;;  %vm821_vm6 = vcmask 1046532  }
  0x45   : > { %v2314_v32 = vpack.c.b16 %v605_v14, %v604_v10  ;;  %v581_v33 = vsel %vm2171_vm4, %v576_v18, %v580_v58  ;;  %v436_v34 = vrot.slane %v434_v20, 5  ;;  %v440_v37 = vrot.slane %v438_v22, 4  ;;  %vm2341_vm7 = vmor %vm820_vm5, %vm821_vm6  ;;  %v1939_v22 = vld [vmem:[%s2109_s14] sm:$0xff] }
  0x46   : > { %v591_v43 = vsel %vm2171_vm4, %v586_v24, %v590_v6  ;;  %v608_v44 = vunpack.c.l.b16 %v581_v33  ;;  %v431_v45 = vor.u32 %v430_v25, %v427_v8  ;;  %v446_v46 = vrot.slane %v444_v27, 5 }
  0x47   : > { %1811 = vmatmul.msk.bf16.gmra.mxu2 %vm618_vm3, %v2314_v32  ;;  %v609_v49 = vunpack.c.l.b16 %v591_v43  ;;  %v441_v51 = vor.u32 %v440_v37, %v436_v34  ;;  %v1854_v52 = vrot.slane %v2193_v54, 9  ;;  %v825_v57 = vrot.slane %v2200_v59, 5 }
  0x48   : > { %v432_v53 = vrot.slane %v431_v45, 4  ;;  %v1270_v58 = vsel %vm643_vm0, %v1903_v39, 0  ;;  %v1370_v61 = vsel %vm643_vm0, %v1916_v40, 0  ;;  %v1192_v54 = vsel %vm643_vm0, %v1894_v47, 0 }
  0x49   : > { %v2338_v1 = vpack.c.b16 %v609_v49, %v608_v44  ;;  %v442_v3 = vrot.slane %v441_v51, 4  ;;  %1279 = vmatpush.bf16.msra.mxu2 %v1270_v58  ;;  %1379 = vmatpush.bf16.msra.mxu3 %v1370_v61  ;;  %v1454_v8 = vsel %vm643_vm0, %v1926_v48, 0  ;;  %v827_v9 = vrot.slane %v825_v57, 4  ;;  %v1940_v44 = vld [vmem:[%s2109_s14 + $0xc] sm:$0xff] }
  0x4a   : > { %v437_v59 = vsel %vm2171_vm4, %v432_v53, %v436_v34  ;;  %1201 = vmatpush.bf16.msra.mxu1 %v1192_v54  ;;  %1463 = vmatpush.bf16.msra.mxu0 %v1454_v8  ;;  %v826_v14 = vsel %vm2341_vm7, %v1854_v52, %v825_v57  ;;  %v1856_v27 = vrot.slane %v2138_v2, 9  ;;  %v839_v33 = vrot.slane %v2142_v4, 5  ;;  %v2420_v8 = vld [vmem:[%s2109_s14 + $0x30] sm:$0xff] }
  0x4b   : > { %1813 = vmatmul.msk.bf16.gmra.mxu3 %vm618_vm3, %v2338_v1  ;;  %v447_v10 = vsel %vm2171_vm4, %v442_v3, %v446_v46  ;;  %v596_v11 = vunpack.c.l.b16 %v437_v59  ;;  %v829_v18 = vsel %vm2341_vm7, %v827_v9, %v828_v35  ;;  %v881_v24 = vunpack.c.l.b16 %v826_v14 }
  0x4c   : > { %v597_v13 = vunpack.c.l.b16 %v447_v10  ;;  %v882_v25 = vunpack.c.l.b16 %v829_v18  ;;  %v842_v34 = vrot.slane %v2145_v5, 5  ;;  %v832_v0 = vrot.slane %v2299_v62, 5  ;;  %v2440_v18 = vld [vmem:[%s2109_s14 + $0x3c] sm:$0xff] }
  0x4d   : > { %v840_v35 = vsel %vm2341_vm7, %v1856_v27, %v839_v33  ;;  %v841_v39 = vrot.slane %v839_v33, 4  ;;  %v1855_v2 = vrot.slane %v2286_v38, 9  ;;  %v835_v5 = vrot.slane %v2304_v7, 5 }
  0x4e   : > { %v611_v20 = vpack.c.b16 %v597_v13, %v596_v11  ;;  %v897_v37 = vpack.c.b16 %v882_v25, %v881_v24  ;;  %v885_v40 = vunpack.c.l.b16 %v840_v35  ;;  %v834_v4 = vrot.slane %v832_v0, 4 }
  0x4f   : > { %v843_v43 = vsel %vm2341_vm7, %v841_v39, %v842_v34  ;;  %v833_v62 = vsel %vm2341_vm7, %v1855_v2, %v832_v0  ;;  %v1857_v38 = vrot.slane %v2230_v23, 9  ;;  %v846_v7 = vrot.slane %v2235_v29, 5  ;;  %v2395_v23 = vld [vmem:[%s2109_s14 + $0x18] sm:$0xff]  ;;  %v2460_v34 = vld [vmem:[%s2109_s14 + $0x48] sm:$0xff] }
  0x50   : > { %1807 = vmatmul.msk.bf16.gmra.mxu0 %vm618_vm3, %v611_v20  ;;  %v886_v45 = vunpack.c.l.b16 %v843_v43  ;;  %v836_v47 = vsel %vm2341_vm7, %v834_v4, %v835_v5  ;;  %v883_v48 = vunpack.c.l.b16 %v833_v62  ;;  %v849_v51 = vrot.slane %v2238_v31, 5  ;;  %v2408_v31 = vld [vmem:[%s2109_s14 + $0x24] sm:$0xff] }
  0x51   : > { %v884_v49 = vunpack.c.l.b16 %v836_v47  ;;  %v847_v53 = vsel %vm2341_vm7, %v1857_v38, %v846_v7  ;;  %v848_v57 = vrot.slane %v846_v7, 4  ;;  %v853_v54 = vrot.slane %v2156_v15, 5  ;;  %v2496_v38 = vld [vmem:[%s2109_s14 + $0x54] sm:$0xff] }
  0x52   : > { %1846 = vmatmul.msk.bf16.vlgmr.msrb.gmra.mxu1 %vm618_vm3, %v1939_v22  ;;  %v2374_v46 = vpack.c.b16 %v886_v45, %v885_v40  ;;  %v887_v58 = vunpack.c.l.b16 %v847_v53  ;;  %v1858_v59 = vrot.slane %v2153_v12, 9  ;;  %v856_v10 = vrot.slane %v2159_v16, 5 }
  0x53   : > { %v2386_v52 = vpack.c.b16 %v884_v49, %v883_v48  ;;  %v850_v61 = vsel %vm2341_vm7, %v848_v57, %v849_v51  ;;  %v855_v9 = vrot.slane %v853_v54, 4  ;;  %v860_v16 = vrot.slane %v2257_v50, 5 }
  0x54   : > { %v888_v3 = vunpack.c.l.b16 %v850_v61  ;;  %v854_v11 = vsel %vm2341_vm7, %v1858_v59, %v853_v54  ;;  %v863_v24 = vrot.slane %v2262_v55, 5  ;;  %v867_v55 = vrot.slane %v2176_v30, 5  ;;  %v2503_v59 = vld [vmem:[%s2124_s29 + $0x8] sm:$0x1] }
  0x55   : > { %v857_v15 = vsel %vm2341_vm7, %v855_v9, %v856_v10  ;;  %v889_v13 = vunpack.c.l.b16 %v854_v11  ;;  %v862_v22 = vrot.slane %v860_v16, 4  ;;  %v870_v35 = vrot.slane %v2183_v42, 5  ;;  %v2480_v42 = vld [vmem:[%s2124_s29 + $0x4] sm:$0xf] }
  0x56   : > { %v2397_v29 = vpack.c.b16 %v888_v3, %v887_v58  ;;  %v890_v14 = vunpack.c.l.b16 %v857_v15  ;;  %v869_v0 = vrot.slane %v867_v55, 4  ;;  %v874_v2 = vrot.slane %v2277_v19, 5 }
  0x57   : > { %1863 = vmatmul.msk.bf16.vlgmr.msrb.gmra.mxu2 %vm618_vm3, %v897_v37  ;;  %v864_v50 = vsel %vm2341_vm7, %v862_v22, %v863_v24  ;;  %v1860_v37 = vrot.slane %v2164_v21, 9  ;;  %v2477_v21 = vld [vmem:[%s2124_s29] sm:$0xf]  ;;  %v1085_v47 = vshll.u32 %v2480_v42, 16  ;;  %v1089_v48 = vshrl.u32 %v2480_v42, 16 }
  0x58   : > { %v2434_v12 = vpack.c.b16 %v890_v14, %v889_v13  ;;  %v892_v33 = vunpack.c.l.b16 %v864_v50  ;;  %v871_v30 = vsel %vm2341_vm7, %v869_v0, %v870_v35  ;;  %v1076_v5 = vshrl.u32 %v2477_v21, 16 }
  0x59   : > { %v868_v40 = vsel %vm2341_vm7, %v1860_v37, %v867_v55  ;;  %v1079_v62 = vshll.u32 %v2477_v21, 16  ;;  %v1861_v19 = vrot.slane %v2268_v63, 9  ;;  %v876_v7 = vrot.slane %v874_v2, 4  ;;  %v2531_v37 = vld [vmem:[%s2124_s29] sm:$0xff] }
  0x5a   : > { %v893_v43 = vunpack.c.l.b16 %v868_v40  ;;  %v877_v51 = vrot.slane %v2281_v28, 5  ;;  %v1078_v53 = vrot.slane %v1076_v5, 4  ;;  %v1087_v58 = vrot.slane %v1085_v47, 5 }
  0x5b   : > { %1876 = vmatmul.msk.bf16.vlgmr.msrb.gmra.mxu3 %vm618_vm3, %v1940_v44  ;;  %v1081_v57 = vrot.slane %v1079_v62, 5  ;;  %v1091_v61 = vrot.slane %v1089_v48, 4  ;;  %v875_v9 = vsel %vm2341_vm7, %v1861_v19, %v874_v2  ;;  %v1095_v11 = vshll.u32 %v2503_v59, 16 }
  0x5c   : > { %v878_v63 = vsel %vm2341_vm7, %v876_v7, %v877_v51  ;;  %v895_v13 = vunpack.c.l.b16 %v875_v9 }
  0x5d   : > { %v1082_v10 = vor.u32 %v1081_v57, %v1078_v53  ;;  %v1092_v28 = vor.u32 %v1091_v61, %v1087_v58  ;;  %v896_v14 = vunpack.c.l.b16 %v878_v63  ;;  %v1097_v24 = vrot.slane %v1095_v11, 5 }
  0x5f   : > { %v1093_v22 = vrot.slane %v1092_v28, 4  ;;  %v2520_v50 = vpack.c.b16 %v896_v14, %v895_v13 }
  0x60   : > { %1885 = vmatmul.msk.bf16.vlgmr.msrb.gmra.mxu0 %vm618_vm3, %v611_v20  ;;  %v1859_v20 = vrot.slane %v2244_v36, 9 }
  0x61   : > { %v1098_v55 = vsel %vm2171_vm4, %v1093_v22, %v1097_v24 }
  0x62   : > { %1847 = vmatmul.msk.bf16.gmra.mxu1 %vm618_vm3, %v1940_v44  ;;  %v861_v25 = vsel %vm2341_vm7, %v1859_v20, %v860_v16  ;;  %v894_v44 = vunpack.c.l.b16 %v871_v30  ;;  %v1083_v20 = vrot.slane %v1082_v10, 4  ;;  %v1102_v40 = vunpack.c.l.b16 %v1098_v55 }
  0x63   : > { %v891_v27 = vunpack.c.l.b16 %v861_v25 }
  0x64   : > { %v2482_v45 = vpack.c.b16 %v894_v44, %v893_v43 }
  0x65   : > { %v2454_v36 = vpack.c.b16 %v892_v33, %v891_v27  ;;  %v1088_v33 = vsel %vm2171_vm4, %v1083_v20, %v1087_v58 }
  0x66   : > { %v1101_v35 = vunpack.c.l.b16 %v1088_v33 }
  0x67   : > { %1864 = vmatmul.msk.bf16.gmra.mxu2 %vm618_vm3, %v2386_v52 }
  0x68   : > { %v2539_v43 = vpack.c.b16 %v1102_v40, %v1101_v35 }
  0x6b   : > { %1877 = vmatmul.msk.bf16.gmra.mxu3 %vm618_vm3, %v2395_v23 }
  0x70   : > { %1886 = vmatmul.msk.bf16.gmra.mxu0 %vm618_vm3, %v2202_v60 }
  0x72   : > { %1848 = vmatmul.msk.bf16.gmra.mxu1 %vm618_vm3, %v2395_v23 }
  0x77   : > { %1865 = vmatmul.msk.bf16.gmra.mxu2 %vm618_vm3, %v2374_v46 }
  0x7b   : > { %1878 = vmatmul.msk.bf16.gmra.mxu3 %vm618_vm3, %v2408_v31 }
  0x80   : > { %1887 = vmatmul.msk.bf16.gmra.mxu0 %vm618_vm3, %v2296_v56 }
  0x82   : > { %1849 = vmatmul.msk.bf16.gmra.mxu1 %vm618_vm3, %v2408_v31 }
  0x87   : > { %1866 = vmatmul.msk.bf16.gmra.mxu2 %vm618_vm3, %v2397_v29 }
  0x8b   : > { %1879 = vmatmul.msk.bf16.gmra.mxu3 %vm618_vm3, %v2420_v8 }
  0x90   : > { %1888 = vmatmul.msk.bf16.gmra.mxu0 %vm618_vm3, %v2221_v17 }
  0x92   : > { %1850 = vmatmul.msk.bf16.gmra.mxu1 %vm618_vm3, %v2420_v8 }
  0x97   : > { %1867 = vmatmul.msk.bf16.gmra.mxu2 %vm618_vm3, %v2434_v12 }
  0x9b   : > { %1880 = vmatmul.msk.bf16.gmra.mxu3 %vm618_vm3, %v2440_v18 }
  0xa0   : > { %1889 = vmatmul.msk.bf16.gmra.mxu0 %vm618_vm3, %v2314_v32 }
  0xa2   : > { %1851 = vmatmul.msk.bf16.gmra.mxu1 %vm618_vm3, %v2440_v18 }
  0xa7   : > { %1868 = vmatmul.msk.bf16.gmra.mxu2 %vm618_vm3, %v2454_v36 }
  0xab   : > { %1881 = vmatmul.msk.bf16.gmra.mxu3 %vm618_vm3, %v2460_v34 }
  0xac   : > { %v2466_v39 = vpop.f32.mrf.mxu1 }
  0xb0   : > { %1890 = vmatmul.msk.bf16.gmra.mxu0 %vm618_vm3, %v2249_v41 }
  0xb2   : > { %1852 = vmatmul.msk.bf16.gmra.mxu1 %vm618_vm3, %v2460_v34 }
  0xb4   : > { %v2485_v4 = vpop.f32.mrf.mxu1 }
  0xb5   : > { %v2491_v49 = vpop.f32.mrf.mxu2 }
  0xb7   : > { %1869 = vmatmul.msk.bf16.gmra.mxu2 %vm618_vm3, %v2482_v45 }
  0xb9   : > { %v2500_v54 = vpop.f32.mrf.mxu3 }
  0xba   : > { %v656_v3 = vpop.f32.mrf.mxu0 }
  0xbb   : > { %1882 = vmatmul.msk.bf16.gmra.mxu3 %vm618_vm3, %v2496_v38 }
  0xbd   : > { %v2516_v16 = vpop.f32.mrf.mxu2 }
  0xbf   : > { %v2512_v15 = vpop.f32.mrf.mxu1 }
  0xc0   : > { %1891 = vmatmul.msk.bf16.gmra.mxu0 %vm618_vm3, %v2338_v1 }
  0xc1   : > { %v2522_v27 = vpop.f32.mrf.mxu3 }
  0xc2   : > { %1853 = vmatmul.msk.bf16.gmra.mxu1 %vm618_vm3, %v2496_v38  ;;  %v658_v25 = vpop.f32.mrf.mxu0 }
  0xc7   : > { %1870 = vmatmul.msk.bf16.gmra.mxu2 %vm618_vm3, %v2520_v50  ;;  %v2533_v0 = vpop.f32.mrf.mxu1 }
  0xca   : > { %v2535_v30 = vpop.f32.mrf.mxu2 }
  0xcb   : > { %1883 = vmatmul.msk.bf16.gmra.mxu3 %vm618_vm3, %v2531_v37 }
  0xcd   : > { %v661_v44 = vpop.f32.mrf.mxu0 }
  0xce   : > { %v2541_v2 = vpop.f32.mrf.mxu3 }
  0xcf   : > { %v772_v5 = vpop.f32.mrf.mxu1 }
  0xd0   : > { %1892 = vmatmul.msk.bf16.gmra.mxu0 %vm618_vm3, %v2539_v43  ;;  %v773_v62 = vadd.f32 %v772_v5, %v656_v3 }
  0xd2   : > { %v2545_v47 = vpop.f32.mrf.mxu2  ;;  %1895 = vmatmul.msk.bf16.vlgmr.msra.gmra.mxu1 %vm618_vm3, %v2386_v52 }
  0xd5   : > { %v663_v48 = vpop.f32.mrf.mxu0 }
  0xd6   : > { %v2549_v19 = vpop.f32.mrf.mxu3 }
  0xd7   : > { %1908 = vmatmul.msk.bf16.vlgmr.msra.gmra.mxu2 %vm618_vm3, %v2395_v23  ;;  %v774_v7 = vpop.f32.mrf.mxu1 }
  0xd8   : > { %v775_v51 = vadd.f32 %v774_v7, %v658_v25 }
  0xda   : > { %v941_v53 = vpop.f32.mrf.mxu2 }
  0xdb   : > { %1917 = vmatmul.msk.bf16.vlgmr.msra.gmra.mxu3 %vm618_vm3, %v2202_v60  ;;  %v981_v57 = vadd.f32 %v941_v53, %v773_v62 }
  0xdd   : > { %v1119_v58 = vpop.f32.mrf.mxu0 }
  0xde   : > { %v1019_v61 = vpop.f32.mrf.mxu3 }
  0xdf   : > { %v1059_v3 = vadd.f32 %v1019_v61, %v981_v57  ;;  %v777_v9 = vpop.f32.mrf.mxu1 }
  0xe0   : > { %1927 = vmatmul.msk.bf16.vlgmr.msra.gmra.mxu0 %vm618_vm3, %v2374_v46  ;;  %v778_v52 = vadd.f32 %v777_v9, %v661_v44 }
  0xe1   : > { %v2557_v63 = vadd.f32 %v1119_v58, %v1059_v3 }
  0xe2   : > { %v943_v10 = vpop.f32.mrf.mxu2  ;;  %1896 = vmatmul.msk.bf16.gmra.mxu1 %vm618_vm3, %v2374_v46 }
  0xe3   : > { %v982_v23 = vadd.f32 %v943_v10, %v775_v51 }
  0xe5   : > { %v1121_v28 = vpop.f32.mrf.mxu0 }
  0xe6   : > { %v1021_v11 = vpop.f32.mrf.mxu3 }
  0xe7   : > { %v1060_v13 = vadd.f32 %v1021_v11, %v982_v23  ;;  %1909 = vmatmul.msk.bf16.gmra.mxu2 %vm618_vm3, %v2408_v31  ;;  %v779_v60 = vpop.f32.mrf.mxu1 }
  0xe8   : > { %v780_v14 = vadd.f32 %v779_v60, %v663_v48 }
  0xe9   : > { %v2563_v20 = vadd.f32 %v1121_v28, %v1060_v13 }
  0xea   : > { %v946_v22 = vpop.f32.mrf.mxu2 }
  0xeb   : > { %1918 = vmatmul.msk.bf16.gmra.mxu3 %vm618_vm3, %v2296_v56  ;;  %v983_v24 = vadd.f32 %v946_v22, %v778_v52 }
  0xed   : > { %v1124_v25 = vpop.f32.mrf.mxu0 }
  0xee   : > { %v1024_v33 = vpop.f32.mrf.mxu3 }
  0xef   : > { %v1061_v55 = vadd.f32 %v1024_v33, %v983_v24  ;;  %v782_v46 = vpop.f32.mrf.mxu1 }
  0xf0   : > { %1928 = vmatmul.msk.bf16.gmra.mxu0 %vm618_vm3, %v2397_v29  ;;  %v783_v35 = vadd.f32 %v782_v46, %v2466_v39 }
  0xf1   : > { %v2570_v40 = vadd.f32 %v1124_v25, %v1061_v55 }
  0xf2   : > { %v948_v31 = vpop.f32.mrf.mxu2  ;;  %1897 = vmatmul.msk.bf16.gmra.mxu1 %vm618_vm3, %v2397_v29 }
  0xf3   : > { %v984_v44 = vadd.f32 %v948_v31, %v780_v14 }
  0xf5   : > { %v1126_v5 = vpop.f32.mrf.mxu0 }
  0xf6   : > { %v1026_v62 = vpop.f32.mrf.mxu3 }
  0xf7   : > { %v1062_v56 = vadd.f32 %v1026_v62, %v984_v44  ;;  %1910 = vmatmul.msk.bf16.gmra.mxu2 %vm618_vm3, %v2420_v8  ;;  %v784_v48 = vpop.f32.mrf.mxu1 }
  0xf8   : > { %v785_v7 = vadd.f32 %v784_v48, %v2485_v4 }
  0xf9   : > { %v2577_v51 = vadd.f32 %v1126_v5, %v1062_v56 }
  0xfa   : > { %v951_v53 = vpop.f32.mrf.mxu2 }
  0xfb   : > { %1919 = vmatmul.msk.bf16.gmra.mxu3 %vm618_vm3, %v2221_v17  ;;  %v985_v39 = vadd.f32 %v951_v53, %v783_v35 }
  0xfd   : > { %v1129_v57 = vpop.f32.mrf.mxu0 }
  0xfe   : > { %v1029_v58 = vpop.f32.mrf.mxu3 }
  0xff   : > { %v1063_v29 = vadd.f32 %v1029_v58, %v985_v39  ;;  %v787_v61 = vpop.f32.mrf.mxu1 }
 0x100   : > { %1929 = vmatmul.msk.bf16.gmra.mxu0 %vm618_vm3, %v2434_v12  ;;  %v788_v3 = vadd.f32 %v787_v61, %v2512_v15 }
 0x101   : > { %v2584_v8 = vadd.f32 %v1129_v57, %v1063_v29 }
 0x102   : > { %v953_v9 = vpop.f32.mrf.mxu2  ;;  %1898 = vmatmul.msk.bf16.gmra.mxu1 %vm618_vm3, %v2434_v12 }
 0x103   : > { %v986_v4 = vadd.f32 %v953_v9, %v785_v7  ;;  %v2624_v9 = vld [vmem:[%s2124_s29 + $0xc] sm:$0xf] }
 0x105   : > { %v1131_v52 = vpop.f32.mrf.mxu0 }
 0x106   : > { %v1031_v10 = vpop.f32.mrf.mxu3 }
 0x107   : > { %v1064_v17 = vadd.f32 %v1031_v10, %v986_v4  ;;  %1911 = vmatmul.msk.bf16.gmra.mxu2 %vm618_vm3, %v2440_v18  ;;  %v789_v23 = vpop.f32.mrf.mxu1  ;;  %v2627_v4 = vld [vmem:[%s2124_s29 + $0x10] sm:$0xf] }
 0x108   : > { %v790_v28 = vadd.f32 %v789_v23, %v2533_v0  ;;  %v1347_v23 = vshll.u32 %v2627_v4, 16 }
 0x109   : > { %v2591_v11 = vadd.f32 %v1131_v52, %v1064_v17  ;;  %v1893_v17 = vrot.slane %v2477_v21, 9 }
 0x10a   : > { %v956_v13 = vpop.f32.mrf.mxu2 }
 0x10b   : > { %1920 = vmatmul.msk.bf16.gmra.mxu3 %vm618_vm3, %v2314_v32  ;;  %v987_v15 = vadd.f32 %v956_v13, %v788_v3  ;;  %v1178_v3 = vrot.slane %v2480_v42, 5  ;;  %v1351_v42 = vshrl.u32 %v2627_v4, 16 }
 0x10d   : > { %v1134_v60 = vpop.f32.mrf.mxu0 }
 0x10e   : > { %v1034_v14 = vpop.f32.mrf.mxu3 }
 0x10f   : > { %v1065_v12 = vadd.f32 %v1034_v14, %v987_v15  ;;  %v792_v22 = vpop.f32.mrf.mxu1  ;;  %v1180_v15 = vrot.slane %v1178_v3, 4 }
 0x110   : > { %1930 = vmatmul.msk.bf16.gmra.mxu0 %vm618_vm3, %v2454_v36  ;;  %v793_v46 = vadd.f32 %v792_v22, %v2491_v49 }
 0x111   : > { %v2597_v24 = vadd.f32 %v1134_v60, %v1065_v12  ;;  %v1179_v12 = vsel %vm2341_vm7, %v1893_v17, %v1178_v3 }
 0x112   : > { %v958_v18 = vpop.f32.mrf.mxu2  ;;  %1899 = vmatmul.msk.bf16.gmra.mxu1 %vm618_vm3, %v2454_v36 }
 0x113   : > { %v988_v0 = vadd.f32 %v958_v18, %v790_v28  ;;  %v1181_v28 = vrot.slane %v2503_v59, 5 }
 0x115   : > { %v1136_v25 = vpop.f32.mrf.mxu0  ;;  %v1182_v59 = vsel %vm2341_vm7, %v1180_v15, %v1181_v28 }
 0x116   : > { %v1036_v33 = vpop.f32.mrf.mxu3 }
 0x117   : > { %v1066_v55 = vadd.f32 %v1036_v33, %v988_v0  ;;  %1912 = vmatmul.msk.bf16.gmra.mxu2 %vm618_vm3, %v2460_v34  ;;  %v794_v32 = vpop.f32.mrf.mxu1  ;;  %v1349_v0 = vrot.slane %v1347_v23, 5 }
 0x118   : > { %v795_v48 = vadd.f32 %v794_v32, %v2516_v16 }
 0x119   : > { %v2604_v35 = vadd.f32 %v1136_v25, %v1066_v55  ;;  %v1353_v25 = vrot.slane %v1351_v42, 4 }
 0x11a   : > { %v961_v31 = vpop.f32.mrf.mxu2 }
 0x11b   : > { %1921 = vmatmul.msk.bf16.gmra.mxu3 %vm618_vm3, %v2249_v41  ;;  %v989_v44 = vadd.f32 %v961_v31, %v793_v46  ;;  %v1185_v46 = vunpack.c.l.b16 %v1179_v12  ;;  %v1186_v31 = vunpack.c.l.b16 %v1182_v59 }
 0x11d   : > { %v1139_v5 = vpop.f32.mrf.mxu0 }
 0x11e   : > { %v1039_v62 = vpop.f32.mrf.mxu3 }
 0x11f   : > { %v1067_v36 = vadd.f32 %v1039_v62, %v989_v44  ;;  %v797_v56 = vpop.f32.mrf.mxu1 }
 0x120   : > { %1931 = vmatmul.msk.bf16.gmra.mxu0 %vm618_vm3, %v2482_v45  ;;  %v798_v58 = vadd.f32 %v797_v56, %v2535_v30  ;;  %v1338_v30 = vshrl.u32 %v2624_v9, 16 }
 0x121   : > { %v2613_v49 = vadd.f32 %v1139_v5, %v1067_v36  ;;  %v1354_v5 = vor.u32 %v1353_v25, %v1349_v0 }
 0x122   : > { %v963_v34 = vpop.f32.mrf.mxu2  ;;  %1900 = vmatmul.msk.bf16.gmra.mxu1 %vm618_vm3, %v2482_v45  ;;  %v1340_v22 = vrot.slane %v1338_v30, 4  ;;  %v1948_v30 = vld [vmem:[%s2124_s29 + $0xc] sm:$0xff] }
 0x123   : > { %v990_v7 = vadd.f32 %v963_v34, %v795_v48 }
 0x125   : > { %v1141_v41 = vpop.f32.mrf.mxu0 }
 0x126   : > { %v1041_v53 = vpop.f32.mrf.mxu3 }
 0x127   : > { %v1068_v39 = vadd.f32 %v1041_v53, %v990_v7  ;;  %1913 = vmatmul.msk.bf16.gmra.mxu2 %vm618_vm3, %v2496_v38  ;;  %v799_v57 = vpop.f32.mrf.mxu1  ;;  %v1187_v7 = vpack.c.b16 %v1186_v31, %v1185_v46  ;;  %v1355_v53 = vrot.slane %v1354_v5, 4 }
 0x128   : > { %v800_v13 = vadd.f32 %v799_v57, %v2545_v47  ;;  %v395_v47 = vld [vmem:[%s2124_s29 + $0x14] sm:$0x1]  ;;  %v1440_v57 = vrot.slane %v2627_v4, 5 }
 0x129   : > { %v2618_v16 = vadd.f32 %v1141_v41, %v1068_v39  ;;  %v1357_v62 = vshll.u32 %v395_v47, 16 }
 0x12a   : > { %v966_v29 = vpop.f32.mrf.mxu2 }
 0x12b   : > { %1922 = vmatmul.msk.bf16.gmra.mxu3 %vm618_vm3, %v2338_v1  ;;  %v991_v45 = vadd.f32 %v966_v29, %v798_v58  ;;  %v1341_v1 = vshll.u32 %v2624_v9, 16  ;;  %v1359_v39 = vrot.slane %v1357_v62, 5 }
 0x12d   : > { %v1144_v61 = vpop.f32.mrf.mxu0  ;;  %v1343_v18 = vrot.slane %v1341_v1, 5 }
 0x12e   : > { %v1044_v52 = vpop.f32.mrf.mxu3 }
 0x12f   : > { %v1069_v10 = vadd.f32 %v1044_v52, %v991_v45  ;;  %v802_v38 = vpop.f32.mrf.mxu1  ;;  %v1344_v44 = vor.u32 %v1343_v18, %v1340_v22  ;;  %v1442_v52 = vrot.slane %v1440_v57, 4 }
 0x130   : > { %1932 = vmatmul.msk.bf16.gmra.mxu0 %vm618_vm3, %v2520_v50  ;;  %v803_v36 = vadd.f32 %v802_v38, %v2500_v54 }
 0x131   : > { %v2638_v60 = vadd.f32 %v1144_v61, %v1069_v10  ;;  %v1345_v41 = vrot.slane %v1344_v44, 4  ;;  %v1925_v61 = vrot.slane %v2624_v9, 9  ;;  %v1443_v10 = vrot.slane %v395_v47, 5 }
 0x132   : > { %v968_v21 = vpop.f32.mrf.mxu2  ;;  %1901 = vmatmul.msk.bf16.gmra.mxu1 %vm618_vm3, %v2520_v50 }
 0x133   : > { %v992_v14 = vadd.f32 %v968_v21, %v800_v13  ;;  %v1350_v54 = vsel %vm2171_vm4, %v1345_v41, %v1349_v0  ;;  %v1441_v26 = vsel %vm2341_vm7, %v1925_v61, %v1440_v57  ;;  %v1444_v9 = vsel %vm2341_vm7, %v1442_v52, %v1443_v10 }
 0x134   : > { %v1363_v1 = vunpack.c.l.b16 %v1350_v54  ;;  %v1447_v21 = vunpack.c.l.b16 %v1441_v26 }
 0x135   : > { %v1146_v33 = vpop.f32.mrf.mxu0 }
 0x136   : > { %v1046_v55 = vpop.f32.mrf.mxu3 }
 0x137   : > { %v1070_v32 = vadd.f32 %v1046_v55, %v992_v14  ;;  %1914 = vmatmul.msk.bf16.gmra.mxu2 %vm618_vm3, %v2531_v37  ;;  %v804_v50 = vpop.f32.mrf.mxu1  ;;  %v1448_v14 = vunpack.c.l.b16 %v1444_v9 }
 0x138   : > { %v805_v3 = vadd.f32 %v804_v50, %v2522_v27 }
 0x139   : > { %v2650_v56 = vadd.f32 %v1146_v33, %v1070_v32  ;;  %v1449_v25 = vpack.c.b16 %v1448_v14, %v1447_v21 }
 0x13a   : > { %v971_v48 = vpop.f32.mrf.mxu2 }
 0x13b   : > { %1923 = vmatmul.msk.bf16.gmra.mxu3 %vm618_vm3, %v2539_v43  ;;  %v993_v34 = vadd.f32 %v971_v48, %v803_v36  ;;  %v1360_v43 = vsel %vm2171_vm4, %v1355_v53, %v1359_v39 }
 0x13c   : > { %v1364_v23 = vunpack.c.l.b16 %v1360_v43 }
 0x13d   : > { %v1149_v37 = vpop.f32.mrf.mxu0 }
 0x13e   : > { %v1049_v58 = vpop.f32.mrf.mxu3  ;;  %v1365_v13 = vpack.c.b16 %v1364_v23, %v1363_v1 }
 0x13f   : > { %v1071_v29 = vadd.f32 %v1049_v58, %v993_v34  ;;  %v807_v45 = vpop.f32.mrf.mxu1 }
 0x140   : > { %1933 = vmatmul.msk.bf16.gmra.mxu0 %vm618_vm3, %v1187_v7  ;;  %v808_v12 = vadd.f32 %v807_v45, %v2541_v2 }
 0x141   : > { %v2662_v38 = vadd.f32 %v1149_v37, %v1071_v29 }
 0x142   : > { %v973_v4 = vpop.f32.mrf.mxu2  ;;  %1902 = vmatmul.msk.bf16.gmra.mxu1 %vm618_vm3, %v1187_v7 }
 0x143   : > { %v994_v17 = vadd.f32 %v973_v4, %v805_v3 }
 0x145   : > { %v1151_v42 = vpop.f32.mrf.mxu0 }
 0x146   : > { %v1051_v28 = vpop.f32.mrf.mxu3 }
 0x147   : > { %v1072_v27 = vadd.f32 %v1051_v28, %v994_v17  ;;  %1915 = vmatmul.msk.bf16.gmra.mxu2 %vm618_vm3, %v1948_v30  ;;  %v809_v15 = vpop.f32.mrf.mxu1 }
 0x148   : > { %v810_v55 = vadd.f32 %v809_v15, %v2549_v19  ;;  %v2685_v19 = vld [vmem:[%s2756_s3] ss:$0 sm:$0xff] }
 0x149   : > { %v2672_v22 = vadd.f32 %v1151_v42, %v1072_v27 }
 0x14a   : > { %v976_v18 = vpop.f32.mrf.mxu2 }
 0x14b   : > { %1924 = vmatmul.msk.bf16.gmra.mxu3 %vm618_vm3, %v1365_v13  ;;  %v995_v0 = vadd.f32 %v976_v18, %v808_v12 }
 0x14d   : > { %v1154_v33 = vpop.f32.mrf.mxu0 }
 0x14e   : > { %v1054_v6 = vpop.f32.mrf.mxu3 }
 0x14f   : > { %v1073_v59 = vadd.f32 %v1054_v6, %v995_v0  ;;  %v1203_v47 = vpop.f32.mrf.mxu1 }
 0x150   : > { %1934 = vmatmul.msk.bf16.gmra.mxu0 %vm618_vm3, %v1449_v25  ;;  %v1243_v62 = vadd.f32 %v1203_v47, %v2557_v63 }
 0x151   : > { %v2677_v32 = vadd.f32 %v1154_v33, %v1073_v59 }
 0x152   : > { %v978_v46 = vpop.f32.mrf.mxu2 }
 0x153   : > { %v996_v50 = vadd.f32 %v978_v46, %v810_v55 }
 0x155   : > { %v1156_v2 = vpop.f32.mrf.mxu0 }
 0x156   : > { %v1056_v31 = vpop.f32.mrf.mxu3 }
 0x157   : > { %v1074_v44 = vadd.f32 %v1056_v31, %v996_v50  ;;  %v1205_v5 = vpop.f32.mrf.mxu1 }
 0x158   : > { %v1244_v57 = vadd.f32 %v1205_v5, %v2563_v20 }
 0x159   : > { %v2680_v36 = vadd.f32 %v1156_v2, %v1074_v44 }
 0x15a   : > { %v1281_v48 = vpop.f32.mrf.mxu2 }
 0x15b   : > { %v1321_v34 = vadd.f32 %v1281_v48, %v1243_v62 }
 0x15d   : > { %v1465_v7 = vpop.f32.mrf.mxu0 }
 0x15e   : > { %v1381_v41 = vpop.f32.mrf.mxu3 }
 0x15f   : > { %v1421_v53 = vadd.f32 %v1381_v41, %v1321_v34  ;;  %v1208_v39 = vpop.f32.mrf.mxu1 }
 0x160   : > { %v1245_v52 = vadd.f32 %v1208_v39, %v2570_v40 }
 0x161   : > { %v1505_v37 = vadd.f32 %v1465_v7, %v1421_v53 }
 0x162   : > { %v1283_v58 = vpop.f32.mrf.mxu2 }
 0x163   : > { %v1525_v63 = vadd.f32 %v2685_v19, %v1505_v37  ;;  %v1322_v29 = vadd.f32 %v1283_v58, %v1244_v57 }
 0x165   : > { %1541 = vst [vmem:[%s2129_s7] sm:$0xff] %v1525_v63  ;;  %v1467_v45 = vpop.f32.mrf.mxu0  ;;  %v1582_v30 = vmul.f32 %v1525_v63, %v1525_v63 }
 0x166   : > { %v1383_v54 = vpop.f32.mrf.mxu3 }
 0x167   : > { %v1422_v43 = vadd.f32 %v1383_v54, %v1322_v29  ;;  %v1210_v61 = vpop.f32.mrf.mxu1 }
 0x168   : > { %v1246_v13 = vadd.f32 %v1210_v61, %v2577_v51 }
 0x169   : > { %v1506_v3 = vadd.f32 %v1467_v45, %v1422_v43 }
 0x16a   : > { %v1286_v10 = vpop.f32.mrf.mxu2 }
 0x16b   : > { %v1526_v4 = vadd.f32 %v2685_v19, %v1506_v3  ;;  %v1323_v17 = vadd.f32 %v1286_v10, %v1245_v52 }
 0x16d   : > { %1542 = vst [vmem:[%s2129_s7 + $0x8] sm:$0xff] %v1526_v4  ;;  %v1558_v20 = vadd.f32 %v1526_v4, %v1525_v63  ;;  %v1583_v1 = vmul.f32 %v1526_v4, %v1526_v4  ;;  %v1470_v23 = vpop.f32.mrf.mxu0 }
 0x16e   : > { %v1386_v42 = vpop.f32.mrf.mxu3 }
 0x16f   : > { %v1598_v26 = vadd.f32 %v1583_v1, %v1582_v30  ;;  %v1423_v9 = vadd.f32 %v1386_v42, %v1323_v17  ;;  %v1213_v28 = vpop.f32.mrf.mxu1 }
 0x170   : > { %v1247_v47 = vadd.f32 %v1213_v28, %v2584_v8 }
 0x171   : > { %v1507_v27 = vadd.f32 %v1470_v23, %v1423_v9 }
 0x172   : > { %v1288_v15 = vpop.f32.mrf.mxu2 }
 0x173   : > { %v1527_v40 = vadd.f32 %v2685_v19, %v1507_v27  ;;  %v1324_v21 = vadd.f32 %v1288_v15, %v1246_v13 }
 0x175   : > { %1543 = vst [vmem:[%s2129_s7 + $0x10] sm:$0xff] %v1527_v40  ;;  %v1559_v14 = vadd.f32 %v1558_v20, %v1527_v40  ;;  %v1584_v12 = vmul.f32 %v1527_v40, %v1527_v40  ;;  %v1472_v18 = vpop.f32.mrf.mxu0 }
 0x176   : > { %v1388_v0 = vpop.f32.mrf.mxu3 }
 0x177   : > { %v1599_v25 = vadd.f32 %v1598_v26, %v1584_v12  ;;  %v1424_v33 = vadd.f32 %v1388_v0, %v1324_v21  ;;  %v1215_v6 = vpop.f32.mrf.mxu1 }
 0x178   : > { %v1248_v7 = vadd.f32 %v1215_v6, %v2591_v11 }
 0x179   : > { %v1508_v59 = vadd.f32 %v1472_v18, %v1424_v33 }
 0x17a   : > { %v1291_v55 = vpop.f32.mrf.mxu2 }
 0x17b   : > { %v1528_v51 = vadd.f32 %v2685_v19, %v1508_v59  ;;  %v1325_v46 = vadd.f32 %v1291_v55, %v1247_v47 }
 0x17d   : > { %1544 = vst [vmem:[%s2129_s7 + $0x18] sm:$0xff] %v1528_v51  ;;  %v1560_v50 = vadd.f32 %v1559_v14, %v1528_v51  ;;  %v1585_v2 = vmul.f32 %v1528_v51, %v1528_v51  ;;  %v1475_v31 = vpop.f32.mrf.mxu0 }
 0x17e   : > { %v1391_v44 = vpop.f32.mrf.mxu3 }
 0x17f   : > { %v1600_v5 = vadd.f32 %v1599_v25, %v1585_v2  ;;  %v1425_v62 = vadd.f32 %v1391_v44, %v1325_v46  ;;  %v1218_v48 = vpop.f32.mrf.mxu1 }
 0x180   : > { %v1249_v43 = vadd.f32 %v1218_v48, %v2597_v24 }
 0x181   : > { %v1509_v34 = vadd.f32 %v1475_v31, %v1425_v62 }
 0x182   : > { %v1293_v41 = vpop.f32.mrf.mxu2 }
 0x183   : > { %v1529_v8 = vadd.f32 %v2685_v19, %v1509_v34  ;;  %v1326_v53 = vadd.f32 %v1293_v41, %v1248_v7 }
 0x185   : > { %1545 = vst [vmem:[%s2129_s7 + $0x20] sm:$0xff] %v1529_v8  ;;  %v1561_v39 = vadd.f32 %v1560_v50, %v1529_v8  ;;  %v1586_v37 = vmul.f32 %v1529_v8, %v1529_v8  ;;  %v1477_v57 = vpop.f32.mrf.mxu0 }
 0x186   : > { %v1393_v58 = vpop.f32.mrf.mxu3 }
 0x187   : > { %v1601_v63 = vadd.f32 %v1600_v5, %v1586_v37  ;;  %v1426_v29 = vadd.f32 %v1393_v58, %v1326_v53  ;;  %v1220_v45 = vpop.f32.mrf.mxu1 }
 0x188   : > { %v1250_v42 = vadd.f32 %v1220_v45, %v2604_v35 }
 0x189   : > { %v1510_v54 = vadd.f32 %v1477_v57, %v1426_v29 }
 0x18a   : > { %v1296_v61 = vpop.f32.mrf.mxu2 }
 0x18b   : > { %v1530_v11 = vadd.f32 %v2685_v19, %v1510_v54  ;;  %v1327_v3 = vadd.f32 %v1296_v61, %v1249_v43 }
 0x18d   : > { %1546 = vst [vmem:[%s2129_s7 + $0x28] sm:$0xff] %v1530_v11  ;;  %v1562_v52 = vadd.f32 %v1561_v39, %v1530_v11  ;;  %v1587_v10 = vmul.f32 %v1530_v11, %v1530_v11  ;;  %v1480_v4 = vpop.f32.mrf.mxu0 }
 0x18e   : > { %v1396_v17 = vpop.f32.mrf.mxu3 }
 0x18f   : > { %v1602_v30 = vadd.f32 %v1601_v63, %v1587_v10  ;;  %v1427_v20 = vadd.f32 %v1396_v17, %v1327_v3  ;;  %v1223_v1 = vpop.f32.mrf.mxu1 }
 0x190   : > { %v1251_v18 = vadd.f32 %v1223_v1, %v2613_v49 }
 0x191   : > { %v1511_v23 = vadd.f32 %v1480_v4, %v1427_v20 }
 0x192   : > { %v1298_v26 = vpop.f32.mrf.mxu2 }
 0x193   : > { %v1531_v24 = vadd.f32 %v2685_v19, %v1511_v23  ;;  %v1328_v9 = vadd.f32 %v1298_v26, %v1250_v42 }
 0x195   : > { %1547 = vst [vmem:[%s2129_s7 + $0x30] sm:$0xff] %v1531_v24  ;;  %v1563_v28 = vadd.f32 %v1562_v52, %v1531_v24  ;;  %v1588_v27 = vmul.f32 %v1531_v24, %v1531_v24  ;;  %v1482_v13 = vpop.f32.mrf.mxu0 }
 0x196   : > { %v1398_v15 = vpop.f32.mrf.mxu3 }
 0x197   : > { %v1603_v40 = vadd.f32 %v1602_v30, %v1588_v27  ;;  %v1428_v21 = vadd.f32 %v1398_v15, %v1328_v9  ;;  %v1225_v14 = vpop.f32.mrf.mxu1 }
 0x198   : > { %v1252_v2 = vadd.f32 %v1225_v14, %v2618_v16 }
 0x199   : > { %v1512_v12 = vadd.f32 %v1482_v13, %v1428_v21 }
 0x19a   : > { %v1301_v0 = vpop.f32.mrf.mxu2 }
 0x19b   : > { %v1532_v35 = vadd.f32 %v2685_v19, %v1512_v12  ;;  %v1329_v25 = vadd.f32 %v1301_v0, %v1251_v18 }
 0x19d   : > { %1548 = vst [vmem:[%s2129_s7 + $0x38] sm:$0xff] %v1532_v35  ;;  %v1564_v33 = vadd.f32 %v1563_v28, %v1532_v35  ;;  %v1589_v6 = vmul.f32 %v1532_v35, %v1532_v35  ;;  %v1485_v59 = vpop.f32.mrf.mxu0 }
 0x19e   : > { %v1401_v47 = vpop.f32.mrf.mxu3 }
 0x19f   : > { %v1604_v55 = vadd.f32 %v1603_v40, %v1589_v6  ;;  %v1429_v51 = vadd.f32 %v1401_v47, %v1329_v25  ;;  %v1228_v46 = vpop.f32.mrf.mxu1 }
 0x1a0   : > { %v1253_v39 = vadd.f32 %v1228_v46, %v2638_v60 }
 0x1a1   : > { %v1513_v50 = vadd.f32 %v1485_v59, %v1429_v51 }
 0x1a2   : > { %v1303_v31 = vpop.f32.mrf.mxu2 }
 0x1a3   : > { %v1533_v49 = vadd.f32 %v2685_v19, %v1513_v50  ;;  %v1330_v44 = vadd.f32 %v1303_v31, %v1252_v2 }
 0x1a5   : > { %1549 = vst [vmem:[%s2129_s7 + $0x40] sm:$0xff] %v1533_v49  ;;  %v1565_v5 = vadd.f32 %v1564_v33, %v1533_v49  ;;  %v1590_v62 = vmul.f32 %v1533_v49, %v1533_v49  ;;  %v1487_v48 = vpop.f32.mrf.mxu0 }
 0x1a6   : > { %v1403_v34 = vpop.f32.mrf.mxu3 }
 0x1a7   : > { %v1605_v7 = vadd.f32 %v1604_v55, %v1590_v62  ;;  %v1430_v41 = vadd.f32 %v1403_v34, %v1330_v44  ;;  %v1230_v8 = vpop.f32.mrf.mxu1 }
 0x1a8   : > { %v1254_v3 = vadd.f32 %v1230_v8, %v2650_v56 }
 0x1a9   : > { %v1514_v53 = vadd.f32 %v1487_v48, %v1430_v41 }
 0x1aa   : > { %v1306_v37 = vpop.f32.mrf.mxu2 }
 0x1ab   : > { %v1534_v16 = vadd.f32 %v2685_v19, %v1514_v53  ;;  %v1331_v57 = vadd.f32 %v1306_v37, %v1253_v39 }
 0x1ad   : > { %1550 = vst [vmem:[%s2129_s7 + $0x48] sm:$0xff] %v1534_v16  ;;  %v1566_v58 = vadd.f32 %v1565_v5, %v1534_v16  ;;  %v1591_v63 = vmul.f32 %v1534_v16, %v1534_v16  ;;  %v1490_v29 = vpop.f32.mrf.mxu0 }
 0x1ae   : > { %v1406_v45 = vpop.f32.mrf.mxu3 }
 0x1af   : > { %v1606_v54 = vadd.f32 %v1605_v7, %v1591_v63  ;;  %v1431_v43 = vadd.f32 %v1406_v45, %v1331_v57  ;;  %v1233_v61 = vpop.f32.mrf.mxu1 }
 0x1b0   : > { %v1255_v26 = vadd.f32 %v1233_v61, %v2662_v38 }
 0x1b1   : > { %v1515_v11 = vadd.f32 %v1490_v29, %v1431_v43 }
 0x1b2   : > { %v1308_v52 = vpop.f32.mrf.mxu2 }
 0x1b3   : > { %v1535_v60 = vadd.f32 %v2685_v19, %v1515_v11  ;;  %v1332_v10 = vadd.f32 %v1308_v52, %v1254_v3 }
 0x1b5   : > { %1551 = vst [vmem:[%s2129_s7 + $0x50] sm:$0xff] %v1535_v60  ;;  %v1567_v4 = vadd.f32 %v1566_v58, %v1535_v60  ;;  %v1592_v17 = vmul.f32 %v1535_v60, %v1535_v60  ;;  %v1492_v30 = vpop.f32.mrf.mxu0 }
 0x1b6   : > { %v1408_v20 = vpop.f32.mrf.mxu3 }
 0x1b7   : > { %v1607_v1 = vadd.f32 %v1606_v54, %v1592_v17  ;;  %v1432_v23 = vadd.f32 %v1408_v20, %v1332_v10  ;;  %v1235_v24 = vpop.f32.mrf.mxu1 }
 0x1b8   : > { %v1256_v18 = vadd.f32 %v1235_v24, %v2672_v22 }
 0x1b9   : > { %v1516_v42 = vadd.f32 %v1492_v30, %v1432_v23 }
 0x1ba   : > { %v1311_v9 = vpop.f32.mrf.mxu2 }
 0x1bb   : > { %v1536_v56 = vadd.f32 %v2685_v19, %v1516_v42  ;;  %v1333_v28 = vadd.f32 %v1311_v9, %v1255_v26 }
 0x1bd   : > { %1552 = vst [vmem:[%s2129_s7 + $0x58] sm:$0xff] %v1536_v56  ;;  %v1568_v27 = vadd.f32 %v1567_v4, %v1536_v56  ;;  %v1593_v13 = vmul.f32 %v1536_v56, %v1536_v56  ;;  %v1495_v15 = vpop.f32.mrf.mxu0 }
 0x1be   : > { %v1411_v40 = vpop.f32.mrf.mxu3 }
 0x1bf   : > { %v1608_v21 = vadd.f32 %v1607_v1, %v1593_v13  ;;  %v1433_v14 = vadd.f32 %v1411_v40, %v1333_v28  ;;  %v1238_v25 = vpop.f32.mrf.mxu1  ;;  %v1557_v1 = vld [vmem:[%s2114_s17] sm:$0x1] }
 0x1c0   : > { %v1257_v50 = vadd.f32 %v1238_v25, %v2677_v32 }
 0x1c1   : > { %v1517_v12 = vadd.f32 %v1495_v15, %v1433_v14 }
 0x1c2   : > { %v1313_v0 = vpop.f32.mrf.mxu2 }
 0x1c3   : > { %v1537_v38 = vadd.f32 %v2685_v19, %v1517_v12  ;;  %v1334_v35 = vadd.f32 %v1313_v0, %v1256_v18 }
 0x1c5   : > { %1553 = vst [vmem:[%s2129_s7 + $0x60] sm:$0xff] %v1537_v38  ;;  %v1569_v33 = vadd.f32 %v1568_v27, %v1537_v38  ;;  %v1594_v6 = vmul.f32 %v1537_v38, %v1537_v38  ;;  %v1497_v59 = vpop.f32.mrf.mxu0 }
 0x1c6   : > { %v1413_v47 = vpop.f32.mrf.mxu3 }
 0x1c7   : > { %v1609_v55 = vadd.f32 %v1608_v21, %v1594_v6  ;;  %v1434_v51 = vadd.f32 %v1413_v47, %v1334_v35  ;;  %v1240_v5 = vpop.f32.mrf.mxu1 }
 0x1c8   : > { %v1258_v8 = vadd.f32 %v1240_v5, %v2680_v36 }
 0x1c9   : > { %v1518_v46 = vadd.f32 %v1497_v59, %v1434_v51 }
 0x1ca   : > { %v1316_v2 = vpop.f32.mrf.mxu2 }
 0x1cb   : > { %v1538_v22 = vadd.f32 %v2685_v19, %v1518_v46  ;;  %v1335_v31 = vadd.f32 %v1316_v2, %v1257_v50 }
 0x1cd   : > { %1554 = vst [vmem:[%s2129_s7 + $0x68] sm:$0xff] %v1538_v22  ;;  %v1570_v49 = vadd.f32 %v1569_v33, %v1538_v22  ;;  %v1595_v44 = vmul.f32 %v1538_v22, %v1538_v22  ;;  %v1500_v62 = vpop.f32.mrf.mxu0 }
 0x1ce   : > { %v1416_v48 = vpop.f32.mrf.mxu3 }
 0x1cf   : > { %v1610_v34 = vadd.f32 %v1609_v55, %v1595_v44  ;;  %v1435_v7 = vadd.f32 %v1416_v48, %v1335_v31 }
 0x1d1   : > { %v1519_v41 = vadd.f32 %v1500_v62, %v1435_v7 }
 0x1d2   : > { %v1318_v53 = vpop.f32.mrf.mxu2 }
 0x1d3   : > { %v1539_v32 = vadd.f32 %v2685_v19, %v1519_v41  ;;  %v1336_v39 = vadd.f32 %v1318_v53, %v1258_v8 }
 0x1d5   : > { %1555 = vst [vmem:[%s2129_s7 + $0x70] sm:$0xff] %v1539_v32  ;;  %v1571_v37 = vadd.f32 %v1570_v49, %v1539_v32  ;;  %v1596_v16 = vmul.f32 %v1539_v32, %v1539_v32  ;;  %v1502_v29 = vpop.f32.mrf.mxu0 }
 0x1d6   : > { %v1418_v57 = vpop.f32.mrf.mxu3 }
 0x1d7   : > { %v1611_v58 = vadd.f32 %v1610_v34, %v1596_v16  ;;  %v1436_v63 = vadd.f32 %v1418_v57, %v1336_v39 }
 0x1d9   : > { %v1520_v45 = vadd.f32 %v1502_v29, %v1436_v63 }
 0x1db   : > { %v1540_v54 = vadd.f32 %v2685_v19, %v1520_v45  ;;  %v1581_v19 = vld [vmem:[%s2119_s30] sm:$0x1] }
 0x1dd   : > { %1556 = vst [vmem:[%s2129_s7 + $0x78] sm:$0xff] %v1540_v54  ;;  %v1572_v43 = vadd.f32 %v1571_v37, %v1540_v54  ;;  %v1597_v61 = vmul.f32 %v1540_v54, %v1540_v54 }
 0x1df   : > { %v1573_v36 = vrot.slane %v1572_v43, 4  ;;  %v1612_v11 = vadd.f32 %v1611_v58, %v1597_v61 }
 0x1e1   : > { %v1574_v3 = vadd.f32 %v1573_v36, %v1572_v43  ;;  %v1613_v52 = vrot.slane %v1612_v11, 4 }
 0x1e3   : > { %v1575_v60 = vrot.slane %v1574_v3, 2  ;;  %v1614_v10 = vadd.f32 %v1613_v52, %v1612_v11 }
 0x1e5   : > { %v1576_v4 = vadd.f32 %v1575_v60, %v1574_v3  ;;  %v1615_v17 = vrot.slane %v1614_v10, 2 }
 0x1e7   : > { %v1577_v30 = vrot.slane %v1576_v4, 1  ;;  %v1616_v20 = vadd.f32 %v1615_v17, %v1614_v10 }
 0x1e9   : > { %v1578_v23 = vadd.f32 %v1577_v30, %v1576_v4  ;;  %v1617_v42 = vrot.slane %v1616_v20, 1 }
 0x1eb   : > { %v1579_v26 = vadd.f32 %v1578_v23, %v1557_v1  ;;  %v1618_v24 = vadd.f32 %v1617_v42, %v1616_v20 }
 0x1ed   : > { %1580 = vst [vmem:[%s2114_s17] sm:$0x1] %v1579_v26  ;;  %v1619_v9 = vadd.f32 %v1618_v24, %v1581_v19 }
 0x1ef   : > { %1620 = vst [vmem:[%s2119_s30] sm:$0x1] %v1619_v9 }
 0x1f0 PF: > { %s17_s25 = sadd.s32 1, %s2035_s25   ;;  %s2767_s7 = sld [smem:[#allocation2_spill]] }
 0x1f1   : > { %p14_p10 = scmp.ge.s32.totalorder %s17_s25, 6   ;;  %s2768_s21 = smov %s2027_s23 }
 0x1f2   : > { %s2769_s22 = smov %s2031_s24  ;;  %s2770_s23 = smov %s2773_s26 }
 0x1f3   :  { %16 = sbr.rel (!%p14_p10) target bundleno = 3 (0x3), region = 105 }
 0x1f6   : > { %s2771_s24 = smov %s2767_s7 }

// kernel: encoder_block_forward.7
= control target key start
LH: loop header
LB: loop body
LE: loop exit
PB: predicated region body
PF: predicated region fallthrough
CT: control target
= control target key end

     0   :  { %s755_s12 = smov 0   ;;  %s757_s13 = smov 0   ;;  %s979_s0 = inlined_call_operand.vmem [shape: f32[2,16,16,128], index: 0, kind: input, shape index: {}]   ;;  %s980_s1 = inlined_call_operand.vmem [shape: f32[4,128], index: 1, kind: input, shape index: {}]   ;;  %s981_s2 = inlined_call_operand.vmem [shape: f32[2,16,16,128], index: 2, kind: output, shape index: {0}]   ;;  %s982_s3 = inlined_call_operand.vmem [shape: f32[2,8,8,128], index: 3, kind: output, shape index: {1}]  }
   0x1   :  { %s759_s14 = smov 0   ;;  %s761_s15 = smov 0  }
   0x2   :  { %s763_s16 = smov 0  }
   0x3 LB: > { %s23_s17 = sadd.s32 1, %s725_s14  ;;  %s26_s18 = sadd.s32 1, %s729_s15  ;;  %s733_s16 = sphi %s763_s16, %s14_s16   ;;  %s729_s15 = sphi %s761_s15, %s987_s15   ;;  %s725_s14 = sphi %s759_s14, %s986_s14   ;;  %s721_s13 = sphi %s757_s13, %s985_s13   ;;  %s717_s12 = sphi %s755_s12, %s984_s12  }
   0x4   : > { %p24_p0 = scmp.ge.s32.totalorder %s23_s17, 2  ;;  %p639_p1 = scmp.ge.s32.totalorder %s733_s16, 1 }
   0x5   : > { %p164_p2 = scmp.lt.s32.totalorder %s733_s16, 5 }
   0x6   : > { %s989_s17 = smov (%p24_p0, %s23_s17), 0  ;;  %s991_s18 = smov (!%p24_p0, %s26_s18), %s729_s15 }
   0x7   : > { %p165_p3 = pnand %p639_p1, %p164_p2  ;;  %p28_p4 = scmp.ge.s32.totalorder %s991_s18, 2 }
   0x8   : > { %s640_s23 = sshll.u32 (!%p165_p3), %s717_s12, 3  ;;  %p208_p5 = scmp.lt.s32.totalorder (!%p165_p3), %s721_s13, 1 }
   0x9   : > { %s993_s18 = smov (%p28_p4, %s991_s18), 0  ;;  %168 = sbr.rel (%p165_p3) target bundleno = 83 (0x53), region = 28 }
   0xa   : > { %p210_p6 = scmp.lt.s32.totalorder (!%p165_p3), %s640_s23, 15  ;;  %s648_s11 = sshll.u32 (!%p165_p3), %s717_s12, 2 }
   0xb   : > { %p869_p7 = scmp.lt.s32.totalorder (!%p165_p3), %s648_s11, 7 }
   0xe   : > { %v239_v0 = vld [vmem:[%s980_s1] sm:$0x1]  ;;  %v241_v1 = vld [vmem:[%s980_s1 + $0x1] sm:$0x1]  ;;  %s995_s13 = smov (!%p208_p5, %s721_s13), 1  ;;  %s997_s23 = smov (!%p210_p6, %s640_s23), 15 }
   0xf   : > { %v240_v2 = vmul.f32 0.001953125, %v239_v0  ;;  %v242_v3 = vmul.f32 0.001953125, %v241_v1  ;;  %s641_s24 = sshll.u32 %s997_s23, 1  ;;  %s642_s25 = sshll.u32 %s995_s13, 5  ;;  %v245_v12 = vld [vmem:[%s980_s1 + $0x2] sm:$0x1] }
  0x10   : > { %s797_s26 = sadd.s32 %s642_s25, %s641_s24  ;;  %v258_v16 = vld [vmem:[%s980_s1 + $0x3] sm:$0x1]  ;;  %vm369_vm3 = vcmask 1040384   ;;  %vm371_vm4 = vcmask 1041408   ;;  %vm373_vm5 = vcmask 1042432   ;;  %vm375_vm6 = vcmask 1043456  }
  0x11   : > { %v243_v4 = vmul.f32 %v240_v2, %v240_v2  ;;  %s643_s27 = sshll.u32 %s797_s26, 3  ;;  %vm377_vm7 = vcmask 1044480   ;;  %s999_s11 = smov (!%p869_p7, %s648_s11), 7  ;;  %vm379_vm8 = vcmask 1045504   ;;  %vm381_vm9 = vcmask 1046528  }
  0x12   : > { %s805_s30 = scalar_lea.vmem %s979_s0, %s643_s27  ;;  %s854_s10 = scalar_lea.vmem %s981_s2, %s643_s27 }
  0x13   : > { %v244_v5 = vsub.f32 %v242_v3, %v243_v4  ;;  %v261_v17 = vld [vmem:[%s805_s30] sm:$0xff]  ;;  %v262_v18 = vld [vmem:[%s805_s30 + $0x8] sm:$0xff]  ;;  %v263_v19 = vld [vmem:[%s805_s30 + $0x10] sm:$0xff]  ;;  %s649_s20 = sshll.u32 %s995_s13, 3 }
  0x14   : > { %v264_v20 = vld [vmem:[%s805_s30 + $0x18] sm:$0xff]  ;;  %v265_v21 = vld [vmem:[%s805_s30 + $0x20] sm:$0xff]  ;;  %v266_v24 = vld [vmem:[%s805_s30 + $0x28] sm:$0xff]  ;;  %s904_s12 = sadd.s32 %s649_s20, %s999_s11 }
  0x15   : > { %v246_v6 = vadd.f32 1e-05, %v244_v5  ;;  %v267_v25 = vld [vmem:[%s805_s30 + $0x30] sm:$0xff]  ;;  %v268_v26 = vld [vmem:[%s805_s30 + $0x38] sm:$0xff]  ;;  %v269_v27 = vld [vmem:[%s805_s30 + $0x40] sm:$0xff]  ;;  %s650_s13 = sshll.u32 %s904_s12, 3 }
  0x16   : > { %v270_v28 = vld [vmem:[%s805_s30 + $0x48] sm:$0xff]  ;;  %v271_v29 = vld [vmem:[%s805_s30 + $0x50] sm:$0xff]  ;;  %v272_v34 = vld [vmem:[%s805_s30 + $0x58] sm:$0xff]  ;;  %s931_s23 = scalar_lea.vmem %s982_s3, %s650_s13 }
  0x17   : > { %693 = vrsqrt.f32 %v246_v6  ;;  %vm253_vm0 = vweird.f32 %v246_v6  ;;  %v273_v35 = vld [vmem:[%s805_s30 + $0x60] sm:$0xff]  ;;  %v274_v36 = vld [vmem:[%s805_s30 + $0x68] sm:$0xff] }
  0x1d   : > { %v694_v7 = vpop.eup %693 }
  0x1e   : > { %v248_v8 = vmul.f32 %v694_v7, %v246_v6  ;;  %vm254_vm1 = vweird.f32 %v694_v7 }
  0x1f   : > { %vm255_vm2 = vmor %vm253_vm0, %vm254_vm1 }
  0x20   : > { %v249_v9 = vmul.f32 %v694_v7, %v248_v8 }
  0x22   : > { %v250_v10 = vmul.f32 0.5, %v249_v9 }
  0x24   : > { %v251_v11 = vsub.f32 1.5, %v250_v10 }
  0x26   : > { %v252_v13 = vmul.f32 %v694_v7, %v251_v11 }
  0x28   : > { %v256_v14 = vsel %vm255_vm2, %v694_v7, %v252_v13 }
  0x29   : > { %v257_v15 = vmul.f32 %v256_v14, %v245_v12 }
  0x2b   : > { %v259_v22 = vmul.f32 %v257_v15, %v240_v2  ;;  %v818_v23 = vperm.slane %v257_v15, 0 }
  0x2d   : > { %v260_v30 = vsub.f32 %v258_v16, %v259_v22  ;;  %v278_v31 = vmul.f32 %v818_v23, %v261_v17  ;;  %v279_v32 = vmul.f32 %v818_v23, %v262_v18  ;;  %v280_v33 = vmul.f32 %v818_v23, %v263_v19 }
  0x2e   : > { %v281_v37 = vmul.f32 %v818_v23, %v264_v20  ;;  %v282_v38 = vmul.f32 %v818_v23, %v265_v21  ;;  %v283_v39 = vmul.f32 %v818_v23, %v266_v24  ;;  %v284_v40 = vmul.f32 %v818_v23, %v267_v25  ;;  %v275_v25 = vld [vmem:[%s805_s30 + $0x70] sm:$0xff] }
  0x2f   : > { %v836_v41 = vperm.slane %v260_v30, 0  ;;  %v285_v42 = vmul.f32 %v818_v23, %v268_v26  ;;  %v286_v43 = vmul.f32 %v818_v23, %v269_v27  ;;  %v287_v44 = vmul.f32 %v818_v23, %v270_v28  ;;  %v276_v30 = vld [vmem:[%s805_s30 + $0x78] sm:$0xff] }
  0x30   : > { %v288_v45 = vmul.f32 %v818_v23, %v271_v29  ;;  %v289_v46 = vmul.f32 %v818_v23, %v272_v34  ;;  %v290_v47 = vmul.f32 %v818_v23, %v273_v35  ;;  %v291_v48 = vmul.f32 %v818_v23, %v274_v36 }
  0x31   : > { %v295_v49 = vadd.f32 %v836_v41, %v278_v31  ;;  %v296_v50 = vadd.f32 %v836_v41, %v279_v32  ;;  %v297_v51 = vadd.f32 %v836_v41, %v280_v33  ;;  %v298_v52 = vadd.f32 %v836_v41, %v281_v37 }
  0x32   : > { %v299_v53 = vadd.f32 %v836_v41, %v282_v38  ;;  %v300_v54 = vadd.f32 %v836_v41, %v283_v39  ;;  %v301_v55 = vadd.f32 %v836_v41, %v284_v40  ;;  %v302_v56 = vadd.f32 %v836_v41, %v285_v42 }
  0x33   : > { %v311_v57 = vmax.f32 %v295_v49, 0.0  ;;  %v312_v58 = vmax.f32 %v296_v50, 0.0  ;;  %v313_v59 = vmax.f32 %v297_v51, 0.0  ;;  %v314_v60 = vmax.f32 %v298_v52, 0.0 }
  0x34   : > { %v315_v61 = vmax.f32 %v299_v53, 0.0  ;;  %v316_v62 = vmax.f32 %v300_v54, 0.0  ;;  %v317_v63 = vmax.f32 %v301_v55, 0.0  ;;  %v318_v0 = vmax.f32 %v302_v56, 0.0 }
  0x35   : > { %327 = vst [vmem:[%s854_s10] sm:$0xff] %v311_v57  ;;  %v343_v1 = vmax.f32 %v311_v57, %v313_v59  ;;  %v344_v2 = vmax.f32 %v312_v58, %v314_v60  ;;  %v303_v3 = vadd.f32 %v836_v41, %v286_v43  ;;  %v304_v4 = vadd.f32 %v836_v41, %v287_v44 }
  0x36   : > { %328 = vst [vmem:[%s854_s10 + $0x8] sm:$0xff] %v312_v58  ;;  %v383_v5 = vmax.f32 %v315_v61, %v317_v63  ;;  %v384_v6 = vmax.f32 %v316_v62, %v318_v0  ;;  %v305_v7 = vadd.f32 %v836_v41, %v288_v45  ;;  %v306_v8 = vadd.f32 %v836_v41, %v289_v46 }
  0x37   : > { %329 = vst [vmem:[%s854_s10 + $0x10] sm:$0xff] %v313_v59  ;;  %v346_v9 = vrot.slane %v343_v1, 1  ;;  %v350_v10 = vrot.slane %v344_v2, 1  ;;  %v319_v11 = vmax.f32 %v303_v3, 0.0  ;;  %v320_v12 = vmax.f32 %v304_v4, 0.0 }
  0x38   : > { %330 = vst [vmem:[%s854_s10 + $0x18] sm:$0xff] %v314_v60  ;;  %v386_v13 = vrot.slane %v383_v5, 1  ;;  %v390_v14 = vrot.slane %v384_v6, 1  ;;  %v321_v15 = vmax.f32 %v305_v7, 0.0  ;;  %v322_v16 = vmax.f32 %v306_v8, 0.0 }
  0x39   : > { %v348_v17 = vmax.f32 %v343_v1, %v346_v9  ;;  %v875_v18 = vmax.f32 %v344_v2, %v350_v10  ;;  %331 = vst [vmem:[%s854_s10 + $0x20] sm:$0xff] %v315_v61  ;;  %v307_v19 = vadd.f32 %v836_v41, %v290_v47  ;;  %v308_v24 = vadd.f32 %v836_v41, %v291_v48 }
  0x3a   : > { %332 = vst [vmem:[%s854_s10 + $0x28] sm:$0xff] %v316_v62  ;;  %v880_v20 = vmax.f32 %v383_v5, %v386_v13  ;;  %v416_v21 = vmax.f32 %v319_v11, %v321_v15  ;;  %v417_v22 = vmax.f32 %v320_v12, %v322_v16  ;;  %v889_v29 = vmax.f32 %v384_v6, %v390_v14 }
  0x3b   : > { %v354_v26 = vrot.slane %v348_v17, 1  ;;  %v356_v27 = vrot.slane %v348_v17, 2  ;;  %v358_v28 = vrot.slane %v348_v17, 3  ;;  %333 = vst [vmem:[%s854_s10 + $0x30] sm:$0xff] %v317_v63  ;;  %v323_v34 = vmax.f32 %v307_v19, 0.0 }
  0x3c   : > { %v394_v31 = vrot.slane %v880_v20, 1  ;;  %v396_v32 = vrot.slane %v880_v20, 2  ;;  %334 = vst [vmem:[%s854_s10 + $0x38] sm:$0xff] %v318_v0  ;;  %v419_v33 = vrot.slane %v416_v21, 1  ;;  %v398_v36 = vrot.slane %v880_v20, 3 }
  0x3d   : > { %v370_v35 = vsel %vm369_vm3, %v348_v17, %v354_v26  ;;  %335 = vst [vmem:[%s854_s10 + $0x40] sm:$0xff] %v319_v11  ;;  %v423_v37 = vrot.slane %v417_v22, 1  ;;  %v292_v38 = vmul.f32 %v818_v23, %v275_v25  ;;  %v324_v42 = vmax.f32 %v308_v24, 0.0 }
  0x3e   : > { %v409_v39 = vsel %vm369_vm3, %v880_v20, %v394_v31  ;;  %336 = vst [vmem:[%s854_s10 + $0x48] sm:$0xff] %v320_v12  ;;  %v421_v40 = vmax.f32 %v416_v21, %v419_v33  ;;  %v293_v43 = vmul.f32 %v818_v23, %v276_v30  ;;  %v361_v46 = vrot.slane %v875_v18, 4 }
  0x3f   : > { %337 = vst [vmem:[%s854_s10 + $0x50] sm:$0xff] %v321_v15  ;;  %v907_v44 = vmax.f32 %v417_v22, %v423_v37  ;;  %v309_v45 = vadd.f32 %v836_v41, %v292_v38  ;;  %v363_v47 = vrot.slane %v875_v18, 5  ;;  %v365_v23 = vrot.slane %v875_v18, 6 }
  0x40   : > { %v427_v48 = vrot.slane %v421_v40, 1  ;;  %v429_v49 = vrot.slane %v421_v40, 2  ;;  %338 = vst [vmem:[%s854_s10 + $0x58] sm:$0xff] %v322_v16  ;;  %v310_v50 = vadd.f32 %v836_v41, %v293_v43  ;;  %v431_v51 = vrot.slane %v421_v40, 3 }
  0x41   : > { %339 = vst [vmem:[%s854_s10 + $0x60] sm:$0xff] %v323_v34  ;;  %v325_v52 = vmax.f32 %v309_v45, 0.0  ;;  %v367_v53 = vrot.slane %v875_v18, 7  ;;  %v372_v54 = vsel %vm371_vm4, %v370_v35, %v356_v27  ;;  %v401_v58 = vrot.slane %v889_v29, 4 }
  0x42   : > { %v442_v55 = vsel %vm369_vm3, %v421_v40, %v427_v48  ;;  %340 = vst [vmem:[%s854_s10 + $0x68] sm:$0xff] %v324_v42  ;;  %v326_v56 = vmax.f32 %v310_v50, 0.0  ;;  %v374_v57 = vsel %vm373_vm5, %v372_v54, %v358_v28  ;;  %v403_v60 = vrot.slane %v889_v29, 5 }
  0x43   : > { %341 = vst [vmem:[%s854_s10 + $0x70] sm:$0xff] %v325_v52  ;;  %v449_v41 = vmax.f32 %v323_v34, %v325_v52  ;;  %v376_v59 = vsel %vm375_vm6, %v374_v57, %v361_v46  ;;  %v405_v61 = vrot.slane %v889_v29, 6  ;;  %v407_v0 = vrot.slane %v889_v29, 7 }
  0x44   : > { %342 = vst [vmem:[%s854_s10 + $0x78] sm:$0xff] %v326_v56  ;;  %v450_v62 = vmax.f32 %v324_v42, %v326_v56  ;;  %v378_v63 = vsel %vm377_vm7, %v376_v59, %v363_v47  ;;  %v410_v1 = vsel %vm371_vm4, %v409_v39, %v396_v32  ;;  %v434_v5 = vrot.slane %v907_v44, 4 }
  0x45   : > { %v452_v2 = vrot.slane %v449_v41, 1  ;;  %v380_v3 = vsel %vm379_vm8, %v378_v63, %v365_v23  ;;  %v411_v4 = vsel %vm373_vm5, %v410_v1, %v398_v36  ;;  %v436_v9 = vrot.slane %v907_v44, 5 }
  0x46   : > { %v456_v6 = vrot.slane %v450_v62, 1  ;;  %v382_v7 = vsel %vm381_vm9, %v380_v3, %v367_v53  ;;  %v412_v8 = vsel %vm375_vm6, %v411_v4, %v401_v58  ;;  %v438_v12 = vrot.slane %v907_v44, 6 }
  0x47   : > { %v454_v10 = vmax.f32 %v449_v41, %v452_v2  ;;  %482 = vst [vmem:[%s931_s23] sm:$0xff] %v382_v7  ;;  %v413_v11 = vsel %vm377_vm7, %v412_v8, %v403_v60  ;;  %v443_v13 = vsel %vm371_vm4, %v442_v55, %v429_v49  ;;  %v440_v16 = vrot.slane %v907_v44, 7 }
  0x48   : > { %v458_v14 = vmax.f32 %v450_v62, %v456_v6  ;;  %v414_v15 = vsel %vm379_vm8, %v413_v11, %v405_v61  ;;  %v444_v17 = vsel %vm373_vm5, %v443_v13, %v431_v51 }
  0x49   : > { %v460_v18 = vrot.slane %v454_v10, 1  ;;  %v462_v19 = vrot.slane %v454_v10, 2  ;;  %v464_v20 = vrot.slane %v454_v10, 3  ;;  %v415_v21 = vsel %vm381_vm9, %v414_v15, %v407_v0 }
  0x4a   : > { %483 = vst [vmem:[%s931_s23 + $0x8] sm:$0xff] %v415_v21  ;;  %v445_v22 = vsel %vm375_vm6, %v444_v17, %v434_v5  ;;  %v467_v24 = vrot.slane %v458_v14, 4  ;;  %v469_v27 = vrot.slane %v458_v14, 5  ;;  %v471_v29 = vrot.slane %v458_v14, 6 }
  0x4b   : > { %v475_v25 = vsel %vm369_vm3, %v454_v10, %v460_v18  ;;  %v446_v26 = vsel %vm377_vm7, %v445_v22, %v436_v9  ;;  %v473_v32 = vrot.slane %v458_v14, 7 }
  0x4c   : > { %v447_v28 = vsel %vm379_vm8, %v446_v26, %v438_v12  ;;  %v476_v30 = vsel %vm371_vm4, %v475_v25, %v462_v19 }
  0x4d   : > { %v448_v31 = vsel %vm381_vm9, %v447_v28, %v440_v16  ;;  %v477_v33 = vsel %vm373_vm5, %v476_v30, %v464_v20 }
  0x4e   : > { %484 = vst [vmem:[%s931_s23 + $0x10] sm:$0xff] %v448_v31  ;;  %v478_v34 = vsel %vm375_vm6, %v477_v33, %v467_v24 }
  0x4f   : > { %v479_v35 = vsel %vm377_vm7, %v478_v34, %v469_v27 }
  0x50   : > { %v480_v36 = vsel %vm379_vm8, %v479_v35, %v471_v29 }
  0x51   : > { %v481_v37 = vsel %vm381_vm9, %v480_v36, %v473_v32 }
  0x52   : > { %485 = vst [vmem:[%s931_s23 + $0x18] sm:$0xff] %v481_v37 }
  0x53 PF: > { %s14_s16 = sadd.s32 1, %s733_s16   ;;  %s984_s12 = smov %s725_s14 }
  0x54   : > { %p11_p8 = scmp.ge.s32.totalorder %s14_s16, 6   ;;  %s985_s13 = smov %s729_s15 }
  0x55   : > { %s986_s14 = smov %s989_s17  ;;  %s987_s15 = smov %s993_s18 }
  0x56   :  { %13 = sbr.rel (!%p11_p8) target bundleno = 3 (0x3), region = 70 }

// kernel: encoder_block_forward.6
= control target key start
LH: loop header
LB: loop body
LE: loop exit
PB: predicated region body
PF: predicated region fallthrough
CT: control target
= control target key end

     0   :  { %s2979_s21 = smov 0   ;;  %s2981_s22 = smov 0   ;;  %s3774_s0 = inlined_call_operand.vmem [shape: bf16[2,24,18,128], index: 0, kind: input, shape index: {}, may-alias: {0,1}]   ;;  %s3775_s1 = inlined_call_operand.vmem [shape: bf16[2,24,18,128], index: 1, kind: input, shape index: {}, may-alias: {0,1}]   ;;  %s3776_s2 = inlined_call_operand.vmem [shape: bf16[3,3,128,128], index: 2, kind: input, shape index: {}]   ;;  %s3777_s3 = inlined_call_operand.vmem [shape: f32[1,128], index: 3, kind: input, shape index: {}]   ;;  %s3778_s4 = inlined_call_operand.vmem [shape: f32[2,16,16,128], index: 4, kind: output, shape index: {0}]   ;;  %s3779_s5 = inlined_call_operand.vmem [shape: f32[2,1,128], index: 5, kind: output, shape index: {1}]   ;;  %s3780_s6 = inlined_call_operand.vmem [shape: f32[2,1,128], index: 6, kind: output, shape index: {2}]  }
   0x1   :  { %3781 = sst [smem:[#allocation3_spill]] %s3774_s0  ;;  %s2983_s23 = smov 0  }
   0x2   :  { %s2985_s24 = smov 0   ;;  %s2987_s25 = smov 0  }
   0x3 LB: > { %s26_s26 = sadd.s32 1, %s2933_s23  ;;  %s29_s27 = sadd.s32 1, %s2937_s24  ;;  %s2941_s25 = sphi %s2987_s25, %s17_s25   ;;  %s2937_s24 = sphi %s2985_s24, %s3792_s24   ;;  %s2933_s23 = sphi %s2983_s23, %s3791_s23   ;;  %s2929_s22 = sphi %s2981_s22, %s3790_s22   ;;  %s2925_s21 = sphi %s2979_s21, %s3789_s21  }
   0x4   : > { %p27_p0 = scmp.ge.s32.totalorder %s26_s26, 2  ;;  %p2272_p1 = scmp.ge.s32.totalorder %s2941_s25, 1 }
   0x5   : > { %p261_p2 = scmp.lt.s32.totalorder %s2941_s25, 5 }
   0x6   : > { %s3794_s26 = smov (%p27_p0, %s26_s26), 0  ;;  %s3796_s27 = smov (!%p27_p0, %s29_s27), %s2937_s24 }
   0x7   : > { %p262_p3 = pnand %p2272_p1, %p261_p2  ;;  %p31_p4 = scmp.ge.s32.totalorder %s3796_s27, 2 }
   0x8   : > { %s2273_s28 = sshll.u32 (!%p262_p3), %s2925_s21, 3  ;;  %p319_p5 = scmp.lt.s32.totalorder (!%p262_p3), %s2929_s22, 1 }
   0x9   : > { %s3798_s27 = smov (%p31_p4, %s3796_s27), 0  ;;  %265 = sbr.rel (%p262_p3) target bundleno = 502 (0x1f6), region = 36 }
   0xa   : > { %3782 = sst [smem:[#allocation2_spill]] %s3798_s27  ;;  %p321_p6 = scmp.lt.s32.totalorder (!%p262_p3), %s2273_s28, 23 }
   0xb   : > { %s2751_s29 = sadd.s32 (!%p262_p3), 8, %s2273_s28  ;;  %p345_p8 = scmp.lt.s32.totalorder (!%p262_p3), %s2273_s28, 15 }
   0xc   : > { %p333_p7 = scmp.lt.s32.totalorder (!%p262_p3), %s2751_s29, 23  ;;  %s3783_s0 = sld [smem:[#allocation3_spill]] (!%p262_p3) }
   0xd   : > { %p2281_p9 = scmp.ne.s32.totalorder (!%p262_p3), %s2925_s21, 0 }
   0xe   : > { %s3800_s22 = smov (!%p319_p5, %s2929_s22), 1  ;;  %s3802_s29 = smov (!%p333_p7, %s2751_s29), 23 }
   0xf   : > { %s322_s30 = scalar_select %p321_p6, %s2273_s28, 23 }
  0x10   : > { %s2859_s7 = smul.u32 72, %s3800_s22  ;;  %s3020_s17 = scalar_lea.vmem %s3779_s5, %s3800_s22 }
  0x11   : > { %s2858_s8 = smul.u32 3, %s322_s30  ;;  %s3025_s30 = scalar_lea.vmem %s3780_s6, %s3800_s22 }
  0x12   : > { %s2860_s11 = smul.u32 3, %s3802_s29  ;;  %s2279_s12 = sshll.u32 %s3800_s22, 5 }
  0x13   : > { %s325_s9 = sadd.s32 %s2859_s7, %s2858_s8  ;;  %s3804_s28 = smov (!%p345_p8, %s2273_s28), 15 }
  0x14   : > { %s2274_s10 = sshll.u32 %s325_s9, 2  ;;  %s337_s18 = sadd.s32 %s2860_s11, %s2859_s7 }
  0x15   : > { %s3015_s14 = scalar_lea.vmem %s3783_s0, %s2274_s10  ;;  %s2276_s8 = sshll.u32 %s337_s18, 2 }
  0x16   : > { %s3030_s29 = scalar_lea.vmem %s3775_s1, %s2276_s8  ;;  %s2278_s10 = sshll.u32 %s3804_s28, 1 }
  0x17   : > { %s349_s13 = sadd.s32 %s2279_s12, %s2278_s10  ;;  %362 = sbr.rel (%p2281_p9) target bundleno = 31 (0x1f), region = 40 }
  0x18   : > { %s2280_s0 = sshll.u32 %s349_s13, 3 }
  0x19   : > { %s3035_s7 = scalar_lea.vmem %s3778_s4, %s2280_s0 }
  0x1c   : > { %v2943_v0 = vmov 0.0  }
  0x1d   : > { %363 = vst [vmem:[%s3020_s17] sm:$0x1] %v2943_v0 }
  0x1e   : > { %364 = vst [vmem:[%s3025_s30] sm:$0x1] %v2943_v0 }
  0x1f PF: > { %v2777_v1 = vld [vmem:[%s3776_s2 + $0x78] sm:$0xff]  ;;  %v2776_v2 = vld [vmem:[%s3776_s2 + $0x70] sm:$0xff]  ;;  %vm411_vm0 = vsmask.f32 3328  ;;  %v3060_v10 = vld [vmem:[%s3015_s14 + $0x20] sm:$0x1] }
  0x20   : > { %2834 = vmatpush.bf16.msra.mxu1 %v2777_v1  ;;  %2835 = vmatpush.bf16.msra.mxu2 %v2777_v1  ;;  %v3047_v3 = vld [vmem:[%s3015_s14 + $0x18] sm:$0xf]  ;;  %v3050_v4 = vld [vmem:[%s3015_s14 + $0x1c] sm:$0xf]  ;;  %v3057_v9 = vld [vmem:[%s3015_s14 + $0x30] sm:$0xf] }
  0x21   : > { %2836 = vmatpush.bf16.msra.mxu3 %v2777_v1  ;;  %703 = vmatpush.bf16.msra.mxu0 %v2777_v1  ;;  %v463_v5 = vshrl.u32 %v3047_v3, 16  ;;  %v466_v6 = vshll.u32 %v3047_v3, 16  ;;  %v472_v7 = vshll.u32 %v3050_v4, 16  ;;  %v476_v8 = vshrl.u32 %v3050_v4, 16  ;;  %v3063_v13 = vld [vmem:[%s3015_s14 + $0x34] sm:$0xf] }
  0x22   : > { %v2775_v14 = vld [vmem:[%s3776_s2 + $0x68] sm:$0xff]  ;;  %v511_v17 = vshrl.u32 %v3057_v9, 16  ;;  %v3075_v20 = vld [vmem:[%s3015_s14 + $0x38] sm:$0x1]  ;;  %v514_v21 = vshll.u32 %v3057_v9, 16  ;;  %v520_v22 = vshll.u32 %v3063_v13, 16 }
  0x23   : > { %v465_v11 = vrot.slane %v463_v5, 4  ;;  %v468_v12 = vrot.slane %v466_v6, 5  ;;  %v3068_v15 = vrot.slane %v472_v7, 5  ;;  %v478_v16 = vrot.slane %v476_v8, 4  ;;  %v3072_v18 = vld [vmem:[%s3015_s14 + $0x48] sm:$0xf] }
  0x24   : > { %2837 = vmatpush.bf16.msra.mxu1 %v2776_v2  ;;  %2838 = vmatpush.bf16.msra.mxu2 %v2776_v2  ;;  %v524_v23 = vshrl.u32 %v3063_v13, 16  ;;  %v482_v25 = vshll.u32 %v3060_v10, 16  ;;  %v513_v26 = vrot.slane %v511_v17, 4  ;;  %v3083_v27 = vld [vmem:[%s3015_s14 + $0x4c] sm:$0xf]  ;;  %v559_v28 = vshrl.u32 %v3072_v18, 16 }
  0x25   : > { %2839 = vmatpush.bf16.msra.mxu3 %v2776_v2  ;;  %704 = vmatpush.bf16.msra.mxu0 %v2776_v2  ;;  %v469_v19 = vor.u32 %v468_v12, %v465_v11  ;;  %v479_v24 = vor.u32 %v478_v16, %v3068_v15  ;;  %vm412_vm1 = vsmask.f32 7440  ;;  %v516_v29 = vrot.slane %v514_v21, 5  ;;  %v2774_v32 = vld [vmem:[%s3776_s2 + $0x60] sm:$0xff]  ;;  %v3095_v39 = vld [vmem:[%s3015_s14 + $0x50] sm:$0x1] }
  0x26   : > { %v3086_v30 = vrot.slane %v520_v22, 5  ;;  %v526_v31 = vrot.slane %v524_v23, 4  ;;  %v530_v33 = vshll.u32 %v3075_v20, 16  ;;  %v561_v34 = vrot.slane %v559_v28, 4  ;;  %v3099_v41 = vld [vmem:[%s3015_s14] sm:$0xf]  ;;  %vm3103_vm2 = vmor %vm411_vm0, %vm412_vm1 }
  0x27   : > { %v562_v35 = vshll.u32 %v3072_v18, 16  ;;  %v470_v36 = vrot.slane %v469_v19, 4  ;;  %v517_v37 = vor.u32 %v516_v29, %v513_v26  ;;  %v568_v40 = vshll.u32 %v3083_v27, 16  ;;  %v2773_v49 = vld [vmem:[%s3776_s2 + $0x58] sm:$0xff]  ;;  %v3113_v53 = vld [vmem:[%s3015_s14 + $0x4] sm:$0xf] }
  0x28   : > { %2840 = vmatpush.bf16.msra.mxu1 %v2775_v14  ;;  %2841 = vmatpush.bf16.msra.mxu2 %v2775_v14  ;;  %v527_v38 = vor.u32 %v526_v31, %v3086_v30  ;;  %v480_v43 = vrot.slane %v479_v24, 4  ;;  %v484_v44 = vrot.slane %v482_v25, 5  ;;  %v572_v46 = vshrl.u32 %v3083_v27, 16  ;;  %v3123_v62 = vld [vmem:[%s3015_s14 + $0x8] sm:$0x1]  ;;  %v2772_v6 = vld [vmem:[%s3776_s2 + $0x50] sm:$0xff] }
  0x29   : > { %2842 = vmatpush.bf16.msra.mxu3 %v2775_v14  ;;  %705 = vmatpush.bf16.msra.mxu0 %v2775_v14  ;;  %v564_v45 = vrot.slane %v562_v35, 5  ;;  %v518_v47 = vrot.slane %v517_v37, 4  ;;  %v570_v48 = vrot.slane %v568_v40, 5  ;;  %v578_v52 = vshll.u32 %v3095_v39, 16  ;;  %v3127_v5 = vld [vmem:[%s3015_s14 + $0x24] sm:$0xf] }
  0x2a   : > { %v574_v51 = vrot.slane %v572_v46, 4  ;;  %v415_v54 = vshrl.u32 %v3099_v41, 16  ;;  %v475_v55 = vsel %vm3103_vm2, %v470_v36, %v3068_v15  ;;  %v528_v56 = vrot.slane %v527_v38, 4  ;;  %v3137_v14 = vld [vmem:[%s3015_s14 + $0x28] sm:$0xf] }
  0x2b   : > { %v565_v50 = vor.u32 %v564_v45, %v561_v34  ;;  %v532_v57 = vrot.slane %v530_v33, 5  ;;  %v418_v58 = vshll.u32 %v3099_v41, 16  ;;  %v485_v59 = vsel %vm3103_vm2, %v480_v43, %v484_v44  ;;  %v2771_v31 = vld [vmem:[%s3776_s2 + $0x48] sm:$0xff]  ;;  %v3157_v36 = vld [vmem:[%s3015_s14 + $0x40] sm:$0xf] }
  0x2c   : > { %2843 = vmatpush.bf16.msra.mxu1 %v2774_v32  ;;  %2844 = vmatpush.bf16.msra.mxu2 %v2774_v32  ;;  %v575_v61 = vor.u32 %v574_v51, %v570_v48  ;;  %v580_v63 = vrot.slane %v578_v52, 5  ;;  %v417_v0 = vrot.slane %v415_v54, 4  ;;  %v424_v2 = vshll.u32 %v3113_v53, 16  ;;  %v2770_v54 = vld [vmem:[%s3776_s2 + $0x40] sm:$0xff] }
  0x2d   : > { %2845 = vmatpush.bf16.msra.mxu3 %v2774_v32  ;;  %706 = vmatpush.bf16.msra.mxu0 %v2774_v32  ;;  %v566_v60 = vrot.slane %v565_v50, 4  ;;  %v420_v1 = vrot.slane %v418_v58, 5  ;;  %v627_v7 = vunpack.c.l.b16 %v475_v55  ;;  %v523_v8 = vsel %vm3103_vm2, %v518_v47, %v3086_v30  ;;  %v3150_v30 = vld [vmem:[%s3015_s14 + $0x3c] sm:$0xf] }
  0x2e   : > { %v576_v11 = vrot.slane %v575_v61, 4  ;;  %v428_v12 = vshrl.u32 %v3113_v53, 16  ;;  %v533_v15 = vsel %vm3103_vm2, %v528_v56, %v532_v57  ;;  %v426_v17 = vrot.slane %v424_v2, 5  ;;  %v3179_v61 = vld [vmem:[%s3015_s14 + $0x44] sm:$0x1] }
  0x2f   : > { %v421_v16 = vor.u32 %v420_v1, %v417_v0  ;;  %v434_v19 = vshll.u32 %v3123_v62, 16  ;;  %v571_v21 = vsel %vm3103_vm2, %v566_v60, %v570_v48  ;;  %v487_v23 = vshrl.u32 %v3127_v5, 16  ;;  %v3164_v48 = vld [vmem:[%s3015_s14 + $0x2c] sm:$0x1] }
  0x30   : > { %2846 = vmatpush.bf16.msra.mxu1 %v2773_v49  ;;  %2847 = vmatpush.bf16.msra.mxu2 %v2773_v49  ;;  %v430_v22 = vrot.slane %v428_v12, 4  ;;  %v490_v24 = vshll.u32 %v3127_v5, 16  ;;  %v581_v25 = vsel %vm3103_vm2, %v576_v11, %v580_v63  ;;  %v496_v29 = vshll.u32 %v3137_v14, 16  ;;  %v2769_v11 = vld [vmem:[%s3776_s2 + $0x38] sm:$0xff] }
  0x31   : > { %2848 = vmatpush.bf16.msra.mxu3 %v2773_v49  ;;  %707 = vmatpush.bf16.msra.mxu0 %v2773_v49  ;;  %v422_v26 = vrot.slane %v421_v16, 4  ;;  %v436_v28 = vrot.slane %v434_v19, 5  ;;  %v489_v33 = vrot.slane %v487_v23, 4  ;;  %v500_v35 = vshrl.u32 %v3137_v14, 16  ;;  %v3195_v16 = vld [vmem:[%s3015_s14 + $0x58] sm:$0xf] }
  0x32   : > { %v431_v32 = vor.u32 %v430_v22, %v426_v17  ;;  %v492_v34 = vrot.slane %v490_v24, 5  ;;  %v628_v37 = vunpack.c.l.b16 %v485_v59  ;;  %v631_v38 = vunpack.c.l.b16 %v523_v8  ;;  %v3176_v59 = vld [vmem:[%s3015_s14 + $0x54] sm:$0xf]  ;;  %v2785_v8 = vld [vmem:[%s3776_s2 + $0xb8] sm:$0xff] }
  0x33   : > { %v632_v40 = vunpack.c.l.b16 %v533_v15  ;;  %v427_v43 = vsel %vm3103_vm2, %v422_v26, %v426_v17  ;;  %v635_v44 = vunpack.c.l.b16 %v571_v21  ;;  %v636_v45 = vunpack.c.l.b16 %v581_v25  ;;  %v3201_v21 = vld [vmem:[%s3015_s14 + $0x5c] sm:$0x1] }
  0x34   : > { %2849 = vmatpush.bf16.msra.mxu1 %v2772_v6  ;;  %2850 = vmatpush.bf16.msra.mxu2 %v2772_v6  ;;  %v432_v46 = vrot.slane %v431_v32, 4  ;;  %v3161_v47 = vrot.slane %v496_v29, 5  ;;  %v502_v49 = vrot.slane %v500_v35, 4  ;;  %v535_v50 = vshrl.u32 %v3150_v30, 16  ;;  %v2793_v29 = vld [vmem:[%s3776_s2 + $0xf8] sm:$0xff]  ;;  %v2784_v35 = vld [vmem:[%s3776_s2 + $0xb0] sm:$0xff] }
  0x35   : > { %2851 = vmatpush.bf16.msra.mxu3 %v2772_v6  ;;  %708 = vmatpush.bf16.msra.mxu0 %v2772_v6  ;;  %v538_v51 = vshll.u32 %v3150_v30, 16  ;;  %v544_v52 = vshll.u32 %v3157_v36, 16  ;;  %v623_v56 = vunpack.c.l.b16 %v427_v43  ;;  %v493_v57 = vor.u32 %v492_v34, %v489_v33 }
  0x36   : > { %v437_v55 = vsel %vm3103_vm2, %v432_v46, %v436_v28  ;;  %v548_v58 = vshrl.u32 %v3157_v36, 16  ;;  %v537_v63 = vrot.slane %v535_v50, 4  ;;  %v3183_v2 = vpack.c.b16 %v628_v37, %v627_v7  ;;  %v3208_v28 = vld [vmem:[%s3015_s14 + $0xc] sm:$0xf]  ;;  %v2768_v37 = vld [vmem:[%s3776_s2 + $0x30] sm:$0xff] }
  0x37   : > { %v624_v60 = vunpack.c.l.b16 %v437_v55  ;;  %v540_v0 = vrot.slane %v538_v51, 5  ;;  %v3181_v1 = vrot.slane %v544_v52, 5  ;;  %v3185_v6 = vpack.c.b16 %v632_v40, %v631_v38  ;;  %v3228_v50 = vld [vmem:[%s3015_s14 + $0x10] sm:$0xf] }
  0x38   : > { %2852 = vmatpush.bf16.msra.mxu1 %v2771_v31  ;;  %2853 = vmatpush.bf16.msra.mxu2 %v2771_v31  ;;  %v506_v12 = vshll.u32 %v3164_v48, 16  ;;  %v550_v15 = vrot.slane %v548_v58, 4  ;;  %v3197_v17 = vpack.c.b16 %v636_v45, %v635_v44  ;;  %v503_v7 = vor.u32 %v502_v49, %v3161_v47  ;;  %v2792_v58 = vld [vmem:[%s3776_s2 + $0xf0] sm:$0xff] }
  0x39   : > { %2854 = vmatpush.bf16.msra.mxu3 %v2771_v31  ;;  %709 = vmatpush.bf16.msra.mxu0 %v2771_v31  ;;  %v541_v19 = vor.u32 %v540_v0, %v537_v63  ;;  %v583_v22 = vshrl.u32 %v3176_v59, 16  ;;  %v639_v23 = vpack.c.b16 %v624_v60, %v623_v56  ;;  %v554_v25 = vshll.u32 %v3179_v61, 16  ;;  %v2801_v31 = vld [vmem:[%s3776_s2 + $0x138] sm:$0xff]  ;;  %v2800_v60 = vld [vmem:[%s3776_s2 + $0x130] sm:$0xff] }
  0x3a   : > { %v551_v24 = vor.u32 %v550_v15, %v3181_v1  ;;  %v586_v26 = vshll.u32 %v3176_v59, 16  ;;  %v494_v32 = vrot.slane %v493_v57, 4  ;;  %v592_v34 = vshll.u32 %v3195_v16, 16  ;;  %v3233_v57 = vld [vmem:[%s3015_s14 + $0x14] sm:$0x1]  ;;  %v2767_v15 = vld [vmem:[%s3776_s2 + $0x28] sm:$0xff] }
  0x3b   : > { %v585_v33 = vrot.slane %v583_v22, 4  ;;  %v508_v38 = vrot.slane %v506_v12, 5  ;;  %v596_v43 = vshrl.u32 %v3195_v16, 16  ;;  %v602_v44 = vshll.u32 %v3201_v21, 16  ;;  %v2783_v12 = vld [vmem:[%s3776_s2 + $0xa8] sm:$0xff] }
  0x3c   : > { %2855 = vmatpush.bf16.msra.mxu1 %v2770_v54  ;;  %2856 = vmatpush.bf16.msra.mxu2 %v2770_v54  ;;  %v588_v40 = vrot.slane %v586_v26, 5  ;;  %v504_v45 = vrot.slane %v503_v7, 4  ;;  %v542_v46 = vrot.slane %v541_v19, 4  ;;  %v594_v49 = vrot.slane %v592_v34, 5  ;;  %v2791_v34 = vld [vmem:[%s3776_s2 + $0xe8] sm:$0xff] }
  0x3d   : > { %2857 = vmatpush.bf16.msra.mxu3 %v2770_v54  ;;  %710 = vmatpush.bf16.msra.mxu0 %v2770_v54  ;;  %v439_v51 = vshrl.u32 %v3208_v28, 16  ;;  %v552_v52 = vrot.slane %v551_v24, 4  ;;  %v556_v54 = vrot.slane %v554_v25, 5  ;;  %v598_v56 = vrot.slane %v596_v43, 4 }
  0x3e   : > { %v589_v55 = vor.u32 %v588_v40, %v585_v33  ;;  %v499_v63 = vsel %vm3103_vm2, %v494_v32, %v3161_v47  ;;  %v604_v0 = vrot.slane %v602_v44, 5  ;;  %v448_v22 = vshll.u32 %v3228_v50, 16  ;;  %v2766_v40 = vld [vmem:[%s3776_s2 + $0x20] sm:$0xff] }
  0x3f   : > { %721 = vmatmul.bf16.vlgmr.msra.gmra.mxu1 %v3183_v2  ;;  %731 = vmatmul.bf16.vlgmr.msra.gmra.mxu2 %v3185_v6  ;;  %v599_v19 = vor.u32 %v598_v56, %v594_v49  ;;  %v452_v47 = vshrl.u32 %v3228_v50, 16  ;;  %v547_v24 = vsel %vm3103_vm2, %v542_v46, %v3181_v1  ;;  %v458_v26 = vshll.u32 %v3233_v57, 16 }
  0x40   : > { %1061 = vmatpush.bf16.msrb.mxu2 %v2785_v8  ;;  %848 = vmatpush.bf16.msrb.mxu1 %v2769_v11  ;;  %v441_v8 = vrot.slane %v439_v51, 4  ;;  %v442_v11 = vshll.u32 %v3208_v28, 16  ;;  %v590_v7 = vrot.slane %v589_v55, 4  ;;  %v450_v32 = vrot.slane %v448_v22, 5 }
  0x41   : > { %741 = vmatmul.bf16.vlgmr.msra.gmra.mxu3 %v3197_v17  ;;  %711 = vmatmul.bf16.vlgmr.msra.gmra.mxu0 %v639_v23  ;;  %v509_v23 = vsel %vm3103_vm2, %v504_v45, %v508_v38  ;;  %v454_v33 = vrot.slane %v452_v47, 4  ;;  %v2782_v38 = vld [vmem:[%s3776_s2 + $0xa0] sm:$0xff]  ;;  %v629_v43 = vunpack.c.l.b16 %v499_v63  ;;  %v460_v46 = vrot.slane %v458_v26, 5  ;;  %v2797_v26 = vld [vmem:[%s3776_s2 + $0x118] sm:$0xff] }
  0x42   : > { %1197 = vmatpush.bf16.msrb.mxu3 %v2793_v29  ;;  %1355 = vmatpush.bf16.msrb.mxu0 %v2801_v31  ;;  %v444_v25 = vrot.slane %v442_v11, 5  ;;  %v557_v29 = vsel %vm3103_vm2, %v552_v52, %v556_v54  ;;  %v600_v31 = vrot.slane %v599_v19, 4  ;;  %v595_v1 = vsel %vm3103_vm2, %v590_v7, %v594_v49  ;;  %v2798_v63 = vld [vmem:[%s3776_s2 + $0x120] sm:$0xff]  ;;  %v2765_v11 = vld [vmem:[%s3776_s2 + $0x18] sm:$0xff] }
  0x43   : > { %v455_v45 = vor.u32 %v454_v33, %v450_v32  ;;  %v630_v51 = vunpack.c.l.b16 %v509_v23  ;;  %v633_v52 = vunpack.c.l.b16 %v547_v24  ;;  %v634_v49 = vunpack.c.l.b16 %v557_v29  ;;  %v2789_v24 = vld [vmem:[%s3776_s2 + $0xd8] sm:$0xff]  ;;  %v2780_v29 = vld [vmem:[%s3776_s2 + $0x90] sm:$0xff] }
  0x44   : > { %1062 = vmatpush.bf16.msrb.mxu2 %v2784_v35  ;;  %849 = vmatpush.bf16.msrb.mxu1 %v2768_v37  ;;  %v2799_v35 = vld [vmem:[%s3776_s2 + $0x128] sm:$0xff]  ;;  %v445_v37 = vor.u32 %v444_v25, %v441_v8  ;;  %v605_v44 = vsel %vm3103_vm2, %v600_v31, %v604_v0  ;;  %v637_v55 = vunpack.c.l.b16 %v595_v1  ;;  %v2781_v8 = vld [vmem:[%s3776_s2 + $0x98] sm:$0xff]  ;;  %v910_v23 = vrot.slane %v3113_v53, 5  ;;  %v2764_v53 = vld [vmem:[%s3776_s2 + $0x10] sm:$0xff] }
  0x45   : > { %v638_v56 = vunpack.c.l.b16 %v605_v44  ;;  %v3293_v7 = vpack.c.b16 %v630_v51, %v629_v43  ;;  %v3295_v19 = vpack.c.b16 %v634_v49, %v633_v52  ;;  %vm905_vm3 = vcmask 1042432   ;;  %v2795_v43 = vld [vmem:[%s3776_s2 + $0x108] sm:$0xff]  ;;  %v2778_v44 = vld [vmem:[%s3776_s2 + $0x80] sm:$0xff]  ;;  %v2817_v52 = vld [vmem:[%s3776_s2 + $0x1b8] sm:$0xff] }
  0x46   : > { %1198 = vmatpush.bf16.msrb.mxu3 %v2792_v58  ;;  %1356 = vmatpush.bf16.msrb.mxu0 %v2800_v60  ;;  %v446_v54 = vrot.slane %v445_v37, 4  ;;  %v456_v58 = vrot.slane %v455_v45, 4  ;;  %v2790_v60 = vld [vmem:[%s3776_s2 + $0xe0] sm:$0xff]  ;;  %vm906_vm4 = vcmask 1046532   ;;  %v2394_v31 = vrot.slane %v3099_v41, 9  ;;  %v2779_v41 = vld [vmem:[%s3776_s2 + $0x88] sm:$0xff] }
  0x47   : > { %v3297_v47 = vpack.c.b16 %v638_v56, %v637_v55  ;;  %v913_v33 = vrot.slane %v3123_v62, 5  ;;  %vm3326_vm5 = vmor %vm905_vm3, %vm906_vm4  ;;  %v2763_v62 = vld [vmem:[%s3776_s2 + $0x8] sm:$0xff]  ;;  %v2762_v45 = vld [vmem:[%s3776_s2] sm:$0xff] }
  0x48   : > { %1063 = vmatpush.bf16.msrb.mxu2 %v2783_v12  ;;  %850 = vmatpush.bf16.msrb.mxu1 %v2767_v15  ;;  %v451_v0 = vsel %vm3103_vm2, %v446_v54, %v450_v32  ;;  %v461_v12 = vsel %vm3103_vm2, %v456_v58, %v460_v46  ;;  %v912_v32 = vrot.slane %v910_v23, 4  ;;  %v911_v37 = vsel %vm3326_vm5, %v2394_v31, %v910_v23  ;;  %v2809_v49 = vld [vmem:[%s3776_s2 + $0x178] sm:$0xff]  ;;  %v2786_v55 = vld [vmem:[%s3776_s2 + $0xc0] sm:$0xff] }
  0x49   : > { %v625_v15 = vunpack.c.l.b16 %v451_v0  ;;  %v626_v22 = vunpack.c.l.b16 %v461_v12  ;;  %v981_v46 = vunpack.c.l.b16 %v911_v37  ;;  %v924_v54 = vrot.slane %v3050_v4, 5  ;;  %v2794_v56 = vld [vmem:[%s3776_s2 + $0x100] sm:$0xff]  ;;  %v2825_v4 = vld [vmem:[%s3776_s2 + $0x1f8] sm:$0xff]  ;;  %v2753_v12 = vld [vmem:[%s3015_s14 + $0xc] sm:$0xff] }
  0x4a   : > { %1199 = vmatpush.bf16.msrb.mxu3 %v2791_v34  ;;  %1357 = vmatpush.bf16.msrb.mxu0 %v2799_v35  ;;  %v2788_v34 = vld [vmem:[%s3776_s2 + $0xd0] sm:$0xff]  ;;  %v2396_v58 = vrot.slane %v3047_v3, 9  ;;  %v2833_v0 = vld [vmem:[%s3776_s2 + $0x238] sm:$0xff]  ;;  %v2395_v31 = vrot.slane %v3208_v28, 9  ;;  %v2831_v28 = vld [vmem:[%s3776_s2 + $0x228] sm:$0xff] }
  0x4b   : > { %v3303_v25 = vpack.c.b16 %v626_v22, %v625_v15  ;;  %v2796_v35 = vld [vmem:[%s3776_s2 + $0x110] sm:$0xff]  ;;  %v917_v15 = vrot.slane %v3228_v50, 5 }
  0x4c   : > { %1064 = vmatpush.bf16.msrb.mxu2 %v2782_v38  ;;  %851 = vmatpush.bf16.msrb.mxu1 %v2766_v40  ;;  %v914_v38 = vsel %vm3326_vm5, %v912_v32, %v913_v33  ;;  %v2787_v40 = vld [vmem:[%s3776_s2 + $0xc8] sm:$0xff]  ;;  %v925_v3 = vsel %vm3326_vm5, %v2396_v58, %v924_v54  ;;  %v2832_v50 = vld [vmem:[%s3776_s2 + $0x230] sm:$0xff]  ;;  %v920_v33 = vrot.slane %v3233_v57, 5 }
  0x4d   : > { %v982_v51 = vunpack.c.l.b16 %v914_v38  ;;  %v985_v22 = vunpack.c.l.b16 %v925_v3  ;;  %v919_v32 = vrot.slane %v917_v15, 4  ;;  %v918_v57 = vsel %vm3326_vm5, %v2395_v31, %v917_v15  ;;  %v3443_v58 = vld [vmem:[%s3015_s14 + $0x24] sm:$0xff]  ;;  %v2812_v15 = vld [vmem:[%s3776_s2 + $0x190] sm:$0xff] }
  0x4e   : > { %1200 = vmatpush.bf16.msrb.mxu3 %v2790_v60  ;;  %1358 = vmatpush.bf16.msrb.mxu0 %v2798_v63  ;;  %v926_v60 = vrot.slane %v924_v54, 4  ;;  %v927_v63 = vrot.slane %v3060_v10, 5  ;;  %v931_v38 = vrot.slane %v3137_v14, 5  ;;  %v2822_v14 = vld [vmem:[%s3776_s2 + $0x1e0] sm:$0xff]  ;;  %v2398_v3 = vrot.slane %v3057_v9, 9  ;;  %v2828_v9 = vld [vmem:[%s3776_s2 + $0x210] sm:$0xff] }
  0x4f   : > { %726 = vmatmul.bf16.gmra.mxu1 %v3293_v7  ;;  %736 = vmatmul.bf16.gmra.mxu2 %v3295_v19  ;;  %v945_v31 = vrot.slane %v3157_v36, 5  ;;  %v2819_v36 = vld [vmem:[%s3776_s2 + $0x1c8] sm:$0xff] }
  0x50   : > { %1065 = vmatpush.bf16.msrb.mxu2 %v2781_v8  ;;  %852 = vmatpush.bf16.msrb.mxu1 %v2765_v11  ;;  %v2752_v8 = vld [vmem:[%s3015_s14] sm:$0xff]  ;;  %v997_v11 = vpack.c.b16 %v982_v51, %v981_v46  ;;  %v928_v10 = vsel %vm3326_vm5, %v926_v60, %v927_v63  ;;  %v2813_v60 = vld [vmem:[%s3776_s2 + $0x198] sm:$0xff] }
  0x51   : > { %746 = vmatmul.bf16.gmra.mxu3 %v3297_v47  ;;  %716 = vmatmul.bf16.gmra.mxu0 %v3303_v25  ;;  %v986_v23 = vunpack.c.l.b16 %v928_v10  ;;  %v2821_v63 = vld [vmem:[%s3776_s2 + $0x1d8] sm:$0xff] }
  0x52   : > { %1201 = vmatpush.bf16.msrb.mxu3 %v2789_v24  ;;  %1359 = vmatpush.bf16.msrb.mxu0 %v2797_v26  ;;  %v2816_v24 = vld [vmem:[%s3776_s2 + $0x1b0] sm:$0xff] }
  0x53   : > { %v2808_v26 = vld [vmem:[%s3776_s2 + $0x170] sm:$0xff] }
  0x54   : > { %1066 = vmatpush.bf16.msrb.mxu2 %v2780_v29  ;;  %853 = vmatpush.bf16.msrb.mxu1 %v2764_v53  ;;  %v2824_v29 = vld [vmem:[%s3776_s2 + $0x1f0] sm:$0xff]  ;;  %v3392_v53 = vpack.c.b16 %v986_v23, %v985_v22 }
  0x55   : > { %v2804_v22 = vld [vmem:[%s3776_s2 + $0x150] sm:$0xff] }
  0x56   : > { %1202 = vmatpush.bf16.msrb.mxu3 %v2788_v34  ;;  %1360 = vmatpush.bf16.msrb.mxu0 %v2796_v35  ;;  %v2815_v34 = vld [vmem:[%s3776_s2 + $0x1a8] sm:$0xff] }
  0x57   : > { %v2807_v35 = vld [vmem:[%s3776_s2 + $0x168] sm:$0xff] }
  0x58   : > { %1067 = vmatpush.bf16.msrb.mxu2 %v2779_v41  ;;  %854 = vmatpush.bf16.msrb.mxu1 %v2763_v62  ;;  %v921_v41 = vsel %vm3326_vm5, %v919_v32, %v920_v33  ;;  %v983_v62 = vunpack.c.l.b16 %v918_v57  ;;  %v2399_v32 = vrot.slane %v3150_v30, 9  ;;  %v947_v33 = vrot.slane %v945_v31, 4 }
  0x59   : > { %v984_v37 = vunpack.c.l.b16 %v921_v41 }
  0x5a   : > { %1203 = vmatpush.bf16.msrb.mxu3 %v2787_v40  ;;  %1361 = vmatpush.bf16.msrb.mxu0 %v2795_v43  ;;  %v2397_v40 = vrot.slane %v3127_v5, 9  ;;  %v933_v43 = vrot.slane %v931_v38, 4  ;;  %v2814_v5 = vld [vmem:[%s3776_s2 + $0x1a0] sm:$0xff]  ;;  %v946_v30 = vsel %vm3326_vm5, %v2399_v32, %v945_v31  ;;  %v2401_v31 = vrot.slane %v3176_v59, 9 }
  0x5b   : > { %v991_v57 = vunpack.c.l.b16 %v946_v30 }
  0x5c   : > { %1068 = vmatpush.bf16.msrb.mxu2 %v2778_v44  ;;  %855 = vmatpush.bf16.msrb.mxu1 %v2762_v45  ;;  %v934_v44 = vrot.slane %v3164_v48, 5  ;;  %v3416_v45 = vpack.c.b16 %v984_v37, %v983_v62  ;;  %v932_v46 = vsel %vm3326_vm5, %v2397_v40, %v931_v38  ;;  %v2806_v48 = vld [vmem:[%s3776_s2 + $0x160] sm:$0xff]  ;;  %v3518_v37 = vld [vmem:[%s3015_s14 + $0x48] sm:$0xff]  ;;  %v952_v38 = vrot.slane %v3083_v27, 5 }
  0x5d   : > { %v2400_v40 = vrot.slane %v3072_v18, 9  ;;  %v2818_v27 = vld [vmem:[%s3776_s2 + $0x1c0] sm:$0xff] }
  0x5e   : > { %1204 = vmatpush.bf16.msrb.mxu3 %v2786_v55  ;;  %1362 = vmatpush.bf16.msrb.mxu0 %v2794_v56  ;;  %v935_v51 = vsel %vm3326_vm5, %v933_v43, %v934_v44  ;;  %v2830_v56 = vld [vmem:[%s3776_s2 + $0x220] sm:$0xff]  ;;  %v954_v43 = vrot.slane %v952_v38, 4  ;;  %v955_v44 = vrot.slane %v3095_v39, 5 }
  0x5f   : > { %856 = vmatmul.bf16.vlgmr.msrb.gmra.mxu1 %v2752_v8  ;;  %1069 = vmatmul.bf16.vlgmr.msrb.gmra.mxu2 %v997_v11  ;;  %v988_v54 = vunpack.c.l.b16 %v935_v51  ;;  %v3462_v8 = vld [vmem:[%s3015_s14 + $0x30] sm:$0xff]  ;;  %v938_v11 = vrot.slane %v3063_v13, 5  ;;  %v3534_v51 = vld [vmem:[%s3030_s29] sm:$0xf]  ;;  %v953_v39 = vsel %vm3326_vm5, %v2400_v40, %v952_v38 }
  0x60   : > { %1633 = vmatpush.bf16.msra.mxu2 %v2817_v52  ;;  %1497 = vmatpush.bf16.msra.mxu1 %v2809_v49  ;;  %v3423_v52 = vld [vmem:[%s3015_s14 + $0x18] sm:$0xff]  ;;  %v987_v49 = vunpack.c.l.b16 %v932_v46  ;;  %v2820_v13 = vld [vmem:[%s3776_s2 + $0x1d0] sm:$0xff]  ;;  %v2810_v46 = vld [vmem:[%s3776_s2 + $0x180] sm:$0xff] }
  0x61   : > { %1205 = vmatmul.bf16.vlgmr.msrb.gmra.mxu3 %v2753_v12  ;;  %1363 = vmatmul.bf16.vlgmr.msrb.gmra.mxu0 %v3303_v25  ;;  %v2823_v25 = vld [vmem:[%s3776_s2 + $0x1e8] sm:$0xff]  ;;  %v940_v10 = vrot.slane %v938_v11, 4  ;;  %v2802_v18 = vld [vmem:[%s3776_s2 + $0x140] sm:$0xff] }
  0x62   : > { %1791 = vmatpush.bf16.msra.mxu3 %v2825_v4  ;;  %1933 = vmatpush.bf16.msra.mxu0 %v2833_v0  ;;  %v3425_v55 = vpack.c.b16 %v988_v54, %v987_v49  ;;  %v2805_v4 = vld [vmem:[%s3776_s2 + $0x158] sm:$0xff]  ;;  %v3537_v49 = vld [vmem:[%s3030_s29 + $0x4] sm:$0xf]  ;;  %v956_v54 = vsel %vm3326_vm5, %v954_v43, %v955_v44 }
  0x63   : > { %v2829_v0 = vld [vmem:[%s3776_s2 + $0x218] sm:$0xff] }
  0x64   : > { %1634 = vmatpush.bf16.msra.mxu2 %v2816_v24  ;;  %1498 = vmatpush.bf16.msra.mxu1 %v2808_v26 }
  0x66   : > { %1792 = vmatpush.bf16.msra.mxu3 %v2824_v29  ;;  %1934 = vmatpush.bf16.msra.mxu0 %v2832_v50  ;;  %v3490_v50 = vld [vmem:[%s3015_s14 + $0x3c] sm:$0xff] }
  0x68   : > { %1635 = vmatpush.bf16.msra.mxu2 %v2815_v34  ;;  %1499 = vmatpush.bf16.msra.mxu1 %v2807_v35  ;;  %v948_v34 = vrot.slane %v3179_v61, 5  ;;  %v2811_v35 = vld [vmem:[%s3776_s2 + $0x188] sm:$0xff] }
  0x6a   : > { %1793 = vmatpush.bf16.msra.mxu3 %v2823_v25  ;;  %1935 = vmatpush.bf16.msra.mxu0 %v2831_v28  ;;  %v2803_v25 = vld [vmem:[%s3776_s2 + $0x148] sm:$0xff]  ;;  %v949_v61 = vsel %vm3326_vm5, %v947_v33, %v948_v34  ;;  %v962_v33 = vrot.slane %v3201_v21, 5 }
  0x6b   : > { %v2827_v28 = vld [vmem:[%s3776_s2 + $0x208] sm:$0xff]  ;;  %v992_v41 = vunpack.c.l.b16 %v949_v61 }
  0x6c   : > { %1636 = vmatpush.bf16.msra.mxu2 %v2814_v5  ;;  %1500 = vmatpush.bf16.msra.mxu1 %v2806_v48  ;;  %v1263_v5 = vshrl.u32 %v3534_v51, 16  ;;  %v1272_v48 = vshll.u32 %v3537_v49, 16 }
  0x6d   : > { %v3515_v62 = vpack.c.b16 %v992_v41, %v991_v57 }
  0x6e   : > { %1794 = vmatpush.bf16.msra.mxu3 %v2822_v14  ;;  %1936 = vmatpush.bf16.msra.mxu0 %v2830_v56  ;;  %v1266_v14 = vshll.u32 %v3534_v51, 16  ;;  %v1276_v56 = vshrl.u32 %v3537_v49, 16 }
  0x6f   : > { %861 = vmatmul.bf16.gmra.mxu1 %v2753_v12  ;;  %1074 = vmatmul.bf16.gmra.mxu2 %v3416_v45  ;;  %v941_v12 = vrot.slane %v3075_v20, 5  ;;  %v939_v20 = vsel %vm3326_vm5, %v2398_v3, %v938_v11  ;;  %v1274_v3 = vrot.slane %v1272_v48, 5 }
  0x70   : > { %1637 = vmatpush.bf16.msra.mxu2 %v2813_v60  ;;  %1501 = vmatpush.bf16.msra.mxu1 %v2805_v4  ;;  %v989_v24 = vunpack.c.l.b16 %v939_v20  ;;  %v2826_v60 = vld [vmem:[%s3776_s2 + $0x200] sm:$0xff]  ;;  %v994_v4 = vunpack.c.l.b16 %v956_v54  ;;  %v1268_v11 = vrot.slane %v1266_v14, 5 }
  0x71   : > { %1210 = vmatmul.bf16.gmra.mxu3 %v3423_v52  ;;  %1368 = vmatmul.bf16.gmra.mxu0 %v3183_v2  ;;  %v942_v23 = vsel %vm3326_vm5, %v940_v10, %v941_v12  ;;  %v1278_v10 = vrot.slane %v1276_v56, 4  ;;  %v3554_v12 = vld [vmem:[%s3030_s29 + $0x8] sm:$0x1] }
  0x72   : > { %1795 = vmatpush.bf16.msra.mxu3 %v2821_v63  ;;  %1937 = vmatpush.bf16.msra.mxu0 %v2829_v0  ;;  %v990_v26 = vunpack.c.l.b16 %v942_v23  ;;  %v993_v63 = vunpack.c.l.b16 %v953_v39  ;;  %v1265_v0 = vrot.slane %v1263_v5, 4  ;;  %v3594_v39 = vld [vmem:[%s3030_s29] sm:$0xff] }
  0x74   : > { %1638 = vmatpush.bf16.msra.mxu2 %v2812_v15  ;;  %1502 = vmatpush.bf16.msra.mxu1 %v2804_v22  ;;  %v3487_v29 = vpack.c.b16 %v990_v26, %v989_v24  ;;  %v3556_v15 = vpack.c.b16 %v994_v4, %v993_v63  ;;  %v3561_v22 = vld [vmem:[%s3015_s14 + $0x54] sm:$0xff]  ;;  %v1269_v23 = vor.u32 %v1268_v11, %v1265_v0  ;;  %v1282_v26 = vshll.u32 %v3554_v12, 16 }
  0x75   : > { %v1279_v24 = vor.u32 %v1278_v10, %v1274_v3 }
  0x76   : > { %1796 = vmatpush.bf16.msra.mxu3 %v2820_v13  ;;  %1938 = vmatpush.bf16.msra.mxu0 %v2828_v9  ;;  %v959_v9 = vrot.slane %v3195_v16, 5  ;;  %v1270_v34 = vrot.slane %v1269_v23, 4 }
  0x77   : > { %v1280_v16 = vrot.slane %v1279_v24, 4 }
  0x78   : > { %1639 = vmatpush.bf16.msra.mxu2 %v2811_v35  ;;  %1503 = vmatpush.bf16.msra.mxu1 %v2803_v25  ;;  %v961_v32 = vrot.slane %v959_v9, 4  ;;  %v1284_v35 = vrot.slane %v1282_v26, 5  ;;  %v960_v61 = vsel %vm3326_vm5, %v2401_v31, %v959_v9  ;;  %v1275_v21 = vsel %vm3103_vm2, %v1270_v34, %v1274_v3 }
  0x79   : > { %v995_v41 = vunpack.c.l.b16 %v960_v61  ;;  %v1303_v40 = vunpack.c.l.b16 %v1275_v21 }
  0x7a   : > { %1797 = vmatpush.bf16.msra.mxu3 %v2819_v36  ;;  %1939 = vmatpush.bf16.msra.mxu0 %v2827_v28  ;;  %v963_v28 = vsel %vm3326_vm5, %v961_v32, %v962_v33  ;;  %v1285_v57 = vsel %vm3103_vm2, %v1280_v16, %v1284_v35 }
  0x7b   : > { %v996_v38 = vunpack.c.l.b16 %v963_v28  ;;  %v1304_v43 = vunpack.c.l.b16 %v1285_v57 }
  0x7c   : > { %1640 = vmatpush.bf16.msra.mxu2 %v2810_v46  ;;  %1504 = vmatpush.bf16.msra.mxu1 %v2802_v18 }
  0x7d   : > { %v3596_v54 = vpack.c.b16 %v1304_v43, %v1303_v40 }
  0x7e   : > { %1798 = vmatpush.bf16.msra.mxu3 %v2818_v27  ;;  %1940 = vmatpush.bf16.msra.mxu0 %v2826_v60  ;;  %v3589_v27 = vpack.c.b16 %v996_v38, %v995_v41 }
  0x7f   : > { %866 = vmatmul.bf16.gmra.mxu1 %v3423_v52  ;;  %1079 = vmatmul.bf16.gmra.mxu2 %v3392_v53 }
  0x81   : > { %1215 = vmatmul.bf16.gmra.mxu3 %v3443_v58  ;;  %1373 = vmatmul.bf16.gmra.mxu0 %v3293_v7 }
  0x8f   : > { %871 = vmatmul.bf16.gmra.mxu1 %v3443_v58  ;;  %1084 = vmatmul.bf16.gmra.mxu2 %v3425_v55 }
  0x91   : > { %1220 = vmatmul.bf16.gmra.mxu3 %v3462_v8  ;;  %1378 = vmatmul.bf16.gmra.mxu0 %v3185_v6 }
  0x9f   : > { %876 = vmatmul.bf16.gmra.mxu1 %v3462_v8  ;;  %1089 = vmatmul.bf16.gmra.mxu2 %v3487_v29 }
  0xa1   : > { %1225 = vmatmul.bf16.gmra.mxu3 %v3490_v50  ;;  %1383 = vmatmul.bf16.gmra.mxu0 %v3295_v19 }
  0xaf   : > { %881 = vmatmul.bf16.gmra.mxu1 %v3490_v50  ;;  %1094 = vmatmul.bf16.gmra.mxu2 %v3515_v62 }
  0xb1   : > { %1230 = vmatmul.bf16.gmra.mxu3 %v3518_v37  ;;  %1388 = vmatmul.bf16.gmra.mxu0 %v3197_v17 }
  0xbc   : > { %v3558_v13 = vpop.f32.mrf.mxu1 }
  0xbe   : > { %v712_v20 = vpop.f32.mrf.mxu0 }
  0xbf   : > { %886 = vmatmul.bf16.gmra.mxu1 %v3518_v37  ;;  %1099 = vmatmul.bf16.gmra.mxu2 %v3556_v15 }
  0xc1   : > { %1235 = vmatmul.bf16.gmra.mxu3 %v3561_v22  ;;  %1393 = vmatmul.bf16.gmra.mxu0 %v3297_v47 }
  0xc2   : > { %v3571_v36 = vpop.f32.mrf.mxu2 }
  0xc4   : > { %v3573_v25 = vpop.f32.mrf.mxu3  ;;  %v3575_v30 = vpop.f32.mrf.mxu1 }
  0xc6   : > { %v714_v59 = vpop.f32.mrf.mxu0 }
  0xca   : > { %v3585_v44 = vpop.f32.mrf.mxu2 }
  0xcc   : > { %v3587_v46 = vpop.f32.mrf.mxu3  ;;  %v3591_v18 = vpop.f32.mrf.mxu1 }
  0xce   : > { %v717_v5 = vpop.f32.mrf.mxu0 }
  0xcf   : > { %891 = vmatmul.bf16.gmra.mxu1 %v3561_v22  ;;  %1104 = vmatmul.bf16.gmra.mxu2 %v3589_v27 }
  0xd1   : > { %1240 = vmatmul.bf16.gmra.mxu3 %v3594_v39  ;;  %1398 = vmatmul.bf16.gmra.mxu0 %v3596_v54 }
  0xd2   : > { %v3602_v14 = vpop.f32.mrf.mxu2 }
  0xd4   : > { %v3604_v48 = vpop.f32.mrf.mxu3  ;;  %v3606_v56 = vpop.f32.mrf.mxu1 }
  0xd6   : > { %v719_v60 = vpop.f32.mrf.mxu0 }
  0xda   : > { %v3608_v63 = vpop.f32.mrf.mxu2 }
  0xdc   : > { %v3610_v4 = vpop.f32.mrf.mxu3  ;;  %v857_v0 = vpop.f32.mrf.mxu1 }
  0xdd   : > { %v858_v11 = vadd.f32 %v857_v0, %v712_v20 }
  0xde   : > { %v1364_v3 = vpop.f32.mrf.mxu0 }
  0xdf   : > { %1505 = vmatmul.bf16.vlgmr.msra.gmra.mxu1 %v3416_v45  ;;  %1641 = vmatmul.bf16.vlgmr.msra.gmra.mxu2 %v3423_v52 }
  0xe1   : > { %1799 = vmatmul.bf16.vlgmr.msra.gmra.mxu3 %v3183_v2  ;;  %1941 = vmatmul.bf16.vlgmr.msra.gmra.mxu0 %v3392_v53 }
  0xe2   : > { %v1070_v10 = vpop.f32.mrf.mxu2 }
  0xe3   : > { %v1110_v9 = vadd.f32 %v1070_v10, %v858_v11 }
  0xe4   : > { %v1206_v23 = vpop.f32.mrf.mxu3  ;;  %v859_v24 = vpop.f32.mrf.mxu1 }
  0xe5   : > { %v1246_v26 = vadd.f32 %v1206_v23, %v1110_v9  ;;  %v860_v31 = vadd.f32 %v859_v24, %v714_v59 }
  0xe6   : > { %v1366_v32 = vpop.f32.mrf.mxu0 }
  0xe7   : > { %v3616_v33 = vadd.f32 %v1364_v3, %v1246_v26 }
  0xea   : > { %v1072_v34 = vpop.f32.mrf.mxu2 }
  0xeb   : > { %v1111_v20 = vadd.f32 %v1072_v34, %v860_v31 }
  0xec   : > { %v1208_v16 = vpop.f32.mrf.mxu3  ;;  %v862_v35 = vpop.f32.mrf.mxu1 }
  0xed   : > { %v1247_v45 = vadd.f32 %v1208_v16, %v1111_v20  ;;  %v863_v61 = vadd.f32 %v862_v35, %v717_v5 }
  0xee   : > { %v1369_v52 = vpop.f32.mrf.mxu0 }
  0xef   : > { %1510 = vmatmul.bf16.gmra.mxu1 %v3392_v53  ;;  %1646 = vmatmul.bf16.gmra.mxu2 %v3443_v58  ;;  %v3620_v2 = vadd.f32 %v1366_v32, %v1247_v45 }
  0xf1   : > { %1804 = vmatmul.bf16.gmra.mxu3 %v3293_v7  ;;  %1946 = vmatmul.bf16.gmra.mxu0 %v3425_v55 }
  0xf2   : > { %v1075_v28 = vpop.f32.mrf.mxu2 }
  0xf3   : > { %v1112_v59 = vadd.f32 %v1075_v28, %v863_v61 }
  0xf4   : > { %v1211_v21 = vpop.f32.mrf.mxu3  ;;  %v864_v57 = vpop.f32.mrf.mxu1 }
  0xf5   : > { %v1248_v41 = vadd.f32 %v1211_v21, %v1112_v59  ;;  %v865_v38 = vadd.f32 %v864_v57, %v719_v60 }
  0xf6   : > { %v1371_v40 = vpop.f32.mrf.mxu0 }
  0xf7   : > { %v3624_v43 = vadd.f32 %v1369_v52, %v1248_v41 }
  0xfa   : > { %v1077_v5 = vpop.f32.mrf.mxu2 }
  0xfb   : > { %v1113_v0 = vadd.f32 %v1077_v5, %v865_v38 }
  0xfc   : > { %v1213_v53 = vpop.f32.mrf.mxu3  ;;  %v867_v11 = vpop.f32.mrf.mxu1 }
  0xfd   : > { %v1249_v58 = vadd.f32 %v1213_v53, %v1113_v0  ;;  %v868_v3 = vadd.f32 %v867_v11, %v3558_v13 }
  0xfe   : > { %v1374_v10 = vpop.f32.mrf.mxu0 }
  0xff   : > { %1515 = vmatmul.bf16.gmra.mxu1 %v3425_v55  ;;  %1651 = vmatmul.bf16.gmra.mxu2 %v3462_v8  ;;  %v3629_v7 = vadd.f32 %v1371_v40, %v1249_v58 }
 0x101   : > { %1809 = vmatmul.bf16.gmra.mxu3 %v3185_v6  ;;  %1951 = vmatmul.bf16.gmra.mxu0 %v3487_v29 }
 0x102   : > { %v1080_v60 = vpop.f32.mrf.mxu2 }
 0x103   : > { %v1114_v9 = vadd.f32 %v1080_v60, %v868_v3 }
 0x104   : > { %v1216_v23 = vpop.f32.mrf.mxu3  ;;  %v869_v24 = vpop.f32.mrf.mxu1 }
 0x105   : > { %v1250_v26 = vadd.f32 %v1216_v23, %v1114_v9  ;;  %v870_v31 = vadd.f32 %v869_v24, %v3575_v30 }
 0x106   : > { %v1376_v32 = vpop.f32.mrf.mxu0 }
 0x107   : > { %v3634_v13 = vadd.f32 %v1374_v10, %v1250_v26 }
 0x10a   : > { %v1082_v34 = vpop.f32.mrf.mxu2 }
 0x10b   : > { %v1115_v55 = vadd.f32 %v1082_v34, %v870_v31  ;;  %v2550_v31 = vrot.slane %v3534_v51, 9  ;;  %v1426_v34 = vrot.slane %v3554_v12, 5 }
 0x10c   : > { %v1218_v20 = vpop.f32.mrf.mxu3  ;;  %v872_v8 = vpop.f32.mrf.mxu1 }
 0x10d   : > { %v1251_v16 = vadd.f32 %v1218_v20, %v1115_v55  ;;  %v873_v35 = vadd.f32 %v872_v8, %v3591_v18  ;;  %v392_v55 = vld [vmem:[%s3030_s29 + $0xc] sm:$0xf]  ;;  %v393_v20 = vld [vmem:[%s3030_s29 + $0x10] sm:$0xf] }
 0x10e   : > { %v1379_v6 = vpop.f32.mrf.mxu0 }
 0x10f   : > { %1520 = vmatmul.bf16.gmra.mxu1 %v3487_v29  ;;  %1656 = vmatmul.bf16.gmra.mxu2 %v3490_v50  ;;  %v3639_v45 = vadd.f32 %v1376_v32, %v1251_v16 }
 0x111   : > { %1814 = vmatmul.bf16.gmra.mxu3 %v3295_v19  ;;  %1956 = vmatmul.bf16.gmra.mxu0 %v3515_v62 }
 0x112   : > { %v1085_v30 = vpop.f32.mrf.mxu2 }
 0x113   : > { %v1116_v61 = vadd.f32 %v1085_v30, %v873_v35  ;;  %v1699_v35 = vshrl.u32 %v392_v55, 16  ;;  %v1712_v30 = vshrl.u32 %v393_v20, 16 }
 0x114   : > { %v1221_v52 = vpop.f32.mrf.mxu3  ;;  %v874_v28 = vpop.f32.mrf.mxu1 }
 0x115   : > { %v1252_v59 = vadd.f32 %v1221_v52, %v1116_v61  ;;  %v875_v21 = vadd.f32 %v874_v28, %v3606_v56 }
 0x116   : > { %v1381_v57 = vpop.f32.mrf.mxu0 }
 0x117   : > { %v3644_v18 = vadd.f32 %v1379_v6, %v1252_v59  ;;  %v1702_v6 = vshll.u32 %v392_v55, 16 }
 0x11a   : > { %v1087_v41 = vpop.f32.mrf.mxu2 }
 0x11b   : > { %v1117_v29 = vadd.f32 %v1087_v41, %v875_v21  ;;  %v1701_v21 = vrot.slane %v1699_v35, 4 }
 0x11c   : > { %v1223_v38 = vpop.f32.mrf.mxu3  ;;  %v877_v50 = vpop.f32.mrf.mxu1 }
 0x11d   : > { %v1253_v40 = vadd.f32 %v1223_v38, %v1117_v29  ;;  %v878_v56 = vadd.f32 %v877_v50, %v3571_v36  ;;  %v1714_v29 = vrot.slane %v1712_v30, 4  ;;  %v394_v50 = vld [vmem:[%s3030_s29 + $0x14] sm:$0x1] }
 0x11e   : > { %v1384_v5 = vpop.f32.mrf.mxu0 }
 0x11f   : > { %1525 = vmatmul.bf16.gmra.mxu1 %v3515_v62  ;;  %1661 = vmatmul.bf16.gmra.mxu2 %v3518_v37  ;;  %v3648_v19 = vadd.f32 %v1381_v57, %v1253_v40  ;;  %v1704_v57 = vrot.slane %v1702_v6, 5 }
 0x121   : > { %1819 = vmatmul.bf16.gmra.mxu3 %v3197_v17  ;;  %1961 = vmatmul.bf16.gmra.mxu0 %v3556_v15  ;;  %v1423_v17 = vrot.slane %v3537_v49, 5 }
 0x122   : > { %v1090_v0 = vpop.f32.mrf.mxu2 }
 0x123   : > { %v1118_v53 = vadd.f32 %v1090_v0, %v878_v56  ;;  %v1425_v32 = vrot.slane %v1423_v17, 4 }
 0x124   : > { %v1226_v11 = vpop.f32.mrf.mxu3  ;;  %v879_v58 = vpop.f32.mrf.mxu1 }
 0x125   : > { %v1254_v3 = vadd.f32 %v1226_v11, %v1118_v53  ;;  %v880_v62 = vadd.f32 %v879_v58, %v3585_v44  ;;  %v1427_v51 = vsel %vm3326_vm5, %v1425_v32, %v1426_v34  ;;  %v1705_v11 = vor.u32 %v1704_v57, %v1701_v21 }
 0x126   : > { %v1386_v10 = vpop.f32.mrf.mxu0  ;;  %v1446_v28 = vunpack.c.l.b16 %v1427_v51 }
 0x127   : > { %v3653_v60 = vadd.f32 %v1384_v5, %v1254_v3  ;;  %v1718_v3 = vshll.u32 %v394_v50, 16 }
 0x12a   : > { %v1092_v9 = vpop.f32.mrf.mxu2 }
 0x12b   : > { %v1119_v37 = vadd.f32 %v1092_v9, %v880_v62  ;;  %v1859_v9 = vrot.slane %v393_v20, 5 }
 0x12c   : > { %v1228_v23 = vpop.f32.mrf.mxu3  ;;  %v882_v24 = vpop.f32.mrf.mxu1 }
 0x12d   : > { %v1255_v26 = vadd.f32 %v1228_v23, %v1119_v37  ;;  %v883_v49 = vadd.f32 %v882_v24, %v3602_v14 }
 0x12e   : > { %v1389_v36 = vpop.f32.mrf.mxu0 }
 0x12f   : > { %1530 = vmatmul.bf16.gmra.mxu1 %v3556_v15  ;;  %1666 = vmatmul.bf16.gmra.mxu2 %v3561_v22  ;;  %v3661_v44 = vadd.f32 %v1386_v10, %v1255_v26  ;;  %v1424_v22 = vsel %vm3326_vm5, %v2550_v31, %v1423_v17  ;;  %v1720_v17 = vrot.slane %v1718_v3, 5  ;;  %v2699_v26 = vrot.slane %v392_v55, 9 }
 0x130   : > { %v1445_v14 = vunpack.c.l.b16 %v1424_v22  ;;  %v1862_v31 = vrot.slane %v394_v50, 5 }
 0x131   : > { %1824 = vmatmul.bf16.gmra.mxu3 %v3297_v47  ;;  %1966 = vmatmul.bf16.gmra.mxu0 %v3589_v27  ;;  %v1708_v47 = vshll.u32 %v393_v20, 16 }
 0x132   : > { %v1095_v8 = vpop.f32.mrf.mxu2  ;;  %v1447_v53 = vpack.c.b16 %v1446_v28, %v1445_v14 }
 0x133   : > { %v1120_v16 = vadd.f32 %v1095_v8, %v883_v49  ;;  %v1710_v41 = vrot.slane %v1708_v47, 5 }
 0x134   : > { %v1231_v15 = vpop.f32.mrf.mxu3  ;;  %v884_v12 = vpop.f32.mrf.mxu1 }
 0x135   : > { %v1256_v61 = vadd.f32 %v1231_v15, %v1120_v16  ;;  %v885_v38 = vadd.f32 %v884_v12, %v3608_v63  ;;  %v1715_v58 = vor.u32 %v1714_v29, %v1710_v41  ;;  %v1706_v63 = vrot.slane %v1705_v11, 4 }
 0x136   : > { %v1391_v52 = vpop.f32.mrf.mxu0  ;;  %v1860_v16 = vsel %vm3326_vm5, %v2699_v26, %v1859_v9 }
 0x137   : > { %v3672_v59 = vadd.f32 %v1389_v36, %v1256_v61  ;;  %v1716_v23 = vrot.slane %v1715_v58, 4  ;;  %v1861_v36 = vrot.slane %v1859_v9, 4  ;;  %v1881_v51 = vunpack.c.l.b16 %v1860_v16  ;;  %v2761_v61 = vld [vmem:[%s3030_s29 + $0xc] sm:$0xff] }
 0x13a   : > { %v1097_v40 = vpop.f32.mrf.mxu2 }
 0x13b   : > { %v1121_v5 = vadd.f32 %v1097_v40, %v885_v38 }
 0x13c   : > { %v1233_v56 = vpop.f32.mrf.mxu3  ;;  %v887_v0 = vpop.f32.mrf.mxu1 }
 0x13d   : > { %v1257_v10 = vadd.f32 %v1233_v56, %v1121_v5  ;;  %v888_v24 = vadd.f32 %v887_v0, %v3573_v25  ;;  %v1863_v25 = vsel %vm3326_vm5, %v1861_v36, %v1862_v31 }
 0x13e   : > { %v1394_v62 = vpop.f32.mrf.mxu0  ;;  %v1882_v12 = vunpack.c.l.b16 %v1863_v25 }
 0x13f   : > { %1535 = vmatmul.bf16.gmra.mxu1 %v3589_v27  ;;  %1671 = vmatmul.bf16.gmra.mxu2 %v3594_v39  ;;  %v3678_v37 = vadd.f32 %v1391_v52, %v1257_v10  ;;  %v1711_v27 = vsel %vm3103_vm2, %v1706_v63, %v1710_v41 }
 0x140   : > { %v1739_v15 = vunpack.c.l.b16 %v1711_v27  ;;  %v1883_v14 = vpack.c.b16 %v1882_v12, %v1881_v51 }
 0x141   : > { %1829 = vmatmul.bf16.gmra.mxu3 %v3596_v54  ;;  %1971 = vmatmul.bf16.gmra.mxu0 %v1447_v53  ;;  %v1721_v54 = vsel %vm3103_vm2, %v1716_v23, %v1720_v17 }
 0x142   : > { %v1100_v32 = vpop.f32.mrf.mxu2  ;;  %v1740_v22 = vunpack.c.l.b16 %v1721_v54 }
 0x143   : > { %v1122_v34 = vadd.f32 %v1100_v32, %v888_v24 }
 0x144   : > { %v1236_v49 = vpop.f32.mrf.mxu3  ;;  %v889_v20 = vpop.f32.mrf.mxu1  ;;  %v1741_v52 = vpack.c.b16 %v1740_v22, %v1739_v15 }
 0x145   : > { %v1258_v39 = vadd.f32 %v1236_v49, %v1122_v34  ;;  %v890_v35 = vadd.f32 %v889_v20, %v3587_v46 }
 0x146   : > { %v1396_v8 = vpop.f32.mrf.mxu0 }
 0x147   : > { %v3690_v55 = vadd.f32 %v1394_v62, %v1258_v39 }
 0x14a   : > { %v1102_v6 = vpop.f32.mrf.mxu2 }
 0x14b   : > { %v1123_v47 = vadd.f32 %v1102_v6, %v890_v35 }
 0x14c   : > { %v1238_v30 = vpop.f32.mrf.mxu3  ;;  %v892_v42 = vpop.f32.mrf.mxu1 }
 0x14d   : > { %v1259_v28 = vadd.f32 %v1238_v30, %v1123_v47  ;;  %v893_v57 = vadd.f32 %v892_v42, %v3604_v48 }
 0x14e   : > { %v1399_v21 = vpop.f32.mrf.mxu0 }
 0x14f   : > { %1540 = vmatmul.bf16.gmra.mxu1 %v1447_v53  ;;  %1676 = vmatmul.bf16.gmra.mxu2 %v2761_v61  ;;  %v3694_v1 = vadd.f32 %v1396_v8, %v1259_v28 }
 0x151   : > { %1834 = vmatmul.bf16.gmra.mxu3 %v1741_v52  ;;  %1976 = vmatmul.bf16.gmra.mxu0 %v1883_v14 }
 0x152   : > { %v1105_v41 = vpop.f32.mrf.mxu2 }
 0x153   : > { %v1124_v29 = vadd.f32 %v1105_v41, %v893_v57 }
 0x154   : > { %v1241_v46 = vpop.f32.mrf.mxu3  ;;  %v894_v38 = vpop.f32.mrf.mxu1 }
 0x155   : > { %v1260_v50 = vadd.f32 %v1241_v46, %v1124_v29  ;;  %v895_v56 = vadd.f32 %v894_v38, %v3610_v4  ;;  %v3706_v4 = vld [vmem:[%s3777_s3] ss:$0 sm:$0xff] }
 0x156   : > { %v1401_v40 = vpop.f32.mrf.mxu0 }
 0x157   : > { %v3697_v5 = vadd.f32 %v1399_v21, %v1260_v50 }
 0x15a   : > { %v1107_v0 = vpop.f32.mrf.mxu2 }
 0x15b   : > { %v1125_v11 = vadd.f32 %v1107_v0, %v895_v56 }
 0x15c   : > { %v1243_v53 = vpop.f32.mrf.mxu3  ;;  %v1506_v58 = vpop.f32.mrf.mxu1 }
 0x15d   : > { %v1261_v3 = vadd.f32 %v1243_v53, %v1125_v11  ;;  %v1546_v48 = vadd.f32 %v1506_v58, %v3616_v33 }
 0x15e   : > { %v1942_v10 = vpop.f32.mrf.mxu0 }
 0x15f   : > { %v3700_v62 = vadd.f32 %v1401_v40, %v1261_v3 }
 0x162   : > { %v1642_v9 = vpop.f32.mrf.mxu2 }
 0x163   : > { %v1682_v63 = vadd.f32 %v1642_v9, %v1546_v48 }
 0x164   : > { %v1800_v23 = vpop.f32.mrf.mxu3  ;;  %v1508_v17 = vpop.f32.mrf.mxu1 }
 0x165   : > { %v1840_v24 = vadd.f32 %v1800_v23, %v1682_v63  ;;  %v1547_v32 = vadd.f32 %v1508_v17, %v3620_v2 }
 0x166   : > { %v1944_v26 = vpop.f32.mrf.mxu0 }
 0x167   : > { %v1982_v36 = vadd.f32 %v1942_v10, %v1840_v24 }
 0x169   : > { %v2002_v31 = vadd.f32 %v3706_v4, %v1982_v36 }
 0x16a   : > { %v1644_v34 = vpop.f32.mrf.mxu2 }
 0x16b   : > { %2018 = vst [vmem:[%s3035_s7] sm:$0xff] %v2002_v31  ;;  %v1683_v33 = vadd.f32 %v1644_v34, %v1547_v32  ;;  %v2059_v15 = vmul.f32 %v2002_v31, %v2002_v31 }
 0x16c   : > { %v1802_v49 = vpop.f32.mrf.mxu3  ;;  %v1511_v20 = vpop.f32.mrf.mxu1 }
 0x16d   : > { %v1841_v27 = vadd.f32 %v1802_v49, %v1683_v33  ;;  %v1548_v16 = vadd.f32 %v1511_v20, %v3624_v43 }
 0x16e   : > { %v1947_v39 = vpop.f32.mrf.mxu0 }
 0x16f   : > { %v1983_v8 = vadd.f32 %v1944_v26, %v1841_v27 }
 0x171   : > { %v2003_v54 = vadd.f32 %v3706_v4, %v1983_v8 }
 0x172   : > { %v1647_v25 = vpop.f32.mrf.mxu2 }
 0x173   : > { %2019 = vst [vmem:[%s3035_s7 + $0x8] sm:$0xff] %v2003_v54  ;;  %v2035_v22 = vadd.f32 %v2003_v54, %v2002_v31  ;;  %v2060_v51 = vmul.f32 %v2003_v54, %v2003_v54  ;;  %v1684_v12 = vadd.f32 %v1647_v25, %v1548_v16 }
 0x174   : > { %v1805_v2 = vpop.f32.mrf.mxu3  ;;  %v1513_v35 = vpop.f32.mrf.mxu1 }
 0x175   : > { %v2075_v6 = vadd.f32 %v2060_v51, %v2059_v15  ;;  %v1842_v47 = vadd.f32 %v1805_v2, %v1684_v12  ;;  %v1549_v52 = vadd.f32 %v1513_v35, %v3629_v7 }
 0x176   : > { %v1949_v30 = vpop.f32.mrf.mxu0 }
 0x177   : > { %v1984_v61 = vadd.f32 %v1947_v39, %v1842_v47 }
 0x179   : > { %v2004_v42 = vadd.f32 %v3706_v4, %v1984_v61 }
 0x17a   : > { %v1649_v14 = vpop.f32.mrf.mxu2 }
 0x17b   : > { %2020 = vst [vmem:[%s3035_s7 + $0x10] sm:$0xff] %v2004_v42  ;;  %v2036_v43 = vadd.f32 %v2035_v22, %v2004_v42  ;;  %v2061_v28 = vmul.f32 %v2004_v42, %v2004_v42  ;;  %v1685_v21 = vadd.f32 %v1649_v14, %v1549_v52 }
 0x17c   : > { %v1807_v57 = vpop.f32.mrf.mxu3  ;;  %v1516_v41 = vpop.f32.mrf.mxu1 }
 0x17d   : > { %v2076_v29 = vadd.f32 %v2075_v6, %v2061_v28  ;;  %v1843_v46 = vadd.f32 %v1807_v57, %v1685_v21  ;;  %v1550_v56 = vadd.f32 %v1516_v41, %v3634_v13 }
 0x17e   : > { %v1952_v38 = vpop.f32.mrf.mxu0 }
 0x17f   : > { %v1985_v50 = vadd.f32 %v1949_v30, %v1843_v46 }
 0x181   : > { %v2005_v40 = vadd.f32 %v3706_v4, %v1985_v50 }
 0x182   : > { %v1652_v0 = vpop.f32.mrf.mxu2 }
 0x183   : > { %2021 = vst [vmem:[%s3035_s7 + $0x18] sm:$0xff] %v2005_v40  ;;  %v2037_v11 = vadd.f32 %v2036_v43, %v2005_v40  ;;  %v2062_v7 = vmul.f32 %v2005_v40, %v2005_v40  ;;  %v1686_v53 = vadd.f32 %v1652_v0, %v1550_v56 }
 0x184   : > { %v1810_v58 = vpop.f32.mrf.mxu3  ;;  %v1518_v3 = vpop.f32.mrf.mxu1 }
 0x185   : > { %v2077_v10 = vadd.f32 %v2076_v29, %v2062_v7  ;;  %v1844_v48 = vadd.f32 %v1810_v58, %v1686_v53  ;;  %v1551_v17 = vadd.f32 %v1518_v3, %v3639_v45 }
 0x186   : > { %v1954_v9 = vpop.f32.mrf.mxu0 }
 0x187   : > { %v1986_v63 = vadd.f32 %v1952_v38, %v1844_v48 }
 0x189   : > { %v2006_v23 = vadd.f32 %v3706_v4, %v1986_v63 }
 0x18a   : > { %v1654_v24 = vpop.f32.mrf.mxu2 }
 0x18b   : > { %2022 = vst [vmem:[%s3035_s7 + $0x20] sm:$0xff] %v2006_v23  ;;  %v2038_v26 = vadd.f32 %v2037_v11, %v2006_v23  ;;  %v2063_v13 = vmul.f32 %v2006_v23, %v2006_v23  ;;  %v1687_v36 = vadd.f32 %v1654_v24, %v1551_v17 }
 0x18c   : > { %v1812_v31 = vpop.f32.mrf.mxu3  ;;  %v1521_v32 = vpop.f32.mrf.mxu1 }
 0x18d   : > { %v2078_v34 = vadd.f32 %v2077_v10, %v2063_v13  ;;  %v1845_v33 = vadd.f32 %v1812_v31, %v1687_v36  ;;  %v1552_v39 = vadd.f32 %v1521_v32, %v3644_v18 }
 0x18e   : > { %v1957_v49 = vpop.f32.mrf.mxu0 }
 0x18f   : > { %v1987_v20 = vadd.f32 %v1954_v9, %v1845_v33 }
 0x191   : > { %v2007_v27 = vadd.f32 %v3706_v4, %v1987_v20 }
 0x192   : > { %v1657_v8 = vpop.f32.mrf.mxu2 }
 0x193   : > { %2023 = vst [vmem:[%s3035_s7 + $0x28] sm:$0xff] %v2007_v27  ;;  %v2039_v54 = vadd.f32 %v2038_v26, %v2007_v27  ;;  %v2064_v45 = vmul.f32 %v2007_v27, %v2007_v27  ;;  %v1688_v16 = vadd.f32 %v1657_v8, %v1552_v39 }
 0x194   : > { %v1815_v25 = vpop.f32.mrf.mxu3  ;;  %v1523_v15 = vpop.f32.mrf.mxu1 }
 0x195   : > { %v2079_v22 = vadd.f32 %v2078_v34, %v2064_v45  ;;  %v1846_v51 = vadd.f32 %v1815_v25, %v1688_v16  ;;  %v1553_v6 = vadd.f32 %v1523_v15, %v3648_v19 }
 0x196   : > { %v1959_v12 = vpop.f32.mrf.mxu0 }
 0x197   : > { %v1988_v2 = vadd.f32 %v1957_v49, %v1846_v51 }
 0x199   : > { %v2008_v35 = vadd.f32 %v3706_v4, %v1988_v2 }
 0x19a   : > { %v1659_v47 = vpop.f32.mrf.mxu2 }
 0x19b   : > { %2024 = vst [vmem:[%s3035_s7 + $0x30] sm:$0xff] %v2008_v35  ;;  %v2040_v30 = vadd.f32 %v2039_v54, %v2008_v35  ;;  %v2065_v18 = vmul.f32 %v2008_v35, %v2008_v35  ;;  %v1689_v61 = vadd.f32 %v1659_v47, %v1553_v6 }
 0x19c   : > { %v1817_v42 = vpop.f32.mrf.mxu3  ;;  %v1526_v52 = vpop.f32.mrf.mxu1 }
 0x19d   : > { %v2080_v14 = vadd.f32 %v2079_v22, %v2065_v18  ;;  %v1847_v43 = vadd.f32 %v1817_v42, %v1689_v61  ;;  %v1554_v41 = vadd.f32 %v1526_v52, %v3653_v60 }
 0x19e   : > { %v1962_v28 = vpop.f32.mrf.mxu0 }
 0x19f   : > { %v1989_v21 = vadd.f32 %v1959_v12, %v1847_v43 }
 0x1a1   : > { %v2009_v57 = vadd.f32 %v3706_v4, %v1989_v21 }
 0x1a2   : > { %v1662_v29 = vpop.f32.mrf.mxu2 }
 0x1a3   : > { %2025 = vst [vmem:[%s3035_s7 + $0x38] sm:$0xff] %v2009_v57  ;;  %v2041_v46 = vadd.f32 %v2040_v30, %v2009_v57  ;;  %v2066_v19 = vmul.f32 %v2009_v57, %v2009_v57  ;;  %v1690_v38 = vadd.f32 %v1662_v29, %v1554_v41 }
 0x1a4   : > { %v1820_v50 = vpop.f32.mrf.mxu3  ;;  %v1528_v40 = vpop.f32.mrf.mxu1 }
 0x1a5   : > { %v2081_v56 = vadd.f32 %v2080_v14, %v2066_v19  ;;  %v1848_v0 = vadd.f32 %v1820_v50, %v1690_v38  ;;  %v1555_v58 = vadd.f32 %v1528_v40, %v3661_v44 }
 0x1a6   : > { %v1964_v11 = vpop.f32.mrf.mxu0 }
 0x1a7   : > { %v1990_v7 = vadd.f32 %v1962_v28, %v1848_v0 }
 0x1a9   : > { %v2010_v53 = vadd.f32 %v3706_v4, %v1990_v7 }
 0x1aa   : > { %v1664_v3 = vpop.f32.mrf.mxu2 }
 0x1ab   : > { %2026 = vst [vmem:[%s3035_s7 + $0x40] sm:$0xff] %v2010_v53  ;;  %v2042_v10 = vadd.f32 %v2041_v46, %v2010_v53  ;;  %v2067_v60 = vmul.f32 %v2010_v53, %v2010_v53  ;;  %v1691_v48 = vadd.f32 %v1664_v3, %v1555_v58 }
 0x1ac   : > { %v1822_v9 = vpop.f32.mrf.mxu3  ;;  %v1531_v63 = vpop.f32.mrf.mxu1 }
 0x1ad   : > { %v2082_v23 = vadd.f32 %v2081_v56, %v2067_v60  ;;  %v1849_v17 = vadd.f32 %v1822_v9, %v1691_v48  ;;  %v1556_v36 = vadd.f32 %v1531_v63, %v3672_v59 }
 0x1ae   : > { %v1967_v24 = vpop.f32.mrf.mxu0 }
 0x1af   : > { %v1991_v26 = vadd.f32 %v1964_v11, %v1849_v17 }
 0x1b1   : > { %v2011_v13 = vadd.f32 %v3706_v4, %v1991_v26 }
 0x1b2   : > { %v1667_v31 = vpop.f32.mrf.mxu2 }
 0x1b3   : > { %2027 = vst [vmem:[%s3035_s7 + $0x48] sm:$0xff] %v2011_v13  ;;  %v2043_v32 = vadd.f32 %v2042_v10, %v2011_v13  ;;  %v2068_v44 = vmul.f32 %v2011_v13, %v2011_v13  ;;  %v1692_v34 = vadd.f32 %v1667_v31, %v1556_v36 }
 0x1b4   : > { %v1825_v33 = vpop.f32.mrf.mxu3  ;;  %v1533_v49 = vpop.f32.mrf.mxu1 }
 0x1b5   : > { %v2083_v20 = vadd.f32 %v2082_v23, %v2068_v44  ;;  %v1850_v27 = vadd.f32 %v1825_v33, %v1692_v34  ;;  %v1557_v45 = vadd.f32 %v1533_v49, %v3678_v37 }
 0x1b6   : > { %v1969_v39 = vpop.f32.mrf.mxu0 }
 0x1b7   : > { %v1992_v8 = vadd.f32 %v1967_v24, %v1850_v27 }
 0x1b9   : > { %v2012_v54 = vadd.f32 %v3706_v4, %v1992_v8 }
 0x1ba   : > { %v1669_v16 = vpop.f32.mrf.mxu2 }
 0x1bb   : > { %2028 = vst [vmem:[%s3035_s7 + $0x50] sm:$0xff] %v2012_v54  ;;  %v2044_v25 = vadd.f32 %v2043_v32, %v2012_v54  ;;  %v2069_v59 = vmul.f32 %v2012_v54, %v2012_v54  ;;  %v1693_v15 = vadd.f32 %v1669_v16, %v1557_v45 }
 0x1bc   : > { %v1827_v22 = vpop.f32.mrf.mxu3  ;;  %v1536_v51 = vpop.f32.mrf.mxu1 }
 0x1bd   : > { %v2084_v12 = vadd.f32 %v2083_v20, %v2069_v59  ;;  %v1851_v2 = vadd.f32 %v1827_v22, %v1693_v15  ;;  %v1558_v30 = vadd.f32 %v1536_v51, %v3690_v55 }
 0x1be   : > { %v1972_v6 = vpop.f32.mrf.mxu0 }
 0x1bf   : > { %v1993_v35 = vadd.f32 %v1969_v39, %v1851_v2 }
 0x1c1   : > { %v2013_v47 = vadd.f32 %v3706_v4, %v1993_v35 }
 0x1c2   : > { %v1672_v18 = vpop.f32.mrf.mxu2 }
 0x1c3   : > { %2029 = vst [vmem:[%s3035_s7 + $0x58] sm:$0xff] %v2013_v47  ;;  %v2045_v61 = vadd.f32 %v2044_v25, %v2013_v47  ;;  %v2070_v37 = vmul.f32 %v2013_v47, %v2013_v47  ;;  %v1694_v42 = vadd.f32 %v1672_v18, %v1558_v30 }
 0x1c4   : > { %v1830_v52 = vpop.f32.mrf.mxu3  ;;  %v1538_v14 = vpop.f32.mrf.mxu1 }
 0x1c5   : > { %v2085_v43 = vadd.f32 %v2084_v12, %v2070_v37  ;;  %v1852_v28 = vadd.f32 %v1830_v52, %v1694_v42  ;;  %v1559_v41 = vadd.f32 %v1538_v14, %v3694_v1  ;;  %v2034_v12 = vld [vmem:[%s3020_s17] sm:$0x1] }
 0x1c6   : > { %v1974_v29 = vpop.f32.mrf.mxu0 }
 0x1c7   : > { %v1994_v21 = vadd.f32 %v1972_v6, %v1852_v28 }
 0x1c9   : > { %v2014_v57 = vadd.f32 %v3706_v4, %v1994_v21 }
 0x1ca   : > { %v1674_v46 = vpop.f32.mrf.mxu2 }
 0x1cb   : > { %2030 = vst [vmem:[%s3035_s7 + $0x60] sm:$0xff] %v2014_v57  ;;  %v2046_v19 = vadd.f32 %v2045_v61, %v2014_v57  ;;  %v2071_v55 = vmul.f32 %v2014_v57, %v2014_v57  ;;  %v1695_v38 = vadd.f32 %v1674_v46, %v1559_v41 }
 0x1cc   : > { %v1832_v50 = vpop.f32.mrf.mxu3  ;;  %v1541_v40 = vpop.f32.mrf.mxu1 }
 0x1cd   : > { %v2086_v56 = vadd.f32 %v2085_v43, %v2071_v55  ;;  %v1853_v0 = vadd.f32 %v1832_v50, %v1695_v38  ;;  %v1560_v53 = vadd.f32 %v1541_v40, %v3697_v5 }
 0x1ce   : > { %v1977_v48 = vpop.f32.mrf.mxu0 }
 0x1cf   : > { %v1995_v11 = vadd.f32 %v1974_v29, %v1853_v0 }
 0x1d1   : > { %v2015_v7 = vadd.f32 %v3706_v4, %v1995_v11 }
 0x1d2   : > { %v1677_v58 = vpop.f32.mrf.mxu2 }
 0x1d3   : > { %2031 = vst [vmem:[%s3035_s7 + $0x68] sm:$0xff] %v2015_v7  ;;  %v2047_v3 = vadd.f32 %v2046_v19, %v2015_v7  ;;  %v2072_v1 = vmul.f32 %v2015_v7, %v2015_v7  ;;  %v1696_v10 = vadd.f32 %v1677_v58, %v1560_v53 }
 0x1d4   : > { %v1835_v60 = vpop.f32.mrf.mxu3  ;;  %v1543_v23 = vpop.f32.mrf.mxu1 }
 0x1d5   : > { %v2087_v9 = vadd.f32 %v2086_v56, %v2072_v1  ;;  %v1854_v63 = vadd.f32 %v1835_v60, %v1696_v10  ;;  %v1561_v26 = vadd.f32 %v1543_v23, %v3700_v62 }
 0x1d6   : > { %v1979_v33 = vpop.f32.mrf.mxu0 }
 0x1d7   : > { %v1996_v17 = vadd.f32 %v1977_v48, %v1854_v63 }
 0x1d9   : > { %v2016_v24 = vadd.f32 %v3706_v4, %v1996_v17 }
 0x1da   : > { %v1679_v13 = vpop.f32.mrf.mxu2 }
 0x1db   : > { %2032 = vst [vmem:[%s3035_s7 + $0x70] sm:$0xff] %v2016_v24  ;;  %v2048_v36 = vadd.f32 %v2047_v3, %v2016_v24  ;;  %v2073_v5 = vmul.f32 %v2016_v24, %v2016_v24  ;;  %v1697_v31 = vadd.f32 %v1679_v13, %v1561_v26 }
 0x1dc   : > { %v1837_v32 = vpop.f32.mrf.mxu3 }
 0x1dd   : > { %v2088_v44 = vadd.f32 %v2087_v9, %v2073_v5  ;;  %v1855_v34 = vadd.f32 %v1837_v32, %v1697_v31 }
 0x1df   : > { %v1997_v49 = vadd.f32 %v1979_v33, %v1855_v34 }
 0x1e1   : > { %v2017_v20 = vadd.f32 %v3706_v4, %v1997_v49  ;;  %v2058_v4 = vld [vmem:[%s3025_s30] sm:$0x1] }
 0x1e3   : > { %2033 = vst [vmem:[%s3035_s7 + $0x78] sm:$0xff] %v2017_v20  ;;  %v2049_v27 = vadd.f32 %v2048_v36, %v2017_v20  ;;  %v2074_v39 = vmul.f32 %v2017_v20, %v2017_v20 }
 0x1e5   : > { %v2050_v8 = vrot.slane %v2049_v27, 4  ;;  %v2089_v62 = vadd.f32 %v2088_v44, %v2074_v39 }
 0x1e7   : > { %v2051_v54 = vadd.f32 %v2050_v8, %v2049_v27  ;;  %v2090_v45 = vrot.slane %v2089_v62, 4 }
 0x1e9   : > { %v2052_v16 = vrot.slane %v2051_v54, 2  ;;  %v2091_v25 = vadd.f32 %v2090_v45, %v2089_v62 }
 0x1eb   : > { %v2053_v59 = vadd.f32 %v2052_v16, %v2051_v54  ;;  %v2092_v15 = vrot.slane %v2091_v25, 2 }
 0x1ed   : > { %v2054_v22 = vrot.slane %v2053_v59, 1  ;;  %v2093_v51 = vadd.f32 %v2092_v15, %v2091_v25 }
 0x1ef   : > { %v2055_v2 = vadd.f32 %v2054_v22, %v2053_v59  ;;  %v2094_v35 = vrot.slane %v2093_v51, 1 }
 0x1f1   : > { %v2056_v6 = vadd.f32 %v2055_v2, %v2034_v12  ;;  %v2095_v47 = vadd.f32 %v2094_v35, %v2093_v51 }
 0x1f3   : > { %2057 = vst [vmem:[%s3020_s17] sm:$0x1] %v2056_v6  ;;  %v2096_v30 = vadd.f32 %v2095_v47, %v2058_v4 }
 0x1f5   : > { %2097 = vst [vmem:[%s3025_s30] sm:$0x1] %v2096_v30 }
 0x1f6 PF: > { %s17_s25 = sadd.s32 1, %s2941_s25   ;;  %s3788_s7 = sld [smem:[#allocation2_spill]] }
 0x1f7   : > { %p14_p10 = scmp.ge.s32.totalorder %s17_s25, 6   ;;  %s3789_s21 = smov %s2933_s23 }
 0x1f8   : > { %s3790_s22 = smov %s2937_s24  ;;  %s3791_s23 = smov %s3794_s26 }
 0x1f9   :  { %16 = sbr.rel (!%p14_p10) target bundleno = 3 (0x3), region = 105 }
 0x1fc   : > { %s3792_s24 = smov %s3788_s7 }

</bundles_post_ra>
